<compile_context>
chip_gen: v5e
topology: v5e:2x2
jax: 0.10.0
libtpu: 0.0.40
codegen_flags: <defaults>
</compile_context>

<pallas_src>
import jax
import jax.numpy as jnp
from jax.experimental import pallas as pl
from jax.experimental.pallas import tpu as pltpu

# ----------------------------- model config ---------------------------------
H = 32                # hidden size
NUM_HEADS = 4
HEAD_DIM = H // NUM_HEADS
FFN = 4 * H
NUM_LAYERS = 2
NUM_HASHES = 8        # CANINE-style hash character embeddings
NUM_BUCKETS = 512
EMB_SLICE = H // NUM_HASHES
MAX_POS = 64
EPS = 1e-12           # CANINE / BERT layer_norm_eps
PRIMES = (31, 43, 59, 61, 73, 97, 103, 113)
ATTN_SCALE = 1.0 / float(HEAD_DIM) ** 0.5


# ------------------------------ kernel helpers -------------------------------
def _layernorm(x, gamma, beta):
    mu = jnp.mean(x, axis=-1, keepdims=True)
    var = jnp.mean((x - mu) ** 2, axis=-1, keepdims=True)
    return (x - mu) * jax.lax.rsqrt(var + EPS) * gamma + beta


def _gelu(x):
    # TODO(synk): HF CANINE uses exact erf GELU; tanh approximation used here.
    c = 0.7978845608028654  # sqrt(2/pi)
    return 0.5 * x * (1.0 + jnp.tanh(c * (x + 0.044715 * x * x * x)))


# --------------------------- fused encoder kernel ----------------------------
def fused_encoder_kernel(ids_ref, pos_ref, table_ref, embln_ref, wqkv_ref,
                         bqkv_ref, wo_ref, vecs_ref, w1_ref, b1_ref, w2_ref,
                         hs_ref):
    """Embedding gather + embedding LN + all encoder layers in one kernel.

    ids_ref  : (B*S, 1) int32       character codes
    pos_ref  : (S, H)               position + token-type embeddings
    table_ref: (NUM_HASHES*NUM_BUCKETS, H)  block-structured hash emb table
    embln_ref: (2, H)               [gamma; beta] for embedding LayerNorm
    wqkv_ref : (L, H, 3H)           fused q|k|v projection weights
    bqkv_ref : (L, 1, 3H)           fused q|k|v projection biases
    wo_ref   : (L, H, H)            attention output projection
    vecs_ref : (L, 6, H)            [bo, ln1_g, ln1_b, b2, ln2_g, ln2_b]
    w1_ref   : (L, H, FFN)   b1_ref: (L, 1, FFN)   w2_ref: (L, FFN, H)
    hs_ref   : (L+1, B*S, H)        stacked hidden states
    """
    BS = ids_ref.shape[0]
    S = pos_ref.shape[0]
    B = BS // S

    # ---- hash character embedding as a one-hot MXU matmul ----
    ids1 = ids_ref[...] + 1                                          # (BS, 1)
    col = jax.lax.broadcasted_iota(jnp.int32, (BS, NUM_BUCKETS), 1)
    stripes = []
    for k in range(NUM_HASHES):
        bk = (ids1 * PRIMES[k]) & (NUM_BUCKETS - 1)                  # (BS, 1)
        stripes.append((col == bk).astype(jnp.float32))              # (BS, 512)
    onehot = jnp.concatenate(stripes, axis=-1)           # (BS, NH_HASH*BUCKETS)
    char_emb = jnp.dot(onehot, table_ref[...],
                       preferred_element_type=jnp.float32)           # (BS, H)

    pos = pos_ref[...]                                               # (S, H)
    pos_tiled = jnp.concatenate([pos] * B, axis=0) if B > 1 else pos
    emb = char_emb + pos_tiled

    ln = embln_ref[...]
    h = _layernorm(emb, ln[0:1, :], ln[1:2, :])                      # (BS, H)
    hs_ref[0] = h.astype(hs_ref.dtype)

    # ---- head split/merge with only lane slices + native leading reshapes ----
    def split_heads(mat, base):
        # (BS, lanes) slice [base, base+H) -> (NUM_HEADS*B, S, HEAD_DIM)
        parts = []
        for n in range(NUM_HEADS):
            lo = base + n * HEAD_DIM
            parts.append(mat[:, lo:lo + HEAD_DIM].reshape(B, S, HEAD_DIM))
        return jnp.concatenate(parts, axis=0)

    def merge_heads(ctx):
        # (NUM_HEADS*B, S, HEAD_DIM) -> (BS, NUM_HEADS*HEAD_DIM)
        parts = []
        for n in range(NUM_HEADS):
            parts.append(ctx[n * B:(n + 1) * B].reshape(BS, HEAD_DIM))
        return jnp.concatenate(parts, axis=-1)

    for l in range(NUM_LAYERS):
        wqkv = wqkv_ref[l]                                  # (H, 3H)
        bqkv = bqkv_ref[l]                                  # (1, 3H)
        wo = wo_ref[l]                                      # (H, H)
        vl = vecs_ref[l]                                    # (6, H)
        bo, g1, be1, b2, g2, be2 = (vl[i:i + 1, :] for i in range(6))
        w1 = w1_ref[l]                                      # (H, FFN)
        b1 = b1_ref[l]                                      # (1, FFN)
        w2 = w2_ref[l]                                      # (FFN, H)

        # --- fused QKV projection: one lane-dense matmul per layer ---
        qkv = jnp.dot(h, wqkv, preferred_element_type=jnp.float32) + bqkv

        qh = split_heads(qkv, 0)                            # (NH*B, S, HD)
        kh = split_heads(qkv, H)
        vh = split_heads(qkv, 2 * H)

        # --- self-attention (no padding mask; matches HF default all-ones) ---
        s = jnp.einsum('xqd,xkd->xqk', qh, kh,
                       preferred_element_type=jnp.float32) * ATTN_SCALE
        s = s - jnp.max(s, axis=-1, keepdims=True)
        p = jnp.exp(s)
        p = p / jnp.sum(p, axis=-1, keepdims=True)          # exact softmax
        ctx = jnp.einsum('xqk,xkd->xqd', p, vh,
                         preferred_element_type=jnp.float32)

        # --- output projection: one (BS, H) @ (H, H) matmul ---
        attn = jnp.dot(merge_heads(ctx), wo,
                       preferred_element_type=jnp.float32) + bo

        h1 = _layernorm(attn + h, g1, be1)

        # --- feed-forward ---
        ff = jnp.dot(h1, w1, preferred_element_type=jnp.float32) + b1
        ff = _gelu(ff)
        ff = jnp.dot(ff, w2, preferred_element_type=jnp.float32) + b2
        h = _layernorm(ff + h1, g2, be2)

        hs_ref[l + 1] = h.astype(hs_ref.dtype)


def _encoder_forward(ids2d, pos_type, params):
    """ids2d: (B*S, 1) int32 -> stacked hidden states (L+1, B*S, H)."""
    BS = ids2d.shape[0]
    return pl.pallas_call(
        fused_encoder_kernel,
        out_shape=jax.ShapeDtypeStruct((NUM_LAYERS + 1, BS, H), jnp.float32),
        in_specs=[pl.BlockSpec(memory_space=pltpu.MemorySpace.VMEM)] * 11,
        out_specs=pl.BlockSpec(memory_space=pltpu.MemorySpace.VMEM),
    )(ids2d, pos_type, params['table'], params['emb_ln'], params['wqkv'],
      params['bqkv'], params['wo'], params['vecs'], params['w1'],
      params['b1'], params['w2'])


_encoder_forward_jit = jax.jit(_encoder_forward)


# ------------------------------ TextEncoder -----------------------------------
class TextEncoder:
    """Synthetic CANINE-style text encoder (deterministic random weights)."""

    def __init__(self, seed=0):
        key = jax.random.PRNGKey(seed)
        ks = list(jax.random.split(key, 3 + 6 * NUM_LAYERS))
        kit = iter(ks)

        def dense(k, shape):
            return 0.02 * jax.random.normal(k, shape, jnp.float32)

        hash_tables = dense(next(kit), (NUM_HASHES, NUM_BUCKETS, EMB_SLICE))
        self.pos_emb = dense(next(kit), (MAX_POS, H))
        self.type_emb = dense(next(kit), (1, H))

        # Block-structured hash table: row k*NUM_BUCKETS + j carries
        # hash_tables[k, j] in columns [k*EMB_SLICE, (k+1)*EMB_SLICE), zeros
        # elsewhere, so `onehot @ table` reproduces the per-hash concat.
        blocks = []
        for k in range(NUM_HASHES):
            left = jnp.zeros((NUM_BUCKETS, k * EMB_SLICE), jnp.float32)
            right = jnp.zeros((NUM_BUCKETS, H - (k + 1) * EMB_SLICE),
                              jnp.float32)
            blocks.append(jnp.concatenate([left, hash_tables[k], right],
                                          axis=1))
        table = jnp.concatenate(blocks, axis=0)      # (NUM_HASHES*BUCKETS, H)

        emb_ln = jnp.stack([jnp.ones((H,), jnp.float32),
                            jnp.zeros((H,), jnp.float32)])          # (2, H)

        wqkv_l, bqkv_l, wo_l, vec_l, w1_l, b1_l, w2_l = ([] for _ in range(7))
        for _ in range(NUM_LAYERS):
            wq = dense(next(kit), (H, H))
            wk = dense(next(kit), (H, H))
            wv = dense(next(kit), (H, H))
            wo = dense(next(kit), (H, H))
            w1 = dense(next(kit), (H, FFN))
            w2 = dense(next(kit), (FFN, H))
            bo = b2 = jnp.zeros((H,), jnp.float32)
            b1 = jnp.zeros((FFN,), jnp.float32)
            ln1_g = ln2_g = jnp.ones((H,), jnp.float32)
            ln1_b = ln2_b = jnp.zeros((H,), jnp.float32)

            # host-side lane-dense packing (free, done once):
            wqkv_l.append(jnp.concatenate([wq, wk, wv], axis=1))   # (H, 3H)
            bqkv_l.append(jnp.zeros((1, 3 * H), jnp.float32))      # (1, 3H)
            wo_l.append(wo)                                        # (H, H)
            vec_l.append(jnp.stack([bo, ln1_g, ln1_b, b2, ln2_g, ln2_b]))
            w1_l.append(w1)
            b1_l.append(b1.reshape(1, FFN))
            w2_l.append(w2)

        self.params = {
            'table': table,                   # (NUM_HASHES*BUCKETS, H)
            'emb_ln': emb_ln,                 # (2, H)
            'wqkv': jnp.stack(wqkv_l),        # (L, H, 3H)
            'bqkv': jnp.stack(bqkv_l),        # (L, 1, 3H)
            'wo': jnp.stack(wo_l),            # (L, H, H)
            'vecs': jnp.stack(vec_l),         # (L, 6, H)
            'w1': jnp.stack(w1_l),            # (L, H, FFN)
            'b1': jnp.stack(b1_l),            # (L, 1, FFN)
            'w2': jnp.stack(w2_l),            # (L, FFN, H)
        }

    # --- mirrors of the PyTorch helpers ---
    def text_bytes(self, text):
        if len(text) == 0:
            return jnp.empty((1, 0), dtype=jnp.int32)
        return jnp.array([[ord(c) for c in text]], dtype=jnp.int32)

    def pad(self, tokens):
        pad = 4 - tokens.shape[1]
        if pad > 0:
            tokens = jnp.concatenate(
                (tokens, jnp.zeros((tokens.shape[0], pad), tokens.dtype)),
                axis=1)
        return tokens

    # --- forward: returns all hidden states (like output_hidden_states=True) ---
    def __call__(self, text_t):
        return self.forward(text_t)

    def forward(self, text_t):
        B, S = text_t.shape
        assert 1 <= S <= MAX_POS, "sequence length must be in [1, MAX_POS]"
        ids2d = jnp.asarray(text_t, jnp.int32).reshape(B * S, 1)
        pos_type = self.pos_emb[:S] + self.type_emb                  # (S, H)
        hs = _encoder_forward_jit(ids2d, pos_type, self.params)
        hs = hs.reshape(NUM_LAYERS + 1, B, S, H)
        hidden_states = tuple(hs[i] for i in range(NUM_LAYERS + 1))
        return {"last_hidden_state": hidden_states[-1],
                "hidden_states": hidden_states}

    def encode(self, text, layer=-1):
        if isinstance(text, str):
            text = self.text_bytes(text)
            text = self.pad(text)
        return self.forward(text)["hidden_states"][layer]


# ---------------------------------- main --------------------------------------
if __name__ == "__main__":
    enc = TextEncoder(seed=0)

    key = jax.random.PRNGKey(0)
    B, S = 2, 8
    tokens = jax.random.randint(key, (B, S), 1, 128, dtype=jnp.int32)  # chars

    out = enc.forward(tokens)
    last = out["hidden_states"][-1]
    jax.block_until_ready(last)

    assert last.shape == (B, S, H)
    assert len(out["hidden_states"]) == NUM_LAYERS + 1
    assert bool(jnp.all(jnp.isfinite(last)))

    # also exercise the string path (encode -> text_bytes -> pad)
    e = enc.encode("hi")
    jax.block_until_ready(e)
    assert e.shape == (1, 4, H)

    print("KERNEL_OK")
</pallas_src>

<mosaic_0001>
module attributes {stable_mosaic.version = 11 : i64} {
  func.func @fused_encoder_kernel(%arg0: memref<16x1xi32, #tpu.memory_space<vmem>>, %arg1: memref<8x32xf32, #tpu.memory_space<vmem>>, %arg2: memref<4096x32xf32, #tpu.memory_space<vmem>>, %arg3: memref<2x32xf32, #tpu.memory_space<vmem>>, %arg4: memref<2x32x96xf32, #tpu.memory_space<vmem>>, %arg5: memref<2x1x96xf32, #tpu.memory_space<vmem>>, %arg6: memref<2x32x32xf32, #tpu.memory_space<vmem>>, %arg7: memref<2x6x32xf32, #tpu.memory_space<vmem>>, %arg8: memref<2x32x128xf32, #tpu.memory_space<vmem>>, %arg9: memref<2x1x128xf32, #tpu.memory_space<vmem>>, %arg10: memref<2x128x32xf32, #tpu.memory_space<vmem>>, %arg11: memref<3x16x32xf32, #tpu.memory_space<vmem>>) attributes {dimension_semantics = [], scalar_prefetch = 0 : i64, scratch_operands = 0 : i64, tpu.core_type = #tpu.core_type<tc>} {
    %c0 = arith.constant 0 : index
    %c0_0 = arith.constant 0 : index
    %0 = vector.load %arg0[%c0, %c0_0] : memref<16x1xi32, #tpu.memory_space<vmem>>, vector<16x1xi32>
    %c1_i32 = arith.constant 1 : i32
    %1 = vector.broadcast %c1_i32 : i32 to vector<16x1xi32>
    %2 = arith.addi %0, %1 : vector<16x1xi32>
    %3 = tpu.iota {dimensions = array<i32: 1>} : vector<16x512xi32>
    %c31_i32 = arith.constant 31 : i32
    %4 = vector.broadcast %c31_i32 : i32 to vector<16x1xi32>
    %5 = arith.muli %2, %4 : vector<16x1xi32>
    %c511_i32 = arith.constant 511 : i32
    %6 = vector.broadcast %c511_i32 : i32 to vector<16x1xi32>
    %7 = arith.andi %5, %6 : vector<16x1xi32>
    %8 = vector.broadcast %7 : vector<16x1xi32> to vector<16x512xi32>
    %9 = arith.cmpi eq, %3, %8 : vector<16x512xi32>
    %10 = arith.extui %9 : vector<16x512xi1> to vector<16x512xi32>
    %11 = arith.sitofp %10 : vector<16x512xi32> to vector<16x512xf32>
    %c43_i32 = arith.constant 43 : i32
    %12 = vector.broadcast %c43_i32 : i32 to vector<16x1xi32>
    %13 = arith.muli %2, %12 : vector<16x1xi32>
    %c511_i32_1 = arith.constant 511 : i32
    %14 = vector.broadcast %c511_i32_1 : i32 to vector<16x1xi32>
    %15 = arith.andi %13, %14 : vector<16x1xi32>
    %16 = vector.broadcast %15 : vector<16x1xi32> to vector<16x512xi32>
    %17 = arith.cmpi eq, %3, %16 : vector<16x512xi32>
    %18 = arith.extui %17 : vector<16x512xi1> to vector<16x512xi32>
    %19 = arith.sitofp %18 : vector<16x512xi32> to vector<16x512xf32>
    %c59_i32 = arith.constant 59 : i32
    %20 = vector.broadcast %c59_i32 : i32 to vector<16x1xi32>
    %21 = arith.muli %2, %20 : vector<16x1xi32>
    %c511_i32_2 = arith.constant 511 : i32
    %22 = vector.broadcast %c511_i32_2 : i32 to vector<16x1xi32>
    %23 = arith.andi %21, %22 : vector<16x1xi32>
    %24 = vector.broadcast %23 : vector<16x1xi32> to vector<16x512xi32>
    %25 = arith.cmpi eq, %3, %24 : vector<16x512xi32>
    %26 = arith.extui %25 : vector<16x512xi1> to vector<16x512xi32>
    %27 = arith.sitofp %26 : vector<16x512xi32> to vector<16x512xf32>
    %c61_i32 = arith.constant 61 : i32
    %28 = vector.broadcast %c61_i32 : i32 to vector<16x1xi32>
    %29 = arith.muli %2, %28 : vector<16x1xi32>
    %c511_i32_3 = arith.constant 511 : i32
    %30 = vector.broadcast %c511_i32_3 : i32 to vector<16x1xi32>
    %31 = arith.andi %29, %30 : vector<16x1xi32>
    %32 = vector.broadcast %31 : vector<16x1xi32> to vector<16x512xi32>
    %33 = arith.cmpi eq, %3, %32 : vector<16x512xi32>
    %34 = arith.extui %33 : vector<16x512xi1> to vector<16x512xi32>
    %35 = arith.sitofp %34 : vector<16x512xi32> to vector<16x512xf32>
    %c73_i32 = arith.constant 73 : i32
    %36 = vector.broadcast %c73_i32 : i32 to vector<16x1xi32>
    %37 = arith.muli %2, %36 : vector<16x1xi32>
    %c511_i32_4 = arith.constant 511 : i32
    %38 = vector.broadcast %c511_i32_4 : i32 to vector<16x1xi32>
    %39 = arith.andi %37, %38 : vector<16x1xi32>
    %40 = vector.broadcast %39 : vector<16x1xi32> to vector<16x512xi32>
    %41 = arith.cmpi eq, %3, %40 : vector<16x512xi32>
    %42 = arith.extui %41 : vector<16x512xi1> to vector<16x512xi32>
    %43 = arith.sitofp %42 : vector<16x512xi32> to vector<16x512xf32>
    %c97_i32 = arith.constant 97 : i32
    %44 = vector.broadcast %c97_i32 : i32 to vector<16x1xi32>
    %45 = arith.muli %2, %44 : vector<16x1xi32>
    %c511_i32_5 = arith.constant 511 : i32
    %46 = vector.broadcast %c511_i32_5 : i32 to vector<16x1xi32>
    %47 = arith.andi %45, %46 : vector<16x1xi32>
    %48 = vector.broadcast %47 : vector<16x1xi32> to vector<16x512xi32>
    %49 = arith.cmpi eq, %3, %48 : vector<16x512xi32>
    %50 = arith.extui %49 : vector<16x512xi1> to vector<16x512xi32>
    %51 = arith.sitofp %50 : vector<16x512xi32> to vector<16x512xf32>
    %c103_i32 = arith.constant 103 : i32
    %52 = vector.broadcast %c103_i32 : i32 to vector<16x1xi32>
    %53 = arith.muli %2, %52 : vector<16x1xi32>
    %c511_i32_6 = arith.constant 511 : i32
    %54 = vector.broadcast %c511_i32_6 : i32 to vector<16x1xi32>
    %55 = arith.andi %53, %54 : vector<16x1xi32>
    %56 = vector.broadcast %55 : vector<16x1xi32> to vector<16x512xi32>
    %57 = arith.cmpi eq, %3, %56 : vector<16x512xi32>
    %58 = arith.extui %57 : vector<16x512xi1> to vector<16x512xi32>
    %59 = arith.sitofp %58 : vector<16x512xi32> to vector<16x512xf32>
    %c113_i32 = arith.constant 113 : i32
    %60 = vector.broadcast %c113_i32 : i32 to vector<16x1xi32>
    %61 = arith.muli %2, %60 : vector<16x1xi32>
    %c511_i32_7 = arith.constant 511 : i32
    %62 = vector.broadcast %c511_i32_7 : i32 to vector<16x1xi32>
    %63 = arith.andi %61, %62 : vector<16x1xi32>
    %64 = vector.broadcast %63 : vector<16x1xi32> to vector<16x512xi32>
    %65 = arith.cmpi eq, %3, %64 : vector<16x512xi32>
    %66 = arith.extui %65 : vector<16x512xi1> to vector<16x512xi32>
    %67 = arith.sitofp %66 : vector<16x512xi32> to vector<16x512xf32>
    %68 = tpu.concatenate %11, %19, %27, %35, %43, %51, %59, %67 in 1 : vector<16x512xf32>, vector<16x512xf32>, vector<16x512xf32>, vector<16x512xf32>, vector<16x512xf32>, vector<16x512xf32>, vector<16x512xf32>, vector<16x512xf32> -> vector<16x4096xf32>
    %c0_8 = arith.constant 0 : index
    %c0_9 = arith.constant 0 : index
    %69 = vector.load %arg2[%c0_8, %c0_9] : memref<4096x32xf32, #tpu.memory_space<vmem>>, vector<4096x32xf32>
    %cst = arith.constant dense<0.000000e+00> : vector<16x32xf32>
    %70 = tpu.matmul %68, %69, %cst {dimension_numbers = #tpu.dot_dimension_numbers<[1], [0], [0], [1], [0, 0, 1, 1], [], []>} : vector<16x4096xf32>, vector<4096x32xf32>, vector<16x32xf32> -> vector<16x32xf32>
    %c0_10 = arith.constant 0 : index
    %c0_11 = arith.constant 0 : index
    %71 = vector.load %arg1[%c0_10, %c0_11] : memref<8x32xf32, #tpu.memory_space<vmem>>, vector<8x32xf32>
    %72 = tpu.concatenate %71, %71 in 0 : vector<8x32xf32>, vector<8x32xf32> -> vector<16x32xf32>
    %73 = arith.addf %70, %72 : vector<16x32xf32>
    %c0_12 = arith.constant 0 : index
    %c0_13 = arith.constant 0 : index
    %74 = vector.load %arg3[%c0_12, %c0_13] : memref<2x32xf32, #tpu.memory_space<vmem>>, vector<2x32xf32>
    %75 = vector.extract_strided_slice %74 {offsets = [0, 0], sizes = [1, 32], strides = [1, 1]} : vector<2x32xf32> to vector<1x32xf32>
    %76 = vector.extract_strided_slice %74 {offsets = [1, 0], sizes = [1, 32], strides = [1, 1]} : vector<2x32xf32> to vector<1x32xf32>
    %cst_14 = arith.constant dense<0.000000e+00> : vector<16xf32>
    %77 = vector.multi_reduction <add>, %73, %cst_14 [1] : vector<16x32xf32> to vector<16xf32>
    %78 = vector.shape_cast %77 : vector<16xf32> to vector<16x1xf32>
    %cst_15 = arith.constant 3.200000e+01 : f32
    %79 = vector.broadcast %cst_15 : f32 to vector<16x1xf32>
    %80 = arith.divf %78, %79 : vector<16x1xf32>
    %81 = vector.broadcast %80 : vector<16x1xf32> to vector<16x32xf32>
    %82 = arith.subf %73, %81 : vector<16x32xf32>
    %83 = arith.mulf %82, %82 : vector<16x32xf32>
    %cst_16 = arith.constant dense<0.000000e+00> : vector<16xf32>
    %84 = vector.multi_reduction <add>, %83, %cst_16 [1] : vector<16x32xf32> to vector<16xf32>
    %85 = vector.shape_cast %84 : vector<16xf32> to vector<16x1xf32>
    %cst_17 = arith.constant 3.200000e+01 : f32
    %86 = vector.broadcast %cst_17 : f32 to vector<16x1xf32>
    %87 = arith.divf %85, %86 : vector<16x1xf32>
    %88 = vector.broadcast %80 : vector<16x1xf32> to vector<16x32xf32>
    %89 = arith.subf %73, %88 : vector<16x32xf32>
    %cst_18 = arith.constant 9.99999996E-13 : f32
    %90 = vector.broadcast %cst_18 : f32 to vector<16x1xf32>
    %91 = arith.addf %87, %90 : vector<16x1xf32>
    %92 = math.rsqrt %91 : vector<16x1xf32>
    %93 = vector.broadcast %92 : vector<16x1xf32> to vector<16x32xf32>
    %94 = arith.mulf %89, %93 : vector<16x32xf32>
    %95 = vector.broadcast %75 : vector<1x32xf32> to vector<16x32xf32>
    %96 = arith.mulf %94, %95 : vector<16x32xf32>
    %97 = vector.broadcast %76 : vector<1x32xf32> to vector<16x32xf32>
    %98 = arith.addf %96, %97 : vector<16x32xf32>
    %c0_19 = arith.constant 0 : index
    %c0_20 = arith.constant 0 : index
    %c0_21 = arith.constant 0 : index
    %99 = vector.load %arg11[%c0_19, %c0_20, %c0_21] : memref<3x16x32xf32, #tpu.memory_space<vmem>>, vector<1x16x32xf32>
    %100 = vector.shape_cast %99 : vector<1x16x32xf32> to vector<16x32xf32>
    %101 = vector.shape_cast %98 : vector<16x32xf32> to vector<1x16x32xf32>
    tpu.vector_store %arg11[%c0_19, %c0_20, %c0_21], %101 {strides = array<i32>} : memref<3x16x32xf32, #tpu.memory_space<vmem>>, vector<1x16x32xf32>,
    %c0_22 = arith.constant 0 : index
    %c0_23 = arith.constant 0 : index
    %c0_24 = arith.constant 0 : index
    %102 = vector.load %arg4[%c0_22, %c0_23, %c0_24] : memref<2x32x96xf32, #tpu.memory_space<vmem>>, vector<1x32x96xf32>
    %103 = vector.shape_cast %102 : vector<1x32x96xf32> to vector<32x96xf32>
    %c0_25 = arith.constant 0 : index
    %c0_26 = arith.constant 0 : index
    %c0_27 = arith.constant 0 : index
    %104 = vector.load %arg5[%c0_25, %c0_26, %c0_27] : memref<2x1x96xf32, #tpu.memory_space<vmem>>, vector<1x1x96xf32>
    %105 = vector.shape_cast %104 : vector<1x1x96xf32> to vector<1x96xf32>
    %c0_28 = arith.constant 0 : index
    %c0_29 = arith.constant 0 : index
    %c0_30 = arith.constant 0 : index
    %106 = vector.load %arg6[%c0_28, %c0_29, %c0_30] : memref<2x32x32xf32, #tpu.memory_space<vmem>>, vector<1x32x32xf32>
    %107 = vector.shape_cast %106 : vector<1x32x32xf32> to vector<32x32xf32>
    %c0_31 = arith.constant 0 : index
    %c0_32 = arith.constant 0 : index
    %c0_33 = arith.constant 0 : index
    %108 = vector.load %arg7[%c0_31, %c0_32, %c0_33] : memref<2x6x32xf32, #tpu.memory_space<vmem>>, vector<1x6x32xf32>
    %109 = vector.shape_cast %108 : vector<1x6x32xf32> to vector<6x32xf32>
    %110 = vector.extract_strided_slice %109 {offsets = [0, 0], sizes = [1, 32], strides = [1, 1]} : vector<6x32xf32> to vector<1x32xf32>
    %111 = vector.extract_strided_slice %109 {offsets = [1, 0], sizes = [1, 32], strides = [1, 1]} : vector<6x32xf32> to vector<1x32xf32>
    %112 = vector.extract_strided_slice %109 {offsets = [2, 0], sizes = [1, 32], strides = [1, 1]} : vector<6x32xf32> to vector<1x32xf32>
    %113 = vector.extract_strided_slice %109 {offsets = [3, 0], sizes = [1, 32], strides = [1, 1]} : vector<6x32xf32> to vector<1x32xf32>
    %114 = vector.extract_strided_slice %109 {offsets = [4, 0], sizes = [1, 32], strides = [1, 1]} : vector<6x32xf32> to vector<1x32xf32>
    %115 = vector.extract_strided_slice %109 {offsets = [5, 0], sizes = [1, 32], strides = [1, 1]} : vector<6x32xf32> to vector<1x32xf32>
    %c0_34 = arith.constant 0 : index
    %c0_35 = arith.constant 0 : index
    %c0_36 = arith.constant 0 : index
    %116 = vector.load %arg8[%c0_34, %c0_35, %c0_36] : memref<2x32x128xf32, #tpu.memory_space<vmem>>, vector<1x32x128xf32>
    %117 = vector.shape_cast %116 : vector<1x32x128xf32> to vector<32x128xf32>
    %c0_37 = arith.constant 0 : index
    %c0_38 = arith.constant 0 : index
    %c0_39 = arith.constant 0 : index
    %118 = vector.load %arg9[%c0_37, %c0_38, %c0_39] : memref<2x1x128xf32, #tpu.memory_space<vmem>>, vector<1x1x128xf32>
    %119 = vector.shape_cast %118 : vector<1x1x128xf32> to vector<1x128xf32>
    %c0_40 = arith.constant 0 : index
    %c0_41 = arith.constant 0 : index
    %c0_42 = arith.constant 0 : index
    %120 = vector.load %arg10[%c0_40, %c0_41, %c0_42] : memref<2x128x32xf32, #tpu.memory_space<vmem>>, vector<1x128x32xf32>
    %121 = vector.shape_cast %120 : vector<1x128x32xf32> to vector<128x32xf32>
    %cst_43 = arith.constant dense<0.000000e+00> : vector<16x96xf32>
    %122 = tpu.matmul %98, %103, %cst_43 {dimension_numbers = #tpu.dot_dimension_numbers<[1], [0], [0], [1], [0, 0, 1, 1], [], []>} : vector<16x32xf32>, vector<32x96xf32>, vector<16x96xf32> -> vector<16x96xf32>
    %123 = vector.broadcast %105 : vector<1x96xf32> to vector<16x96xf32>
    %124 = arith.addf %122, %123 : vector<16x96xf32>
    %125 = vector.extract_strided_slice %124 {offsets = [0, 0], sizes = [16, 8], strides = [1, 1]} : vector<16x96xf32> to vector<16x8xf32>
    %126 = vector.shape_cast %125 : vector<16x8xf32> to vector<2x8x8xf32>
    %127 = vector.extract_strided_slice %124 {offsets = [0, 8], sizes = [16, 8], strides = [1, 1]} : vector<16x96xf32> to vector<16x8xf32>
    %128 = vector.shape_cast %127 : vector<16x8xf32> to vector<2x8x8xf32>
    %129 = vector.extract_strided_slice %124 {offsets = [0, 16], sizes = [16, 8], strides = [1, 1]} : vector<16x96xf32> to vector<16x8xf32>
    %130 = vector.shape_cast %129 : vector<16x8xf32> to vector<2x8x8xf32>
    %131 = vector.extract_strided_slice %124 {offsets = [0, 24], sizes = [16, 8], strides = [1, 1]} : vector<16x96xf32> to vector<16x8xf32>
    %132 = vector.shape_cast %131 : vector<16x8xf32> to vector<2x8x8xf32>
    %133 = tpu.concatenate %126, %128, %130, %132 in 0 : vector<2x8x8xf32>, vector<2x8x8xf32>, vector<2x8x8xf32>, vector<2x8x8xf32> -> vector<8x8x8xf32>
    %134 = vector.extract_strided_slice %124 {offsets = [0, 32], sizes = [16, 8], strides = [1, 1]} : vector<16x96xf32> to vector<16x8xf32>
    %135 = vector.shape_cast %134 : vector<16x8xf32> to vector<2x8x8xf32>
    %136 = vector.extract_strided_slice %124 {offsets = [0, 40], sizes = [16, 8], strides = [1, 1]} : vector<16x96xf32> to vector<16x8xf32>
    %137 = vector.shape_cast %136 : vector<16x8xf32> to vector<2x8x8xf32>
    %138 = vector.extract_strided_slice %124 {offsets = [0, 48], sizes = [16, 8], strides = [1, 1]} : vector<16x96xf32> to vector<16x8xf32>
    %139 = vector.shape_cast %138 : vector<16x8xf32> to vector<2x8x8xf32>
    %140 = vector.extract_strided_slice %124 {offsets = [0, 56], sizes = [16, 8], strides = [1, 1]} : vector<16x96xf32> to vector<16x8xf32>
    %141 = vector.shape_cast %140 : vector<16x8xf32> to vector<2x8x8xf32>
    %142 = tpu.concatenate %135, %137, %139, %141 in 0 : vector<2x8x8xf32>, vector<2x8x8xf32>, vector<2x8x8xf32>, vector<2x8x8xf32> -> vector<8x8x8xf32>
    %143 = vector.extract_strided_slice %124 {offsets = [0, 64], sizes = [16, 8], strides = [1, 1]} : vector<16x96xf32> to vector<16x8xf32>
    %144 = vector.shape_cast %143 : vector<16x8xf32> to vector<2x8x8xf32>
    %145 = vector.extract_strided_slice %124 {offsets = [0, 72], sizes = [16, 8], strides = [1, 1]} : vector<16x96xf32> to vector<16x8xf32>
    %146 = vector.shape_cast %145 : vector<16x8xf32> to vector<2x8x8xf32>
    %147 = vector.extract_strided_slice %124 {offsets = [0, 80], sizes = [16, 8], strides = [1, 1]} : vector<16x96xf32> to vector<16x8xf32>
    %148 = vector.shape_cast %147 : vector<16x8xf32> to vector<2x8x8xf32>
    %149 = vector.extract_strided_slice %124 {offsets = [0, 88], sizes = [16, 8], strides = [1, 1]} : vector<16x96xf32> to vector<16x8xf32>
    %150 = vector.shape_cast %149 : vector<16x8xf32> to vector<2x8x8xf32>
    %151 = tpu.concatenate %144, %146, %148, %150 in 0 : vector<2x8x8xf32>, vector<2x8x8xf32>, vector<2x8x8xf32>, vector<2x8x8xf32> -> vector<8x8x8xf32>
    "tpu.trace_start"() <{level = 10 : i32, message = "xqd,xkd->xqk"}> : () -> ()
    %cst_44 = arith.constant dense<0.000000e+00> : vector<8x8x8xf32>
    %152 = tpu.matmul %133, %142, %cst_44 {dimension_numbers = #tpu.dot_dimension_numbers<[2], [2], [1], [1], [0, 0, 0, 1, 1, 1], [0], [0]>} : vector<8x8x8xf32>, vector<8x8x8xf32>, vector<8x8x8xf32> -> vector<8x8x8xf32>
    "tpu.trace_stop"() : () -> ()
    %cst_45 = arith.constant 0.353553385 : f32
    %153 = vector.broadcast %cst_45 : f32 to vector<8x8x8xf32>
    %154 = arith.mulf %152, %153 : vector<8x8x8xf32>
    %cst_46 = arith.constant dense<0xFF800000> : vector<8x8xf32>
    %155 = vector.multi_reduction <maximumf>, %154, %cst_46 [2] : vector<8x8x8xf32> to vector<8x8xf32>
    %156 = vector.shape_cast %155 : vector<8x8xf32> to vector<8x8x1xf32>
    %157 = vector.broadcast %156 : vector<8x8x1xf32> to vector<8x8x8xf32>
    %158 = arith.subf %154, %157 : vector<8x8x8xf32>
    %159 = math.exp %158 : vector<8x8x8xf32>
    %cst_47 = arith.constant dense<0.000000e+00> : vector<8x8xf32>
    %160 = vector.multi_reduction <add>, %159, %cst_47 [2] : vector<8x8x8xf32> to vector<8x8xf32>
    %161 = vector.shape_cast %160 : vector<8x8xf32> to vector<8x8x1xf32>
    %162 = vector.broadcast %161 : vector<8x8x1xf32> to vector<8x8x8xf32>
    %163 = arith.divf %159, %162 : vector<8x8x8xf32>
    "tpu.trace_start"() <{level = 10 : i32, message = "xqk,xkd->xqd"}> : () -> ()
    %cst_48 = arith.constant dense<0.000000e+00> : vector<8x8x8xf32>
    %164 = tpu.matmul %163, %151, %cst_48 {dimension_numbers = #tpu.dot_dimension_numbers<[2], [1], [1], [2], [0, 0, 0, 1, 1, 2], [0], [0]>} : vector<8x8x8xf32>, vector<8x8x8xf32>, vector<8x8x8xf32> -> vector<8x8x8xf32>
    "tpu.trace_stop"() : () -> ()
    %165 = vector.extract_strided_slice %164 {offsets = [0, 0, 0], sizes = [2, 8, 8], strides = [1, 1, 1]} : vector<8x8x8xf32> to vector<2x8x8xf32>
    %166 = vector.shape_cast %165 : vector<2x8x8xf32> to vector<16x8xf32>
    %167 = vector.extract_strided_slice %164 {offsets = [2, 0, 0], sizes = [2, 8, 8], strides = [1, 1, 1]} : vector<8x8x8xf32> to vector<2x8x8xf32>
    %168 = vector.shape_cast %167 : vector<2x8x8xf32> to vector<16x8xf32>
    %169 = vector.extract_strided_slice %164 {offsets = [4, 0, 0], sizes = [2, 8, 8], strides = [1, 1, 1]} : vector<8x8x8xf32> to vector<2x8x8xf32>
    %170 = vector.shape_cast %169 : vector<2x8x8xf32> to vector<16x8xf32>
    %171 = vector.extract_strided_slice %164 {offsets = [6, 0, 0], sizes = [2, 8, 8], strides = [1, 1, 1]} : vector<8x8x8xf32> to vector<2x8x8xf32>
    %172 = vector.shape_cast %171 : vector<2x8x8xf32> to vector<16x8xf32>
    %173 = tpu.concatenate %166, %168, %170, %172 in 1 : vector<16x8xf32>, vector<16x8xf32>, vector<16x8xf32>, vector<16x8xf32> -> vector<16x32xf32>
    %cst_49 = arith.constant dense<0.000000e+00> : vector<16x32xf32>
    %174 = tpu.matmul %173, %107, %cst_49 {dimension_numbers = #tpu.dot_dimension_numbers<[1], [0], [0], [1], [0, 0, 1, 1], [], []>} : vector<16x32xf32>, vector<32x32xf32>, vector<16x32xf32> -> vector<16x32xf32>
    %175 = vector.broadcast %110 : vector<1x32xf32> to vector<16x32xf32>
    %176 = arith.addf %174, %175 : vector<16x32xf32>
    %177 = arith.addf %176, %98 : vector<16x32xf32>
    %cst_50 = arith.constant dense<0.000000e+00> : vector<16xf32>
    %178 = vector.multi_reduction <add>, %177, %cst_50 [1] : vector<16x32xf32> to vector<16xf32>
    %179 = vector.shape_cast %178 : vector<16xf32> to vector<16x1xf32>
    %cst_51 = arith.constant 3.200000e+01 : f32
    %180 = vector.broadcast %cst_51 : f32 to vector<16x1xf32>
    %181 = arith.divf %179, %180 : vector<16x1xf32>
    %182 = vector.broadcast %181 : vector<16x1xf32> to vector<16x32xf32>
    %183 = arith.subf %177, %182 : vector<16x32xf32>
    %184 = arith.mulf %183, %183 : vector<16x32xf32>
    %cst_52 = arith.constant dense<0.000000e+00> : vector<16xf32>
    %185 = vector.multi_reduction <add>, %184, %cst_52 [1] : vector<16x32xf32> to vector<16xf32>
    %186 = vector.shape_cast %185 : vector<16xf32> to vector<16x1xf32>
    %cst_53 = arith.constant 3.200000e+01 : f32
    %187 = vector.broadcast %cst_53 : f32 to vector<16x1xf32>
    %188 = arith.divf %186, %187 : vector<16x1xf32>
    %189 = vector.broadcast %181 : vector<16x1xf32> to vector<16x32xf32>
    %190 = arith.subf %177, %189 : vector<16x32xf32>
    %cst_54 = arith.constant 9.99999996E-13 : f32
    %191 = vector.broadcast %cst_54 : f32 to vector<16x1xf32>
    %192 = arith.addf %188, %191 : vector<16x1xf32>
    %193 = math.rsqrt %192 : vector<16x1xf32>
    %194 = vector.broadcast %193 : vector<16x1xf32> to vector<16x32xf32>
    %195 = arith.mulf %190, %194 : vector<16x32xf32>
    %196 = vector.broadcast %111 : vector<1x32xf32> to vector<16x32xf32>
    %197 = arith.mulf %195, %196 : vector<16x32xf32>
    %198 = vector.broadcast %112 : vector<1x32xf32> to vector<16x32xf32>
    %199 = arith.addf %197, %198 : vector<16x32xf32>
    %cst_55 = arith.constant dense<0.000000e+00> : vector<16x128xf32>
    %200 = tpu.matmul %199, %117, %cst_55 {dimension_numbers = #tpu.dot_dimension_numbers<[1], [0], [0], [1], [0, 0, 1, 1], [], []>} : vector<16x32xf32>, vector<32x128xf32>, vector<16x128xf32> -> vector<16x128xf32>
    %201 = vector.broadcast %119 : vector<1x128xf32> to vector<16x128xf32>
    %202 = arith.addf %200, %201 : vector<16x128xf32>
    %cst_56 = arith.constant 5.000000e-01 : f32
    %203 = vector.broadcast %cst_56 : f32 to vector<16x128xf32>
    %204 = arith.mulf %203, %202 : vector<16x128xf32>
    %cst_57 = arith.constant 4.471500e-02 : f32
    %205 = vector.broadcast %cst_57 : f32 to vector<16x128xf32>
    %206 = arith.mulf %205, %202 : vector<16x128xf32>
    %207 = arith.mulf %206, %202 : vector<16x128xf32>
    %208 = arith.mulf %207, %202 : vector<16x128xf32>
    %209 = arith.addf %202, %208 : vector<16x128xf32>
    %cst_58 = arith.constant 0.797884583 : f32
    %210 = vector.broadcast %cst_58 : f32 to vector<16x128xf32>
    %211 = arith.mulf %210, %209 : vector<16x128xf32>
    %212 = math.tanh %211 : vector<16x128xf32>
    %cst_59 = arith.constant 1.000000e+00 : f32
    %213 = vector.broadcast %cst_59 : f32 to vector<16x128xf32>
    %214 = arith.addf %213, %212 : vector<16x128xf32>
    %215 = arith.mulf %204, %214 : vector<16x128xf32>
    %cst_60 = arith.constant dense<0.000000e+00> : vector<16x32xf32>
    %216 = tpu.matmul %215, %121, %cst_60 {dimension_numbers = #tpu.dot_dimension_numbers<[1], [0], [0], [1], [0, 0, 1, 1], [], []>} : vector<16x128xf32>, vector<128x32xf32>, vector<16x32xf32> -> vector<16x32xf32>
    %217 = vector.broadcast %113 : vector<1x32xf32> to vector<16x32xf32>
    %218 = arith.addf %216, %217 : vector<16x32xf32>
    %219 = arith.addf %218, %199 : vector<16x32xf32>
    %cst_61 = arith.constant dense<0.000000e+00> : vector<16xf32>
    %220 = vector.multi_reduction <add>, %219, %cst_61 [1] : vector<16x32xf32> to vector<16xf32>
    %221 = vector.shape_cast %220 : vector<16xf32> to vector<16x1xf32>
    %cst_62 = arith.constant 3.200000e+01 : f32
    %222 = vector.broadcast %cst_62 : f32 to vector<16x1xf32>
    %223 = arith.divf %221, %222 : vector<16x1xf32>
    %224 = vector.broadcast %223 : vector<16x1xf32> to vector<16x32xf32>
    %225 = arith.subf %219, %224 : vector<16x32xf32>
    %226 = arith.mulf %225, %225 : vector<16x32xf32>
    %cst_63 = arith.constant dense<0.000000e+00> : vector<16xf32>
    %227 = vector.multi_reduction <add>, %226, %cst_63 [1] : vector<16x32xf32> to vector<16xf32>
    %228 = vector.shape_cast %227 : vector<16xf32> to vector<16x1xf32>
    %cst_64 = arith.constant 3.200000e+01 : f32
    %229 = vector.broadcast %cst_64 : f32 to vector<16x1xf32>
    %230 = arith.divf %228, %229 : vector<16x1xf32>
    %231 = vector.broadcast %223 : vector<16x1xf32> to vector<16x32xf32>
    %232 = arith.subf %219, %231 : vector<16x32xf32>
    %cst_65 = arith.constant 9.99999996E-13 : f32
    %233 = vector.broadcast %cst_65 : f32 to vector<16x1xf32>
    %234 = arith.addf %230, %233 : vector<16x1xf32>
    %235 = math.rsqrt %234 : vector<16x1xf32>
    %236 = vector.broadcast %235 : vector<16x1xf32> to vector<16x32xf32>
    %237 = arith.mulf %232, %236 : vector<16x32xf32>
    %238 = vector.broadcast %114 : vector<1x32xf32> to vector<16x32xf32>
    %239 = arith.mulf %237, %238 : vector<16x32xf32>
    %240 = vector.broadcast %115 : vector<1x32xf32> to vector<16x32xf32>
    %241 = arith.addf %239, %240 : vector<16x32xf32>
    %c1 = arith.constant 1 : index
    %c0_66 = arith.constant 0 : index
    %c0_67 = arith.constant 0 : index
    %242 = vector.load %arg11[%c1, %c0_66, %c0_67] : memref<3x16x32xf32, #tpu.memory_space<vmem>>, vector<1x16x32xf32>
    %243 = vector.shape_cast %242 : vector<1x16x32xf32> to vector<16x32xf32>
    %244 = vector.shape_cast %241 : vector<16x32xf32> to vector<1x16x32xf32>
    tpu.vector_store %arg11[%c1, %c0_66, %c0_67], %244 {strides = array<i32>} : memref<3x16x32xf32, #tpu.memory_space<vmem>>, vector<1x16x32xf32>,
    %c1_68 = arith.constant 1 : index
    %c0_69 = arith.constant 0 : index
    %c0_70 = arith.constant 0 : index
    %245 = vector.load %arg4[%c1_68, %c0_69, %c0_70] : memref<2x32x96xf32, #tpu.memory_space<vmem>>, vector<1x32x96xf32>
    %246 = vector.shape_cast %245 : vector<1x32x96xf32> to vector<32x96xf32>
    %c1_71 = arith.constant 1 : index
    %c0_72 = arith.constant 0 : index
    %c0_73 = arith.constant 0 : index
    %247 = vector.load %arg5[%c1_71, %c0_72, %c0_73] : memref<2x1x96xf32, #tpu.memory_space<vmem>>, vector<1x1x96xf32>
    %248 = vector.shape_cast %247 : vector<1x1x96xf32> to vector<1x96xf32>
    %c1_74 = arith.constant 1 : index
    %c0_75 = arith.constant 0 : index
    %c0_76 = arith.constant 0 : index
    %249 = vector.load %arg6[%c1_74, %c0_75, %c0_76] : memref<2x32x32xf32, #tpu.memory_space<vmem>>, vector<1x32x32xf32>
    %250 = vector.shape_cast %249 : vector<1x32x32xf32> to vector<32x32xf32>
    %c1_77 = arith.constant 1 : index
    %c0_78 = arith.constant 0 : index
    %c0_79 = arith.constant 0 : index
    %251 = vector.load %arg7[%c1_77, %c0_78, %c0_79] : memref<2x6x32xf32, #tpu.memory_space<vmem>>, vector<1x6x32xf32>
    %252 = vector.shape_cast %251 : vector<1x6x32xf32> to vector<6x32xf32>
    %253 = vector.extract_strided_slice %252 {offsets = [0, 0], sizes = [1, 32], strides = [1, 1]} : vector<6x32xf32> to vector<1x32xf32>
    %254 = vector.extract_strided_slice %252 {offsets = [1, 0], sizes = [1, 32], strides = [1, 1]} : vector<6x32xf32> to vector<1x32xf32>
    %255 = vector.extract_strided_slice %252 {offsets = [2, 0], sizes = [1, 32], strides = [1, 1]} : vector<6x32xf32> to vector<1x32xf32>
    %256 = vector.extract_strided_slice %252 {offsets = [3, 0], sizes = [1, 32], strides = [1, 1]} : vector<6x32xf32> to vector<1x32xf32>
    %257 = vector.extract_strided_slice %252 {offsets = [4, 0], sizes = [1, 32], strides = [1, 1]} : vector<6x32xf32> to vector<1x32xf32>
    %258 = vector.extract_strided_slice %252 {offsets = [5, 0], sizes = [1, 32], strides = [1, 1]} : vector<6x32xf32> to vector<1x32xf32>
    %c1_80 = arith.constant 1 : index
    %c0_81 = arith.constant 0 : index
    %c0_82 = arith.constant 0 : index
    %259 = vector.load %arg8[%c1_80, %c0_81, %c0_82] : memref<2x32x128xf32, #tpu.memory_space<vmem>>, vector<1x32x128xf32>
    %260 = vector.shape_cast %259 : vector<1x32x128xf32> to vector<32x128xf32>
    %c1_83 = arith.constant 1 : index
    %c0_84 = arith.constant 0 : index
    %c0_85 = arith.constant 0 : index
    %261 = vector.load %arg9[%c1_83, %c0_84, %c0_85] : memref<2x1x128xf32, #tpu.memory_space<vmem>>, vector<1x1x128xf32>
    %262 = vector.shape_cast %261 : vector<1x1x128xf32> to vector<1x128xf32>
    %c1_86 = arith.constant 1 : index
    %c0_87 = arith.constant 0 : index
    %c0_88 = arith.constant 0 : index
    %263 = vector.load %arg10[%c1_86, %c0_87, %c0_88] : memref<2x128x32xf32, #tpu.memory_space<vmem>>, vector<1x128x32xf32>
    %264 = vector.shape_cast %263 : vector<1x128x32xf32> to vector<128x32xf32>
    %cst_89 = arith.constant dense<0.000000e+00> : vector<16x96xf32>
    %265 = tpu.matmul %241, %246, %cst_89 {dimension_numbers = #tpu.dot_dimension_numbers<[1], [0], [0], [1], [0, 0, 1, 1], [], []>} : vector<16x32xf32>, vector<32x96xf32>, vector<16x96xf32> -> vector<16x96xf32>
    %266 = vector.broadcast %248 : vector<1x96xf32> to vector<16x96xf32>
    %267 = arith.addf %265, %266 : vector<16x96xf32>
    %268 = vector.extract_strided_slice %267 {offsets = [0, 0], sizes = [16, 8], strides = [1, 1]} : vector<16x96xf32> to vector<16x8xf32>
    %269 = vector.shape_cast %268 : vector<16x8xf32> to vector<2x8x8xf32>
    %270 = vector.extract_strided_slice %267 {offsets = [0, 8], sizes = [16, 8], strides = [1, 1]} : vector<16x96xf32> to vector<16x8xf32>
    %271 = vector.shape_cast %270 : vector<16x8xf32> to vector<2x8x8xf32>
    %272 = vector.extract_strided_slice %267 {offsets = [0, 16], sizes = [16, 8], strides = [1, 1]} : vector<16x96xf32> to vector<16x8xf32>
    %273 = vector.shape_cast %272 : vector<16x8xf32> to vector<2x8x8xf32>
    %274 = vector.extract_strided_slice %267 {offsets = [0, 24], sizes = [16, 8], strides = [1, 1]} : vector<16x96xf32> to vector<16x8xf32>
    %275 = vector.shape_cast %274 : vector<16x8xf32> to vector<2x8x8xf32>
    %276 = tpu.concatenate %269, %271, %273, %275 in 0 : vector<2x8x8xf32>, vector<2x8x8xf32>, vector<2x8x8xf32>, vector<2x8x8xf32> -> vector<8x8x8xf32>
    %277 = vector.extract_strided_slice %267 {offsets = [0, 32], sizes = [16, 8], strides = [1, 1]} : vector<16x96xf32> to vector<16x8xf32>
    %278 = vector.shape_cast %277 : vector<16x8xf32> to vector<2x8x8xf32>
    %279 = vector.extract_strided_slice %267 {offsets = [0, 40], sizes = [16, 8], strides = [1, 1]} : vector<16x96xf32> to vector<16x8xf32>
    %280 = vector.shape_cast %279 : vector<16x8xf32> to vector<2x8x8xf32>
    %281 = vector.extract_strided_slice %267 {offsets = [0, 48], sizes = [16, 8], strides = [1, 1]} : vector<16x96xf32> to vector<16x8xf32>
    %282 = vector.shape_cast %281 : vector<16x8xf32> to vector<2x8x8xf32>
    %283 = vector.extract_strided_slice %267 {offsets = [0, 56], sizes = [16, 8], strides = [1, 1]} : vector<16x96xf32> to vector<16x8xf32>
    %284 = vector.shape_cast %283 : vector<16x8xf32> to vector<2x8x8xf32>
    %285 = tpu.concatenate %278, %280, %282, %284 in 0 : vector<2x8x8xf32>, vector<2x8x8xf32>, vector<2x8x8xf32>, vector<2x8x8xf32> -> vector<8x8x8xf32>
    %286 = vector.extract_strided_slice %267 {offsets = [0, 64], sizes = [16, 8], strides = [1, 1]} : vector<16x96xf32> to vector<16x8xf32>
    %287 = vector.shape_cast %286 : vector<16x8xf32> to vector<2x8x8xf32>
    %288 = vector.extract_strided_slice %267 {offsets = [0, 72], sizes = [16, 8], strides = [1, 1]} : vector<16x96xf32> to vector<16x8xf32>
    %289 = vector.shape_cast %288 : vector<16x8xf32> to vector<2x8x8xf32>
    %290 = vector.extract_strided_slice %267 {offsets = [0, 80], sizes = [16, 8], strides = [1, 1]} : vector<16x96xf32> to vector<16x8xf32>
    %291 = vector.shape_cast %290 : vector<16x8xf32> to vector<2x8x8xf32>
    %292 = vector.extract_strided_slice %267 {offsets = [0, 88], sizes = [16, 8], strides = [1, 1]} : vector<16x96xf32> to vector<16x8xf32>
    %293 = vector.shape_cast %292 : vector<16x8xf32> to vector<2x8x8xf32>
    %294 = tpu.concatenate %287, %289, %291, %293 in 0 : vector<2x8x8xf32>, vector<2x8x8xf32>, vector<2x8x8xf32>, vector<2x8x8xf32> -> vector<8x8x8xf32>
    "tpu.trace_start"() <{level = 10 : i32, message = "xqd,xkd->xqk"}> : () -> ()
    %cst_90 = arith.constant dense<0.000000e+00> : vector<8x8x8xf32>
    %295 = tpu.matmul %276, %285, %cst_90 {dimension_numbers = #tpu.dot_dimension_numbers<[2], [2], [1], [1], [0, 0, 0, 1, 1, 1], [0], [0]>} : vector<8x8x8xf32>, vector<8x8x8xf32>, vector<8x8x8xf32> -> vector<8x8x8xf32>
    "tpu.trace_stop"() : () -> ()
    %cst_91 = arith.constant 0.353553385 : f32
    %296 = vector.broadcast %cst_91 : f32 to vector<8x8x8xf32>
    %297 = arith.mulf %295, %296 : vector<8x8x8xf32>
    %cst_92 = arith.constant dense<0xFF800000> : vector<8x8xf32>
    %298 = vector.multi_reduction <maximumf>, %297, %cst_92 [2] : vector<8x8x8xf32> to vector<8x8xf32>
    %299 = vector.shape_cast %298 : vector<8x8xf32> to vector<8x8x1xf32>
    %300 = vector.broadcast %299 : vector<8x8x1xf32> to vector<8x8x8xf32>
    %301 = arith.subf %297, %300 : vector<8x8x8xf32>
    %302 = math.exp %301 : vector<8x8x8xf32>
    %cst_93 = arith.constant dense<0.000000e+00> : vector<8x8xf32>
    %303 = vector.multi_reduction <add>, %302, %cst_93 [2] : vector<8x8x8xf32> to vector<8x8xf32>
    %304 = vector.shape_cast %303 : vector<8x8xf32> to vector<8x8x1xf32>
    %305 = vector.broadcast %304 : vector<8x8x1xf32> to vector<8x8x8xf32>
    %306 = arith.divf %302, %305 : vector<8x8x8xf32>
    "tpu.trace_start"() <{level = 10 : i32, message = "xqk,xkd->xqd"}> : () -> ()
    %cst_94 = arith.constant dense<0.000000e+00> : vector<8x8x8xf32>
    %307 = tpu.matmul %306, %294, %cst_94 {dimension_numbers = #tpu.dot_dimension_numbers<[2], [1], [1], [2], [0, 0, 0, 1, 1, 2], [0], [0]>} : vector<8x8x8xf32>, vector<8x8x8xf32>, vector<8x8x8xf32> -> vector<8x8x8xf32>
    "tpu.trace_stop"() : () -> ()
    %308 = vector.extract_strided_slice %307 {offsets = [0, 0, 0], sizes = [2, 8, 8], strides = [1, 1, 1]} : vector<8x8x8xf32> to vector<2x8x8xf32>
    %309 = vector.shape_cast %308 : vector<2x8x8xf32> to vector<16x8xf32>
    %310 = vector.extract_strided_slice %307 {offsets = [2, 0, 0], sizes = [2, 8, 8], strides = [1, 1, 1]} : vector<8x8x8xf32> to vector<2x8x8xf32>
    %311 = vector.shape_cast %310 : vector<2x8x8xf32> to vector<16x8xf32>
    %312 = vector.extract_strided_slice %307 {offsets = [4, 0, 0], sizes = [2, 8, 8], strides = [1, 1, 1]} : vector<8x8x8xf32> to vector<2x8x8xf32>
    %313 = vector.shape_cast %312 : vector<2x8x8xf32> to vector<16x8xf32>
    %314 = vector.extract_strided_slice %307 {offsets = [6, 0, 0], sizes = [2, 8, 8], strides = [1, 1, 1]} : vector<8x8x8xf32> to vector<2x8x8xf32>
    %315 = vector.shape_cast %314 : vector<2x8x8xf32> to vector<16x8xf32>
    %316 = tpu.concatenate %309, %311, %313, %315 in 1 : vector<16x8xf32>, vector<16x8xf32>, vector<16x8xf32>, vector<16x8xf32> -> vector<16x32xf32>
    %cst_95 = arith.constant dense<0.000000e+00> : vector<16x32xf32>
    %317 = tpu.matmul %316, %250, %cst_95 {dimension_numbers = #tpu.dot_dimension_numbers<[1], [0], [0], [1], [0, 0, 1, 1], [], []>} : vector<16x32xf32>, vector<32x32xf32>, vector<16x32xf32> -> vector<16x32xf32>
    %318 = vector.broadcast %253 : vector<1x32xf32> to vector<16x32xf32>
    %319 = arith.addf %317, %318 : vector<16x32xf32>
    %320 = arith.addf %319, %241 : vector<16x32xf32>
    %cst_96 = arith.constant dense<0.000000e+00> : vector<16xf32>
    %321 = vector.multi_reduction <add>, %320, %cst_96 [1] : vector<16x32xf32> to vector<16xf32>
    %322 = vector.shape_cast %321 : vector<16xf32> to vector<16x1xf32>
    %cst_97 = arith.constant 3.200000e+01 : f32
    %323 = vector.broadcast %cst_97 : f32 to vector<16x1xf32>
    %324 = arith.divf %322, %323 : vector<16x1xf32>
    %325 = vector.broadcast %324 : vector<16x1xf32> to vector<16x32xf32>
    %326 = arith.subf %320, %325 : vector<16x32xf32>
    %327 = arith.mulf %326, %326 : vector<16x32xf32>
    %cst_98 = arith.constant dense<0.000000e+00> : vector<16xf32>
    %328 = vector.multi_reduction <add>, %327, %cst_98 [1] : vector<16x32xf32> to vector<16xf32>
    %329 = vector.shape_cast %328 : vector<16xf32> to vector<16x1xf32>
    %cst_99 = arith.constant 3.200000e+01 : f32
    %330 = vector.broadcast %cst_99 : f32 to vector<16x1xf32>
    %331 = arith.divf %329, %330 : vector<16x1xf32>
    %332 = vector.broadcast %324 : vector<16x1xf32> to vector<16x32xf32>
    %333 = arith.subf %320, %332 : vector<16x32xf32>
    %cst_100 = arith.constant 9.99999996E-13 : f32
    %334 = vector.broadcast %cst_100 : f32 to vector<16x1xf32>
    %335 = arith.addf %331, %334 : vector<16x1xf32>
    %336 = math.rsqrt %335 : vector<16x1xf32>
    %337 = vector.broadcast %336 : vector<16x1xf32> to vector<16x32xf32>
    %338 = arith.mulf %333, %337 : vector<16x32xf32>
    %339 = vector.broadcast %254 : vector<1x32xf32> to vector<16x32xf32>
    %340 = arith.mulf %338, %339 : vector<16x32xf32>
    %341 = vector.broadcast %255 : vector<1x32xf32> to vector<16x32xf32>
    %342 = arith.addf %340, %341 : vector<16x32xf32>
    %cst_101 = arith.constant dense<0.000000e+00> : vector<16x128xf32>
    %343 = tpu.matmul %342, %260, %cst_101 {dimension_numbers = #tpu.dot_dimension_numbers<[1], [0], [0], [1], [0, 0, 1, 1], [], []>} : vector<16x32xf32>, vector<32x128xf32>, vector<16x128xf32> -> vector<16x128xf32>
    %344 = vector.broadcast %262 : vector<1x128xf32> to vector<16x128xf32>
    %345 = arith.addf %343, %344 : vector<16x128xf32>
    %cst_102 = arith.constant 5.000000e-01 : f32
    %346 = vector.broadcast %cst_102 : f32 to vector<16x128xf32>
    %347 = arith.mulf %346, %345 : vector<16x128xf32>
    %cst_103 = arith.constant 4.471500e-02 : f32
    %348 = vector.broadcast %cst_103 : f32 to vector<16x128xf32>
    %349 = arith.mulf %348, %345 : vector<16x128xf32>
    %350 = arith.mulf %349, %345 : vector<16x128xf32>
    %351 = arith.mulf %350, %345 : vector<16x128xf32>
    %352 = arith.addf %345, %351 : vector<16x128xf32>
    %cst_104 = arith.constant 0.797884583 : f32
    %353 = vector.broadcast %cst_104 : f32 to vector<16x128xf32>
    %354 = arith.mulf %353, %352 : vector<16x128xf32>
    %355 = math.tanh %354 : vector<16x128xf32>
    %cst_105 = arith.constant 1.000000e+00 : f32
    %356 = vector.broadcast %cst_105 : f32 to vector<16x128xf32>
    %357 = arith.addf %356, %355 : vector<16x128xf32>
    %358 = arith.mulf %347, %357 : vector<16x128xf32>
    %cst_106 = arith.constant dense<0.000000e+00> : vector<16x32xf32>
    %359 = tpu.matmul %358, %264, %cst_106 {dimension_numbers = #tpu.dot_dimension_numbers<[1], [0], [0], [1], [0, 0, 1, 1], [], []>} : vector<16x128xf32>, vector<128x32xf32>, vector<16x32xf32> -> vector<16x32xf32>
    %360 = vector.broadcast %256 : vector<1x32xf32> to vector<16x32xf32>
    %361 = arith.addf %359, %360 : vector<16x32xf32>
    %362 = arith.addf %361, %342 : vector<16x32xf32>
    %cst_107 = arith.constant dense<0.000000e+00> : vector<16xf32>
    %363 = vector.multi_reduction <add>, %362, %cst_107 [1] : vector<16x32xf32> to vector<16xf32>
    %364 = vector.shape_cast %363 : vector<16xf32> to vector<16x1xf32>
    %cst_108 = arith.constant 3.200000e+01 : f32
    %365 = vector.broadcast %cst_108 : f32 to vector<16x1xf32>
    %366 = arith.divf %364, %365 : vector<16x1xf32>
    %367 = vector.broadcast %366 : vector<16x1xf32> to vector<16x32xf32>
    %368 = arith.subf %362, %367 : vector<16x32xf32>
    %369 = arith.mulf %368, %368 : vector<16x32xf32>
    %cst_109 = arith.constant dense<0.000000e+00> : vector<16xf32>
    %370 = vector.multi_reduction <add>, %369, %cst_109 [1] : vector<16x32xf32> to vector<16xf32>
    %371 = vector.shape_cast %370 : vector<16xf32> to vector<16x1xf32>
    %cst_110 = arith.constant 3.200000e+01 : f32
    %372 = vector.broadcast %cst_110 : f32 to vector<16x1xf32>
    %373 = arith.divf %371, %372 : vector<16x1xf32>
    %374 = vector.broadcast %366 : vector<16x1xf32> to vector<16x32xf32>
    %375 = arith.subf %362, %374 : vector<16x32xf32>
    %cst_111 = arith.constant 9.99999996E-13 : f32
    %376 = vector.broadcast %cst_111 : f32 to vector<16x1xf32>
    %377 = arith.addf %373, %376 : vector<16x1xf32>
    %378 = math.rsqrt %377 : vector<16x1xf32>
    %379 = vector.broadcast %378 : vector<16x1xf32> to vector<16x32xf32>
    %380 = arith.mulf %375, %379 : vector<16x32xf32>
    %381 = vector.broadcast %257 : vector<1x32xf32> to vector<16x32xf32>
    %382 = arith.mulf %380, %381 : vector<16x32xf32>
    %383 = vector.broadcast %258 : vector<1x32xf32> to vector<16x32xf32>
    %384 = arith.addf %382, %383 : vector<16x32xf32>
    %c2 = arith.constant 2 : index
    %c0_112 = arith.constant 0 : index
    %c0_113 = arith.constant 0 : index
    %385 = vector.load %arg11[%c2, %c0_112, %c0_113] : memref<3x16x32xf32, #tpu.memory_space<vmem>>, vector<1x16x32xf32>
    %386 = vector.shape_cast %385 : vector<1x16x32xf32> to vector<16x32xf32>
    %387 = vector.shape_cast %384 : vector<16x32xf32> to vector<1x16x32xf32>
    tpu.vector_store %arg11[%c2, %c0_112, %c0_113], %387 {strides = array<i32>} : memref<3x16x32xf32, #tpu.memory_space<vmem>>, vector<1x16x32xf32>,
    return
  }
}

</mosaic_0001>

<bundles_post_ra>
// kernel: _encoder_forward.1
= control target key start
LH: loop header
LB: loop body
LE: loop exit
PB: predicated region body
PF: predicated region fallthrough
CT: control target
= control target key end

     0   :  { %v3915_v2 = vmov 0   ;;  %s6311_s0 = inlined_call_operand.vmem [shape: s32[16,1], index: 0, kind: input, shape index: {}]   ;;  %s6312_s1 = inlined_call_operand.vmem [shape: f32[8,32], index: 1, kind: input, shape index: {}]   ;;  %s6313_s2 = inlined_call_operand.vmem [shape: f32[4096,32], index: 2, kind: input, shape index: {}]   ;;  %s6314_s3 = inlined_call_operand.vmem [shape: f32[2,32], index: 3, kind: input, shape index: {}]   ;;  %s6315_s4 = inlined_call_operand.vmem [shape: f32[2,32,96], index: 4, kind: input, shape index: {}]   ;;  %s6316_s5 = inlined_call_operand.vmem [shape: f32[2,1,96], index: 5, kind: input, shape index: {}]   ;;  %s6317_s6 = inlined_call_operand.vmem [shape: f32[2,32,32], index: 6, kind: input, shape index: {}]   ;;  %s6318_s7 = inlined_call_operand.vmem [shape: f32[2,6,32], index: 7, kind: input, shape index: {}]   ;;  %s6319_s8 = inlined_call_operand.vmem [shape: f32[2,32,128], index: 8, kind: input, shape index: {}]   ;;  %s6320_s9 = inlined_call_operand.vmem [shape: f32[2,1,128], index: 9, kind: input, shape index: {}]   ;;  %s6321_s10 = inlined_call_operand.vmem [shape: f32[2,128,32], index: 10, kind: input, shape index: {}]   ;;  %s6322_s11 = inlined_call_operand.hbm [shape: f32[3,16,32], index: 11, kind: output, shape index: {}]  }
   0x1   :  { %v39_v0 = vld [vmem:[%s6311_s0] sm:$0xff]  ;;  %v40_v1 = vld [vmem:[%s6311_s0 + $0x8] sm:$0xff]  ;;  %3759 = vset.pattern.permute.xlu1 %v3915_v2  ;;  %3758 = vset.pattern.permute.xlu0 %v3915_v2 }
   0x2   :  { %v3994_v3 = vadd.s32 1, %v39_v0  ;;  %3760 = vset.pattern.permute.xlu2 %v3915_v2 }
   0x3   :  { %16 = vsyncpa [#allocation3], 0  ;;  %v3998_v6 = vadd.s32 1, %v40_v1  ;;  %v335_v15 = vld [vmem:[%s6313_s2 + $0x78] sm:$0xff]  ;;  %v334_v20 = vld [vmem:[%s6313_s2 + $0x70] sm:$0xff]  ;;  %s3918_s16 = smov 112  }
   0x4   :  { %v82_v4 = vmul.u32 43, %v3994_v3  ;;  %v48_v5 = vmul.u32 31, %v3994_v3  ;;  %v150_v14 = vmul.u32 61, %v3994_v3  ;;  %v351_v16 = vld [vmem:[%s6313_s2 + $0xf8] sm:$0xff]  ;;  %v116_v18 = vmul.u32 59, %v3994_v3  ;;  %833 = vmatpush.msra.mxu0 %v335_v15  ;;  %v350_v21 = vld [vmem:[%s6313_s2 + $0xf0] sm:$0xff] }
   0x5   :  { %v83_v9 = vmul.u32 43, %v3998_v6  ;;  %v49_v10 = vmul.u32 31, %v3998_v6  ;;  %v151_v13 = vmul.u32 61, %v3998_v6  ;;  %v367_v17 = vld [vmem:[%s6313_s2 + $0x178] sm:$0xff]  ;;  %856 = vmatpush.msra.mxu1 %v351_v16  ;;  %v366_v23 = vld [vmem:[%s6313_s2 + $0x170] sm:$0xff]  ;;  %v333_v25 = vld [vmem:[%s6313_s2 + $0x68] sm:$0xff] }
   0x6   :  { %v84_v7 = vand.u32 511, %v82_v4  ;;  %v50_v8 = vand.u32 511, %v48_v5  ;;  %v383_v19 = vld [vmem:[%s6313_s2 + $0x1f8] sm:$0xff]  ;;  %879 = vmatpush.msra.mxu2 %v367_v17  ;;  %v118_v22 = vand.u32 511, %v116_v18  ;;  %v382_v24 = vld [vmem:[%s6313_s2 + $0x1f0] sm:$0xff]  ;;  %834 = vmatpush.msra.mxu0 %v334_v20  ;;  %v349_v26 = vld [vmem:[%s6313_s2 + $0xe8] sm:$0xff] }
   0x7   :  { %v85_v11 = vand.u32 511, %v83_v9  ;;  %v51_v12 = vand.u32 511, %v49_v10  ;;  %902 = vmatpush.msra.mxu3 %v383_v19  ;;  %857 = vmatpush.msra.mxu1 %v350_v21  ;;  %v365_v27 = vld [vmem:[%s6313_s2 + $0x168] sm:$0xff]  ;;  %v153_v28 = vand.u32 511, %v151_v13  ;;  %v152_v29 = vand.u32 511, %v150_v14  ;;  %v332_v31 = vld [vmem:[%s6313_s2 + $0x60] sm:$0xff] }
   0x8   :  { %87 = vperm.xlu1 %3759, %v84_v7   ;;  %53 = vperm.xlu0 %3758, %v50_v8   ;;  %v381_v30 = vld [vmem:[%s6313_s2 + $0x1e8] sm:$0xff]  ;;  %v117_v32 = vmul.u32 59, %v3998_v6  ;;  %v348_v33 = vld [vmem:[%s6313_s2 + $0xe0] sm:$0xff]  ;;  %v331_v36 = vld [vmem:[%s6313_s2 + $0x58] sm:$0xff]  ;;  %v218_v37 = vmul.u32 97, %v3994_v3  ;;  %v185_v38 = vmul.u32 73, %v3998_v6 }
   0x9   :  { %121 = vperm.xlu2 %3760, %v118_v22   ;;  %880 = vmatpush.msra.mxu2 %v366_v23  ;;  %v364_v34 = vld [vmem:[%s6313_s2 + $0x160] sm:$0xff]  ;;  %v347_v39 = vld [vmem:[%s6313_s2 + $0xd8] sm:$0xff]  ;;  %v330_v43 = vld [vmem:[%s6313_s2 + $0x50] sm:$0xff]  ;;  %v184_v53 = vmul.u32 73, %v3994_v3  ;;  %v253_v56 = vmul.u32 103, %v3998_v6  ;;  %v252_v57 = vmul.u32 103, %v3994_v3 }
   0xa   :  { %903 = vmatpush.msra.mxu3 %v382_v24  ;;  %835 = vmatpush.msra.mxu0 %v333_v25  ;;  %v380_v35 = vld [vmem:[%s6313_s2 + $0x1e0] sm:$0xff]  ;;  %v363_v40 = vld [vmem:[%s6313_s2 + $0x158] sm:$0xff]  ;;  %v119_v41 = vand.u32 511, %v117_v32  ;;  %v346_v44 = vld [vmem:[%s6313_s2 + $0xd0] sm:$0xff]  ;;  %v220_v47 = vand.u32 511, %v218_v37  ;;  %v187_v48 = vand.u32 511, %v185_v38 }
   0xb   :  { %858 = vmatpush.msra.mxu1 %v349_v26  ;;  %881 = vmatpush.msra.mxu2 %v365_v27  ;;  %v379_v42 = vld [vmem:[%s6313_s2 + $0x1d8] sm:$0xff]  ;;  %v362_v45 = vld [vmem:[%s6313_s2 + $0x150] sm:$0xff]  ;;  %v329_v49 = vld [vmem:[%s6313_s2 + $0x48] sm:$0xff]  ;;  %v186_v0 = vand.u32 511, %v184_v53  ;;  %v255_v2 = vand.u32 511, %v253_v56  ;;  %v254_v4 = vand.u32 511, %v252_v57 }
   0xc   :  { %904 = vmatpush.msra.mxu3 %v381_v30  ;;  %836 = vmatpush.msra.mxu0 %v332_v31  ;;  %v378_v46 = vld [vmem:[%s6313_s2 + $0x1d0] sm:$0xff]  ;;  %v345_v50 = vld [vmem:[%s6313_s2 + $0xc8] sm:$0xff]  ;;  %v328_v54 = vld [vmem:[%s6313_s2 + $0x40] sm:$0xff]  ;;  %v287_v13 = vmul.u32 113, %v3998_v6  ;;  %v286_v31 = vmul.u32 113, %v3994_v3  ;;  %s3919_s17 = smov 120  }
   0xd   :  { %859 = vmatpush.msra.mxu1 %v348_v33  ;;  %882 = vmatpush.msra.mxu2 %v364_v34  ;;  %v361_v51 = vld [vmem:[%s6313_s2 + $0x148] sm:$0xff]  ;;  %v344_v55 = vld [vmem:[%s6313_s2 + $0xc0] sm:$0xff]  ;;  %v327_v60 = vld [vmem:[%s6313_s2 + $0x38] sm:$0xff]  ;;  %s3920_s18 = smov 104   ;;  %s3921_s19 = smov 96  }
   0xe   :  { %905 = vmatpush.msra.mxu3 %v380_v35  ;;  %837 = vmatpush.msra.mxu0 %v331_v36  ;;  %v377_v52 = vld [vmem:[%s6313_s2 + $0x1c8] sm:$0xff]  ;;  %v360_v58 = vld [vmem:[%s6313_s2 + $0x140] sm:$0xff]  ;;  %v343_v61 = vld [vmem:[%s6313_s2 + $0xb8] sm:$0xff]  ;;  %v289_v22 = vand.u32 511, %v287_v13  ;;  %s3922_s20 = smov 64   ;;  %s3923_s0 = smov 8  }
   0xf   :  { %860 = vmatpush.msra.mxu1 %v347_v39  ;;  %883 = vmatpush.msra.mxu2 %v363_v40  ;;  %v376_v59 = vld [vmem:[%s6313_s2 + $0x1c0] sm:$0xff]  ;;  %v359_v62 = vld [vmem:[%s6313_s2 + $0x138] sm:$0xff]  ;;  %v326_v1 = vld [vmem:[%s6313_s2 + $0x30] sm:$0xff]  ;;  %v288_v39 = vand.u32 511, %v286_v31  ;;  %s3924_s21 = smov 16   ;;  %s3925_s22 = smov 24  }
  0x10   :  { %90 = vperm.xlu1 %3759, %v85_v11   ;;  %56 = vperm.xlu0 %3758, %v51_v12   ;;  %v375_v63 = vld [vmem:[%s6313_s2 + $0x1b8] sm:$0xff]  ;;  %v342_v5 = vld [vmem:[%s6313_s2 + $0xb0] sm:$0xff]  ;;  %v325_v9 = vld [vmem:[%s6313_s2 + $0x28] sm:$0xff]  ;;  %v219_v12 = vmul.u32 97, %v3998_v6 }
  0x11   :  { %906 = vmatpush.msra.mxu3 %v379_v42  ;;  %124 = vperm.xlu2 %3760, %v119_v41   ;;  %v358_v7 = vld [vmem:[%s6313_s2 + $0x130] sm:$0xff]  ;;  %v341_v10 = vld [vmem:[%s6313_s2 + $0xa8] sm:$0xff]  ;;  %v324_v15 = vld [vmem:[%s6313_s2 + $0x20] sm:$0xff] }
  0x12   :  { %838 = vmatpush.msra.mxu0 %v330_v43  ;;  %861 = vmatpush.msra.mxu1 %v346_v44  ;;  %v374_v8 = vld [vmem:[%s6313_s2 + $0x1b0] sm:$0xff]  ;;  %v357_v11 = vld [vmem:[%s6313_s2 + $0x128] sm:$0xff]  ;;  %v340_v16 = vld [vmem:[%s6313_s2 + $0xa0] sm:$0xff]  ;;  %v221_v21 = vand.u32 511, %v219_v12 }
  0x13   :  { %884 = vmatpush.msra.mxu2 %v362_v45  ;;  %907 = vmatpush.msra.mxu3 %v378_v46  ;;  %v373_v14 = vld [vmem:[%s6313_s2 + $0x1a8] sm:$0xff]  ;;  %v356_v17 = vld [vmem:[%s6313_s2 + $0x120] sm:$0xff]  ;;  %v323_v18 = vld [vmem:[%s6313_s2 + $0x18] sm:$0xff] }
  0x14   :  { %839 = vmatpush.msra.mxu0 %v329_v49  ;;  %862 = vmatpush.msra.mxu1 %v345_v50  ;;  %v372_v6 = vld [vmem:[%s6313_s2 + $0x1a0] sm:$0xff]  ;;  %v339_v19 = vld [vmem:[%s6313_s2 + $0x98] sm:$0xff]  ;;  %v322_v24 = vld [vmem:[%s6313_s2 + $0x10] sm:$0xff] }
  0x15   :  { %885 = vmatpush.msra.mxu2 %v361_v51  ;;  %908 = vmatpush.msra.mxu3 %v377_v52  ;;  %v355_v20 = vld [vmem:[%s6313_s2 + $0x118] sm:$0xff]  ;;  %v338_v25 = vld [vmem:[%s6313_s2 + $0x90] sm:$0xff]  ;;  %v353_v30 = vld [vmem:[%s6313_s2 + $0x108] sm:$0xff] }
  0x16   :  { %840 = vmatpush.msra.mxu0 %v328_v54  ;;  %863 = vmatpush.msra.mxu1 %v344_v55  ;;  %v371_v23 = vld [vmem:[%s6313_s2 + $0x198] sm:$0xff]  ;;  %v354_v26 = vld [vmem:[%s6313_s2 + $0x110] sm:$0xff]  ;;  %v369_v32 = vld [vmem:[%s6313_s2 + $0x188] sm:$0xff] }
  0x17   :  { %886 = vmatpush.msra.mxu2 %v360_v58  ;;  %909 = vmatpush.msra.mxu3 %v376_v59  ;;  %v370_v27 = vld [vmem:[%s6313_s2 + $0x190] sm:$0xff]  ;;  %v320_v33 = vld [vmem:[%s6313_s2] sm:$0xff]  ;;  %v399_v36 = vld [vmem:[%s6313_s2 + $0x278] sm:$0xff] }
  0x18   :  { %158 = vperm.xlu1 %3759, %v153_v28   ;;  %155 = vperm.xlu0 %3758, %v152_v29   ;;  %v321_v28 = vld [vmem:[%s6313_s2 + $0x8] sm:$0xff]  ;;  %v336_v34 = vld [vmem:[%s6313_s2 + $0x80] sm:$0xff]  ;;  %v415_v37 = vld [vmem:[%s6313_s2 + $0x2f8] sm:$0xff] }
  0x19   :  { %841 = vmatpush.msra.mxu0 %v327_v60  ;;  %864 = vmatpush.msra.mxu1 %v343_v61  ;;  %v337_v29 = vld [vmem:[%s6313_s2 + $0x88] sm:$0xff]  ;;  %v352_v3 = vld [vmem:[%s6313_s2 + $0x100] sm:$0xff]  ;;  %v431_v38 = vld [vmem:[%s6313_s2 + $0x378] sm:$0xff] }
  0x1a   :  { %887 = vmatpush.msra.mxu2 %v359_v62  ;;  %910 = vmatpush.msra.mxu3 %v375_v63  ;;  %v368_v35 = vld [vmem:[%s6313_s2 + $0x180] sm:$0xff]  ;;  %v447_v40 = vld [vmem:[%s6313_s2 + $0x3f8] sm:$0xff]  ;;  %v398_v41 = vld [vmem:[%s6313_s2 + $0x270] sm:$0xff] }
  0x1b   :  { %189 = vperm.xlu2 %3760, %v186_v0   ;;  %842 = vmatpush.msra.mxu0 %v326_v1  ;;  %v414_v42 = vld [vmem:[%s6313_s2 + $0x2f0] sm:$0xff]  ;;  %v397_v45 = vld [vmem:[%s6313_s2 + $0x268] sm:$0xff]  ;;  %v396_v49 = vld [vmem:[%s6313_s2 + $0x260] sm:$0xff] }
  0x1c   :  { %865 = vmatpush.msra.mxu1 %v342_v5  ;;  %888 = vmatpush.msra.mxu2 %v358_v7  ;;  %v430_v43 = vld [vmem:[%s6313_s2 + $0x370] sm:$0xff]  ;;  %v413_v46 = vld [vmem:[%s6313_s2 + $0x2e8] sm:$0xff]  ;;  %v412_v50 = vld [vmem:[%s6313_s2 + $0x2e0] sm:$0xff] }
  0x1d   :  { %911 = vmatpush.msra.mxu3 %v374_v8  ;;  %843 = vmatpush.msra.mxu0 %v325_v9  ;;  %v446_v44 = vld [vmem:[%s6313_s2 + $0x3f0] sm:$0xff]  ;;  %v428_v51 = vld [vmem:[%s6313_s2 + $0x360] sm:$0xff]  ;;  %v395_v53 = vld [vmem:[%s6313_s2 + $0x258] sm:$0xff] }
  0x1e   :  { %866 = vmatpush.msra.mxu1 %v341_v10  ;;  %889 = vmatpush.msra.mxu2 %v357_v11  ;;  %v444_v52 = vld [vmem:[%s6313_s2 + $0x3e0] sm:$0xff]  ;;  %v411_v54 = vld [vmem:[%s6313_s2 + $0x2d8] sm:$0xff]  ;;  %v394_v57 = vld [vmem:[%s6313_s2 + $0x250] sm:$0xff] }
  0x1f   :  { %912 = vmatpush.msra.mxu3 %v373_v14  ;;  %844 = vmatpush.msra.mxu0 %v324_v15  ;;  %v427_v55 = vld [vmem:[%s6313_s2 + $0x358] sm:$0xff]  ;;  %v410_v58 = vld [vmem:[%s6313_s2 + $0x2d0] sm:$0xff]  ;;  %v393_v61 = vld [vmem:[%s6313_s2 + $0x248] sm:$0xff] }
  0x20   :  { %223 = vperm.xlu1 %3759, %v220_v47   ;;  %192 = vperm.xlu0 %3758, %v187_v48   ;;  %v429_v47 = vld [vmem:[%s6313_s2 + $0x368] sm:$0xff]  ;;  %v443_v56 = vld [vmem:[%s6313_s2 + $0x3d8] sm:$0xff]  ;;  %v426_v59 = vld [vmem:[%s6313_s2 + $0x350] sm:$0xff] }
  0x21   :  { %867 = vmatpush.msra.mxu1 %v340_v16  ;;  %890 = vmatpush.msra.mxu2 %v356_v17  ;;  %v445_v48 = vld [vmem:[%s6313_s2 + $0x3e8] sm:$0xff]  ;;  %v442_v60 = vld [vmem:[%s6313_s2 + $0x3d0] sm:$0xff]  ;;  %v392_v1 = vld [vmem:[%s6313_s2 + $0x240] sm:$0xff] }
  0x22   :  { %913 = vmatpush.msra.mxu3 %v372_v6  ;;  %845 = vmatpush.msra.mxu0 %v323_v18  ;;  %v409_v62 = vld [vmem:[%s6313_s2 + $0x2c8] sm:$0xff]  ;;  %v440_v5 = vld [vmem:[%s6313_s2 + $0x3c0] sm:$0xff]  ;;  %v391_v7 = vld [vmem:[%s6313_s2 + $0x238] sm:$0xff] }
  0x23   :  { %868 = vmatpush.msra.mxu1 %v339_v19  ;;  %891 = vmatpush.msra.mxu2 %v355_v20  ;;  %v425_v63 = vld [vmem:[%s6313_s2 + $0x348] sm:$0xff]  ;;  %v407_v8 = vld [vmem:[%s6313_s2 + $0x2b8] sm:$0xff]  ;;  %v390_v11 = vld [vmem:[%s6313_s2 + $0x230] sm:$0xff] }
  0x24   :  { %914 = vmatpush.msra.mxu3 %v371_v23  ;;  %226 = vperm.xlu2 %3760, %v221_v21   ;;  %v441_v0 = vld [vmem:[%s6313_s2 + $0x3c8] sm:$0xff]  ;;  %v423_v9 = vld [vmem:[%s6313_s2 + $0x338] sm:$0xff]  ;;  %v406_v12 = vld [vmem:[%s6313_s2 + $0x2b0] sm:$0xff] }
  0x25   :  { %846 = vmatpush.msra.mxu0 %v322_v24  ;;  %869 = vmatpush.msra.mxu1 %v338_v25  ;;  %v439_v10 = vld [vmem:[%s6313_s2 + $0x3b8] sm:$0xff]  ;;  %v422_v13 = vld [vmem:[%s6313_s2 + $0x330] sm:$0xff]  ;;  %v389_v15 = vld [vmem:[%s6313_s2 + $0x228] sm:$0xff] }
  0x26   :  { %892 = vmatpush.msra.mxu2 %v354_v26  ;;  %915 = vmatpush.msra.mxu3 %v370_v27  ;;  %v438_v14 = vld [vmem:[%s6313_s2 + $0x3b0] sm:$0xff]  ;;  %v405_v16 = vld [vmem:[%s6313_s2 + $0x2a8] sm:$0xff]  ;;  %v388_v18 = vld [vmem:[%s6313_s2 + $0x220] sm:$0xff] }
  0x27   :  { %847 = vmatpush.msra.mxu0 %v321_v28  ;;  %870 = vmatpush.msra.mxu1 %v337_v29  ;;  %v421_v17 = vld [vmem:[%s6313_s2 + $0x328] sm:$0xff]  ;;  %v404_v19 = vld [vmem:[%s6313_s2 + $0x2a0] sm:$0xff]  ;;  %v403_v23 = vld [vmem:[%s6313_s2 + $0x298] sm:$0xff] }
  0x28   :  { %260 = vperm.xlu1 %3759, %v255_v2   ;;  %257 = vperm.xlu0 %3758, %v254_v4   ;;  %v408_v2 = vld [vmem:[%s6313_s2 + $0x2c0] sm:$0xff]  ;;  %v437_v6 = vld [vmem:[%s6313_s2 + $0x3a8] sm:$0xff]  ;;  %v419_v24 = vld [vmem:[%s6313_s2 + $0x318] sm:$0xff] }
  0x29   :  { %893 = vmatpush.msra.mxu2 %v353_v30  ;;  %916 = vmatpush.msra.mxu3 %v369_v32  ;;  %v424_v4 = vld [vmem:[%s6313_s2 + $0x340] sm:$0xff]  ;;  %v435_v25 = vld [vmem:[%s6313_s2 + $0x398] sm:$0xff]  ;;  %v386_v26 = vld [vmem:[%s6313_s2 + $0x210] sm:$0xff] }
  0x2a   :  { %848 = vmatpush.msra.mxu0 %v320_v33  ;;  %871 = vmatpush.msra.mxu1 %v336_v34  ;;  %v420_v20 = vld [vmem:[%s6313_s2 + $0x320] sm:$0xff]  ;;  %v402_v27 = vld [vmem:[%s6313_s2 + $0x290] sm:$0xff]  ;;  %v385_v30 = vld [vmem:[%s6313_s2 + $0x208] sm:$0xff] }
  0x2b   :  { %894 = vmatpush.msra.mxu2 %v352_v3  ;;  %917 = vmatpush.msra.mxu3 %v368_v35  ;;  %v436_v21 = vld [vmem:[%s6313_s2 + $0x3a0] sm:$0xff]  ;;  %v418_v28 = vld [vmem:[%s6313_s2 + $0x310] sm:$0xff]  ;;  %v401_v31 = vld [vmem:[%s6313_s2 + $0x288] sm:$0xff] }
  0x2c   :  { %925 = vmatpush.msrb.mxu0 %v399_v36  ;;  %948 = vmatpush.msrb.mxu1 %v415_v37  ;;  %v434_v29 = vld [vmem:[%s6313_s2 + $0x390] sm:$0xff]  ;;  %v417_v32 = vld [vmem:[%s6313_s2 + $0x308] sm:$0xff]  ;;  %v384_v34 = vld [vmem:[%s6313_s2 + $0x200] sm:$0xff]  ;;  %v43_v37 = vlaneseq }
  0x2d   :  { %971 = vmatpush.msrb.mxu2 %v431_v38  ;;  %994 = vmatpush.msrb.mxu3 %v447_v40  ;;  %v433_v33 = vld [vmem:[%s6313_s2 + $0x388] sm:$0xff]  ;;  %v400_v3 = vld [vmem:[%s6313_s2 + $0x280] sm:$0xff] }
  0x2e   :  { %291 = vperm.xlu2 %3760, %v288_v39   ;;  %926 = vmatpush.msrb.mxu0 %v398_v41  ;;  %v416_v35 = vld [vmem:[%s6313_s2 + $0x300] sm:$0xff]  ;;  %v4398_v38 = vand.u32 127, %v43_v37  ;;  %v482_v37 = vld [vmem:[%s6313_s2 + $0x510] sm:$0xff] }
  0x2f   :  { %949 = vmatpush.msrb.mxu1 %v414_v42  ;;  %972 = vmatpush.msrb.mxu2 %v430_v43  ;;  %v432_v36 = vld [vmem:[%s6313_s2 + $0x380] sm:$0xff]  ;;  %v463_v43 = vld [vmem:[%s6313_s2 + $0x478] sm:$0xff] }
  0x30   :  { %294 = vperm.xlu0 %3758, %v289_v22   ;;  %995 = vmatpush.msrb.mxu3 %v446_v44  ;;  %v387_v22 = vld [vmem:[%s6313_s2 + $0x218] sm:$0xff]  ;;  %v4401_v39 = vadd.s32 128, %v4398_v38  ;;  %v4404_v40 = vadd.s32 256, %v4398_v38  ;;  %v4407_v41 = vadd.s32 384, %v4398_v38 }
  0x31   :  { %927 = vmatpush.msrb.mxu0 %v397_v45  ;;  %950 = vmatpush.msrb.mxu1 %v413_v46  ;;  %v479_v44 = vld [vmem:[%s6313_s2 + $0x4f8] sm:$0xff]  ;;  %v3916_v45 = vmov 1.0  }
  0x32   :  { %973 = vmatpush.msrb.mxu2 %v429_v47  ;;  %996 = vmatpush.msrb.mxu3 %v445_v48  ;;  %v495_v46 = vld [vmem:[%s6313_s2 + $0x578] sm:$0xff]  ;;  %v462_v48 = vld [vmem:[%s6313_s2 + $0x470] sm:$0xff] }
  0x33   :  { %928 = vmatpush.msrb.mxu0 %v396_v49  ;;  %951 = vmatpush.msrb.mxu1 %v412_v50  ;;  %v511_v47 = vld [vmem:[%s6313_s2 + $0x5f8] sm:$0xff]  ;;  %v478_v49 = vld [vmem:[%s6313_s2 + $0x4f0] sm:$0xff] }
  0x34   :  { %974 = vmatpush.msrb.mxu2 %v428_v51  ;;  %997 = vmatpush.msrb.mxu3 %v444_v52  ;;  %v494_v50 = vld [vmem:[%s6313_s2 + $0x570] sm:$0xff]  ;;  %v461_v52 = vld [vmem:[%s6313_s2 + $0x468] sm:$0xff] }
  0x35   :  { %929 = vmatpush.msrb.mxu0 %v395_v53  ;;  %952 = vmatpush.msrb.mxu1 %v411_v54  ;;  %v510_v51 = vld [vmem:[%s6313_s2 + $0x5f0] sm:$0xff]  ;;  %v477_v53 = vld [vmem:[%s6313_s2 + $0x4e8] sm:$0xff] }
  0x36   :  { %975 = vmatpush.msrb.mxu2 %v427_v55  ;;  %998 = vmatpush.msrb.mxu3 %v443_v56  ;;  %v493_v54 = vld [vmem:[%s6313_s2 + $0x568] sm:$0xff]  ;;  %v460_v56 = vld [vmem:[%s6313_s2 + $0x460] sm:$0xff] }
  0x37   :  { %930 = vmatpush.msrb.mxu0 %v394_v57  ;;  %953 = vmatpush.msrb.mxu1 %v410_v58  ;;  %v509_v55 = vld [vmem:[%s6313_s2 + $0x5e8] sm:$0xff]  ;;  %v476_v57 = vld [vmem:[%s6313_s2 + $0x4e0] sm:$0xff] }
  0x38   :  { %976 = vmatpush.msrb.mxu2 %v426_v59  ;;  %999 = vmatpush.msrb.mxu3 %v442_v60  ;;  %v492_v58 = vld [vmem:[%s6313_s2 + $0x560] sm:$0xff] }
  0x39   :  { %931 = vmatpush.msrb.mxu0 %v393_v61  ;;  %954 = vmatpush.msrb.mxu1 %v409_v62  ;;  %v508_v59 = vld [vmem:[%s6313_s2 + $0x5e0] sm:$0xff]  ;;  %v459_v61 = vld [vmem:[%s6313_s2 + $0x458] sm:$0xff] }
  0x3a   :  { %977 = vmatpush.msrb.mxu2 %v425_v63  ;;  %1000 = vmatpush.msrb.mxu3 %v441_v0  ;;  %v475_v62 = vld [vmem:[%s6313_s2 + $0x4d8] sm:$0xff] }
  0x3b   :  { %932 = vmatpush.msrb.mxu0 %v392_v1  ;;  %955 = vmatpush.msrb.mxu1 %v408_v2  ;;  %v491_v63 = vld [vmem:[%s6313_s2 + $0x558] sm:$0xff]  ;;  %v458_v1 = vld [vmem:[%s6313_s2 + $0x450] sm:$0xff] }
  0x3c   :  { %978 = vmatpush.msrb.mxu2 %v424_v4  ;;  %1001 = vmatpush.msrb.mxu3 %v440_v5  ;;  %v507_v0 = vld [vmem:[%s6313_s2 + $0x5d8] sm:$0xff]  ;;  %v474_v2 = vld [vmem:[%s6313_s2 + $0x4d0] sm:$0xff] }
  0x3d   :  { %933 = vmatpush.msrb.mxu0 %v391_v7  ;;  %956 = vmatpush.msrb.mxu1 %v407_v8  ;;  %v490_v4 = vld [vmem:[%s6313_s2 + $0x550] sm:$0xff]  ;;  %v457_v7 = vld [vmem:[%s6313_s2 + $0x448] sm:$0xff] }
  0x3e   :  { %979 = vmatpush.msrb.mxu2 %v423_v9  ;;  %1002 = vmatpush.msrb.mxu3 %v439_v10  ;;  %v506_v5 = vld [vmem:[%s6313_s2 + $0x5d0] sm:$0xff]  ;;  %v473_v8 = vld [vmem:[%s6313_s2 + $0x4c8] sm:$0xff] }
  0x3f   :  { %934 = vmatpush.msrb.mxu0 %v390_v11  ;;  %957 = vmatpush.msrb.mxu1 %v406_v12  ;;  %v489_v9 = vld [vmem:[%s6313_s2 + $0x548] sm:$0xff]  ;;  %v456_v11 = vld [vmem:[%s6313_s2 + $0x440] sm:$0xff] }
  0x40   :  { %980 = vmatpush.msrb.mxu2 %v422_v13  ;;  %1003 = vmatpush.msrb.mxu3 %v438_v14  ;;  %v505_v10 = vld [vmem:[%s6313_s2 + $0x5c8] sm:$0xff]  ;;  %v472_v12 = vld [vmem:[%s6313_s2 + $0x4c0] sm:$0xff] }
  0x41   :  { %935 = vmatpush.msrb.mxu0 %v389_v15  ;;  %958 = vmatpush.msrb.mxu1 %v405_v16  ;;  %v488_v14 = vld [vmem:[%s6313_s2 + $0x540] sm:$0xff]  ;;  %v455_v16 = vld [vmem:[%s6313_s2 + $0x438] sm:$0xff] }
  0x42   :  { %981 = vmatpush.msrb.mxu2 %v421_v17  ;;  %1004 = vmatpush.msrb.mxu3 %v437_v6  ;;  %v504_v15 = vld [vmem:[%s6313_s2 + $0x5c0] sm:$0xff]  ;;  %v471_v17 = vld [vmem:[%s6313_s2 + $0x4b8] sm:$0xff] }
  0x43   :  { %936 = vmatpush.msrb.mxu0 %v388_v18  ;;  %959 = vmatpush.msrb.mxu1 %v404_v19  ;;  %v487_v6 = vld [vmem:[%s6313_s2 + $0x538] sm:$0xff]  ;;  %v454_v19 = vld [vmem:[%s6313_s2 + $0x430] sm:$0xff] }
  0x44   :  { %982 = vmatpush.msrb.mxu2 %v420_v20  ;;  %1005 = vmatpush.msrb.mxu3 %v436_v21  ;;  %v503_v18 = vld [vmem:[%s6313_s2 + $0x5b8] sm:$0xff]  ;;  %v470_v20 = vld [vmem:[%s6313_s2 + $0x4b0] sm:$0xff] }
  0x45   :  { %937 = vmatpush.msrb.mxu0 %v387_v22  ;;  %960 = vmatpush.msrb.mxu1 %v403_v23  ;;  %v486_v21 = vld [vmem:[%s6313_s2 + $0x530] sm:$0xff]  ;;  %v453_v23 = vld [vmem:[%s6313_s2 + $0x428] sm:$0xff] }
  0x46   :  { %983 = vmatpush.msrb.mxu2 %v419_v24  ;;  %1006 = vmatpush.msrb.mxu3 %v435_v25  ;;  %v502_v22 = vld [vmem:[%s6313_s2 + $0x5b0] sm:$0xff]  ;;  %v469_v24 = vld [vmem:[%s6313_s2 + $0x4a8] sm:$0xff] }
  0x47   :  { %938 = vmatpush.msrb.mxu0 %v386_v26  ;;  %961 = vmatpush.msrb.mxu1 %v402_v27  ;;  %v485_v25 = vld [vmem:[%s6313_s2 + $0x528] sm:$0xff]  ;;  %v452_v27 = vld [vmem:[%s6313_s2 + $0x420] sm:$0xff] }
  0x48   :  { %984 = vmatpush.msrb.mxu2 %v418_v28  ;;  %1007 = vmatpush.msrb.mxu3 %v434_v29  ;;  %v501_v26 = vld [vmem:[%s6313_s2 + $0x5a8] sm:$0xff]  ;;  %v468_v28 = vld [vmem:[%s6313_s2 + $0x4a0] sm:$0xff] }
  0x49   :  { %939 = vmatpush.msrb.mxu0 %v385_v30  ;;  %962 = vmatpush.msrb.mxu1 %v401_v31  ;;  %v484_v30 = vld [vmem:[%s6313_s2 + $0x520] sm:$0xff] }
  0x4a   :  { %985 = vmatpush.msrb.mxu2 %v417_v32  ;;  %1008 = vmatpush.msrb.mxu3 %v433_v33  ;;  %v500_v31 = vld [vmem:[%s6313_s2 + $0x5a0] sm:$0xff]  ;;  %v451_v32 = vld [vmem:[%s6313_s2 + $0x418] sm:$0xff] }
  0x4b   :  { %940 = vmatpush.msrb.mxu0 %v384_v34  ;;  %963 = vmatpush.msrb.mxu1 %v400_v3  ;;  %v467_v33 = vld [vmem:[%s6313_s2 + $0x498] sm:$0xff] }
  0x4c   :  { %986 = vmatpush.msrb.mxu2 %v416_v35  ;;  %1009 = vmatpush.msrb.mxu3 %v432_v36  ;;  %v483_v34 = vld [vmem:[%s6313_s2 + $0x518] sm:$0xff]  ;;  %v450_v35 = vld [vmem:[%s6313_s2 + $0x410] sm:$0xff] }
  0x4d   :  { %v499_v3 = vld [vmem:[%s6313_s2 + $0x598] sm:$0xff]  ;;  %v466_v36 = vld [vmem:[%s6313_s2 + $0x490] sm:$0xff] }
  0x7a   :  { %v54_v42 = vpop.permute.xlu0 %53  ;;  %v88_v13 = vpop.permute.xlu1 %87 }
  0x7b   :  { %vm58_vm0 = vcmp.eq.s32.totalorder %v4398_v38, %v54_v42  ;;  %vm59_vm1 = vcmp.eq.s32.totalorder %v4401_v39, %v54_v42  ;;  %vm60_vm2 = vcmp.eq.s32.totalorder %v4404_v40, %v54_v42  ;;  %vm61_vm3 = vcmp.eq.s32.totalorder %v4407_v41, %v54_v42  ;;  %v498_v42 = vld [vmem:[%s6313_s2 + $0x590] sm:$0xff] }
  0x7c   :  { %3590 = vmatmul.msk.f32.vlgmr.msra.gmra.mxu0 %vm58_vm0, %v3916_v45  ;;  %3592 = vmatmul.msk.f32.vlgmr.msra.gmra.mxu1 %vm59_vm1, %v3916_v45  ;;  %vm92_vm8 = vcmp.eq.s32.totalorder %v4398_v38, %v88_v13  ;;  %vm94_vm9 = vcmp.eq.s32.totalorder %v4404_v40, %v88_v13  ;;  %vm93_vm10 = vcmp.eq.s32.totalorder %v4401_v39, %v88_v13 }
  0x7d   :  { %3594 = vmatmul.msk.f32.vlgmr.msra.gmra.mxu2 %vm60_vm2, %v3916_v45  ;;  %3596 = vmatmul.msk.f32.vlgmr.msra.gmra.mxu3 %vm61_vm3, %v3916_v45  ;;  %vm95_vm11 = vcmp.eq.s32.totalorder %v4407_v41, %v88_v13  ;;  %v538_v13 = vld [vmem:[%s6313_s2 + $0x6d0] sm:$0xff] }
  0x7e   :  { %1017 = vmatpush.msra.mxu0 %v463_v43  ;;  %1040 = vmatpush.msra.mxu1 %v479_v44  ;;  %v449_v43 = vld [vmem:[%s6313_s2 + $0x408] sm:$0xff] }
  0x7f   :  { %1063 = vmatpush.msra.mxu2 %v495_v46  ;;  %1086 = vmatpush.msra.mxu3 %v511_v47  ;;  %v465_v44 = vld [vmem:[%s6313_s2 + $0x488] sm:$0xff] }
  0x80   :  { %1018 = vmatpush.msra.mxu0 %v462_v48  ;;  %1041 = vmatpush.msra.mxu1 %v478_v49  ;;  %v481_v46 = vld [vmem:[%s6313_s2 + $0x508] sm:$0xff]  ;;  %v448_v48 = vld [vmem:[%s6313_s2 + $0x400] sm:$0xff] }
  0x81   :  { %1064 = vmatpush.msra.mxu2 %v494_v50  ;;  %1087 = vmatpush.msra.mxu3 %v510_v51  ;;  %v497_v47 = vld [vmem:[%s6313_s2 + $0x588] sm:$0xff]  ;;  %v464_v49 = vld [vmem:[%s6313_s2 + $0x480] sm:$0xff] }
  0x82   :  { %1019 = vmatpush.msra.mxu0 %v461_v52  ;;  %1042 = vmatpush.msra.mxu1 %v477_v53  ;;  %v57_v60 = vpop.permute.xlu0 %56  ;;  %v91_v29 = vpop.permute.xlu1 %90  ;;  %v480_v50 = vld [vmem:[%s6313_s2 + $0x500] sm:$0xff]  ;;  %v527_v52 = vld [vmem:[%s6313_s2 + $0x678] sm:$0xff] }
  0x83   :  { %1065 = vmatpush.msra.mxu2 %v493_v54  ;;  %1088 = vmatpush.msra.mxu3 %v509_v55  ;;  %vm62_vm4 = vcmp.eq.s32.totalorder %v4398_v38, %v57_v60  ;;  %vm63_vm5 = vcmp.eq.s32.totalorder %v4401_v39, %v57_v60  ;;  %vm64_vm6 = vcmp.eq.s32.totalorder %v4404_v40, %v57_v60  ;;  %v496_v51 = vld [vmem:[%s6313_s2 + $0x580] sm:$0xff]  ;;  %v543_v53 = vld [vmem:[%s6313_s2 + $0x6f8] sm:$0xff]  ;;  %v122_v54 = vpop.permute.xlu2 %121 }
  0x84   :  { %1020 = vmatpush.msra.mxu0 %v460_v56  ;;  %1043 = vmatpush.msra.mxu1 %v476_v57  ;;  %vm65_vm7 = vcmp.eq.s32.totalorder %v4407_v41, %v57_v60  ;;  %vm96_vm12 = vcmp.eq.s32.totalorder %v4398_v38, %v91_v29  ;;  %vm98_vm13 = vcmp.eq.s32.totalorder %v4404_v40, %v91_v29  ;;  %v559_v55 = vld [vmem:[%s6313_s2 + $0x778] sm:$0xff]  ;;  %v526_v57 = vld [vmem:[%s6313_s2 + $0x670] sm:$0xff] }
  0x85   :  { %1066 = vmatpush.msra.mxu2 %v492_v58  ;;  %1089 = vmatpush.msra.mxu3 %v508_v59  ;;  %vm97_vm14 = vcmp.eq.s32.totalorder %v4401_v39, %v91_v29  ;;  %vm99_vm15 = vcmp.eq.s32.totalorder %v4407_v41, %v91_v29  ;;  %v575_v56 = vld [vmem:[%s6313_s2 + $0x7f8] sm:$0xff]  ;;  %vm126_vm0 = vcmp.eq.s32.totalorder %v4398_v38, %v122_v54  ;;  %v542_v58 = vld [vmem:[%s6313_s2 + $0x6f0] sm:$0xff] }
  0x86   :  { %3591 = vmatmul.msk.f32.gmra.mxu0 %vm62_vm4, %v3916_v45  ;;  %3593 = vmatmul.msk.f32.gmra.mxu1 %vm63_vm5, %v3916_v45  ;;  %vm128_vm1 = vcmp.eq.s32.totalorder %v4404_v40, %v122_v54  ;;  %v558_v59 = vld [vmem:[%s6313_s2 + $0x770] sm:$0xff]  ;;  %vm127_vm2 = vcmp.eq.s32.totalorder %v4401_v39, %v122_v54  ;;  %vm129_vm3 = vcmp.eq.s32.totalorder %v4407_v41, %v122_v54  ;;  %v561_v54 = vld [vmem:[%s6313_s2 + $0x788] sm:$0xff] }
  0x87   :  { %3595 = vmatmul.msk.f32.gmra.mxu2 %vm64_vm6, %v3916_v45  ;;  %3597 = vmatmul.msk.f32.gmra.mxu3 %vm65_vm7, %v3916_v45  ;;  %v574_v60 = vld [vmem:[%s6313_s2 + $0x7f0] sm:$0xff] }
  0x88   :  { %1021 = vmatpush.msra.mxu0 %v459_v61  ;;  %1044 = vmatpush.msra.mxu1 %v475_v62  ;;  %v525_v61 = vld [vmem:[%s6313_s2 + $0x668] sm:$0xff]  ;;  %v550_v29 = vld [vmem:[%s6313_s2 + $0x730] sm:$0xff] }
  0x89   :  { %1067 = vmatpush.msra.mxu2 %v491_v63  ;;  %1090 = vmatpush.msra.mxu3 %v507_v0  ;;  %v541_v62 = vld [vmem:[%s6313_s2 + $0x6e8] sm:$0xff] }
  0x8a   :  { %1022 = vmatpush.msra.mxu0 %v458_v1  ;;  %1045 = vmatpush.msra.mxu1 %v474_v2  ;;  %v557_v63 = vld [vmem:[%s6313_s2 + $0x768] sm:$0xff]  ;;  %v524_v1 = vld [vmem:[%s6313_s2 + $0x660] sm:$0xff] }
  0x8b   :  { %1068 = vmatpush.msra.mxu2 %v490_v4  ;;  %1091 = vmatpush.msra.mxu3 %v506_v5  ;;  %v573_v0 = vld [vmem:[%s6313_s2 + $0x7e8] sm:$0xff]  ;;  %v540_v2 = vld [vmem:[%s6313_s2 + $0x6e0] sm:$0xff] }
  0x8c   :  { %1023 = vmatpush.msra.mxu0 %v457_v7  ;;  %1046 = vmatpush.msra.mxu1 %v473_v8  ;;  %v556_v4 = vld [vmem:[%s6313_s2 + $0x760] sm:$0xff]  ;;  %v523_v7 = vld [vmem:[%s6313_s2 + $0x658] sm:$0xff] }
  0x8d   :  { %1069 = vmatpush.msra.mxu2 %v489_v9  ;;  %1092 = vmatpush.msra.mxu3 %v505_v10  ;;  %v572_v5 = vld [vmem:[%s6313_s2 + $0x7e0] sm:$0xff]  ;;  %v539_v8 = vld [vmem:[%s6313_s2 + $0x6d8] sm:$0xff]  ;;  %v125_v9 = vpop.permute.xlu2 %124 }
  0x8e   :  { %1024 = vmatpush.msra.mxu0 %v456_v11  ;;  %1047 = vmatpush.msra.mxu1 %v472_v12  ;;  %v555_v10 = vld [vmem:[%s6313_s2 + $0x758] sm:$0xff]  ;;  %vm130_vm4 = vcmp.eq.s32.totalorder %v4398_v38, %v125_v9  ;;  %vm132_vm5 = vcmp.eq.s32.totalorder %v4404_v40, %v125_v9  ;;  %v522_v12 = vld [vmem:[%s6313_s2 + $0x650] sm:$0xff]  ;;  %vm131_vm6 = vcmp.eq.s32.totalorder %v4401_v39, %v125_v9 }
  0x8f   :  { %1070 = vmatpush.msra.mxu2 %v488_v14  ;;  %1093 = vmatpush.msra.mxu3 %v504_v15  ;;  %v571_v11 = vld [vmem:[%s6313_s2 + $0x7d8] sm:$0xff]  ;;  %v554_v14 = vld [vmem:[%s6313_s2 + $0x750] sm:$0xff]  ;;  %vm133_vm7 = vcmp.eq.s32.totalorder %v4407_v41, %v125_v9  ;;  %v637_v9 = vld [vmem:[%s6313_s2 + $0x9e8] sm:$0xff] }
  0x90   :  { %3598 = vmatmul.msk.f32.vlgmr.msrb.gmra.mxu0 %vm92_vm8, %v3916_v45  ;;  %3602 = vmatmul.msk.f32.vlgmr.msrb.gmra.mxu2 %vm94_vm9, %v3916_v45  ;;  %v570_v15 = vld [vmem:[%s6313_s2 + $0x7d0] sm:$0xff] }
  0x91   :  { %1025 = vmatpush.msra.mxu0 %v455_v16  ;;  %1048 = vmatpush.msra.mxu1 %v471_v17  ;;  %v521_v16 = vld [vmem:[%s6313_s2 + $0x648] sm:$0xff] }
  0x92   :  { %1071 = vmatpush.msra.mxu2 %v487_v6  ;;  %1094 = vmatpush.msra.mxu3 %v503_v18  ;;  %v537_v17 = vld [vmem:[%s6313_s2 + $0x6c8] sm:$0xff] }
  0x93   :  { %3600 = vmatmul.msk.f32.vlgmr.msrb.gmra.mxu1 %vm93_vm10, %v3916_v45  ;;  %3604 = vmatmul.msk.f32.vlgmr.msrb.gmra.mxu3 %vm95_vm11, %v3916_v45  ;;  %v553_v6 = vld [vmem:[%s6313_s2 + $0x748] sm:$0xff] }
  0x94   :  { %1026 = vmatpush.msra.mxu0 %v454_v19  ;;  %1049 = vmatpush.msra.mxu1 %v470_v20  ;;  %v569_v18 = vld [vmem:[%s6313_s2 + $0x7c8] sm:$0xff]  ;;  %v520_v19 = vld [vmem:[%s6313_s2 + $0x640] sm:$0xff] }
  0x95   :  { %1072 = vmatpush.msra.mxu2 %v486_v21  ;;  %1095 = vmatpush.msra.mxu3 %v502_v22  ;;  %v536_v20 = vld [vmem:[%s6313_s2 + $0x6c0] sm:$0xff] }
  0x96   :  { %1027 = vmatpush.msra.mxu0 %v453_v23  ;;  %1050 = vmatpush.msra.mxu1 %v469_v24  ;;  %v552_v21 = vld [vmem:[%s6313_s2 + $0x740] sm:$0xff]  ;;  %v519_v23 = vld [vmem:[%s6313_s2 + $0x638] sm:$0xff] }
  0x97   :  { %1073 = vmatpush.msra.mxu2 %v485_v25  ;;  %1096 = vmatpush.msra.mxu3 %v501_v26  ;;  %v568_v22 = vld [vmem:[%s6313_s2 + $0x7c0] sm:$0xff]  ;;  %v535_v24 = vld [vmem:[%s6313_s2 + $0x6b8] sm:$0xff] }
  0x98   :  { %1028 = vmatpush.msra.mxu0 %v452_v27  ;;  %1051 = vmatpush.msra.mxu1 %v468_v28  ;;  %v551_v25 = vld [vmem:[%s6313_s2 + $0x738] sm:$0xff]  ;;  %v518_v27 = vld [vmem:[%s6313_s2 + $0x630] sm:$0xff] }
  0x99   :  { %1074 = vmatpush.msra.mxu2 %v484_v30  ;;  %1097 = vmatpush.msra.mxu3 %v500_v31  ;;  %v567_v26 = vld [vmem:[%s6313_s2 + $0x7b8] sm:$0xff]  ;;  %v534_v28 = vld [vmem:[%s6313_s2 + $0x6b0] sm:$0xff]  ;;  %v517_v31 = vld [vmem:[%s6313_s2 + $0x628] sm:$0xff] }
  0x9a   :  { %3599 = vmatmul.msk.f32.gmra.mxu0 %vm96_vm12, %v3916_v45  ;;  %3603 = vmatmul.msk.f32.gmra.mxu2 %vm98_vm13, %v3916_v45  ;;  %v566_v30 = vld [vmem:[%s6313_s2 + $0x7b0] sm:$0xff] }
  0x9b   :  { %1029 = vmatpush.msra.mxu0 %v451_v32  ;;  %1052 = vmatpush.msra.mxu1 %v467_v33  ;;  %v533_v32 = vld [vmem:[%s6313_s2 + $0x6a8] sm:$0xff] }
  0x9c   :  { %1075 = vmatpush.msra.mxu2 %v483_v34  ;;  %1098 = vmatpush.msra.mxu3 %v499_v3  ;;  %v549_v33 = vld [vmem:[%s6313_s2 + $0x728] sm:$0xff]  ;;  %v516_v3 = vld [vmem:[%s6313_s2 + $0x620] sm:$0xff] }
  0x9d   :  { %3601 = vmatmul.msk.f32.gmra.mxu1 %vm97_vm14, %v3916_v45  ;;  %3605 = vmatmul.msk.f32.gmra.mxu3 %vm99_vm15, %v3916_v45  ;;  %v565_v34 = vld [vmem:[%s6313_s2 + $0x7a8] sm:$0xff] }
  0x9e   :  { %1030 = vmatpush.msra.mxu0 %v450_v35  ;;  %1053 = vmatpush.msra.mxu1 %v466_v36  ;;  %v532_v35 = vld [vmem:[%s6313_s2 + $0x6a0] sm:$0xff] }
  0x9f   :  { %1076 = vmatpush.msra.mxu2 %v482_v37  ;;  %1099 = vmatpush.msra.mxu3 %v498_v42  ;;  %v548_v36 = vld [vmem:[%s6313_s2 + $0x720] sm:$0xff]  ;;  %v515_v42 = vld [vmem:[%s6313_s2 + $0x618] sm:$0xff] }
  0xa0   :  { %1031 = vmatpush.msra.mxu0 %v449_v43  ;;  %1054 = vmatpush.msra.mxu1 %v465_v44  ;;  %v564_v37 = vld [vmem:[%s6313_s2 + $0x7a0] sm:$0xff]  ;;  %v531_v43 = vld [vmem:[%s6313_s2 + $0x698] sm:$0xff] }
  0xa1   :  { %1077 = vmatpush.msra.mxu2 %v481_v46  ;;  %1100 = vmatpush.msra.mxu3 %v497_v47  ;;  %v547_v44 = vld [vmem:[%s6313_s2 + $0x718] sm:$0xff]  ;;  %v514_v47 = vld [vmem:[%s6313_s2 + $0x610] sm:$0xff] }
  0xa2   :  { %1032 = vmatpush.msra.mxu0 %v448_v48  ;;  %1055 = vmatpush.msra.mxu1 %v464_v49  ;;  %v563_v46 = vld [vmem:[%s6313_s2 + $0x798] sm:$0xff]  ;;  %v530_v48 = vld [vmem:[%s6313_s2 + $0x690] sm:$0xff] }
  0xa3   :  { %1078 = vmatpush.msra.mxu2 %v480_v50  ;;  %1101 = vmatpush.msra.mxu3 %v496_v51  ;;  %v546_v49 = vld [vmem:[%s6313_s2 + $0x710] sm:$0xff]  ;;  %v513_v51 = vld [vmem:[%s6313_s2 + $0x608] sm:$0xff] }
  0xa4   :  { %1109 = vmatpush.msrb.mxu0 %v527_v52  ;;  %1132 = vmatpush.msrb.mxu1 %v543_v53  ;;  %v562_v50 = vld [vmem:[%s6313_s2 + $0x790] sm:$0xff]  ;;  %v529_v52 = vld [vmem:[%s6313_s2 + $0x688] sm:$0xff] }
  0xa5   :  { %1155 = vmatpush.msrb.mxu2 %v559_v55  ;;  %1178 = vmatpush.msrb.mxu3 %v575_v56  ;;  %v545_v53 = vld [vmem:[%s6313_s2 + $0x708] sm:$0xff]  ;;  %v512_v55 = vld [vmem:[%s6313_s2 + $0x600] sm:$0xff] }
  0xa6   :  { %3606 = vmatmul.msk.f32.vlgmr.msra.gmra.mxu0 %vm126_vm0, %v3916_v45  ;;  %3610 = vmatmul.msk.f32.vlgmr.msra.gmra.mxu2 %vm128_vm1, %v3916_v45  ;;  %v528_v56 = vld [vmem:[%s6313_s2 + $0x680] sm:$0xff] }
  0xa7   :  { %1110 = vmatpush.msrb.mxu0 %v526_v57  ;;  %1133 = vmatpush.msrb.mxu1 %v542_v58  ;;  %v156_v57 = vpop.permute.xlu0 %155  ;;  %v544_v58 = vld [vmem:[%s6313_s2 + $0x700] sm:$0xff] }
  0xa8   :  { %1156 = vmatpush.msrb.mxu2 %v558_v59  ;;  %1179 = vmatpush.msrb.mxu3 %v574_v60  ;;  %v560_v59 = vld [vmem:[%s6313_s2 + $0x780] sm:$0xff]  ;;  %vm160_vm8 = vcmp.eq.s32.totalorder %v4398_v38, %v156_v57  ;;  %vm161_vm9 = vcmp.eq.s32.totalorder %v4401_v39, %v156_v57  ;;  %v591_v60 = vld [vmem:[%s6313_s2 + $0x878] sm:$0xff]  ;;  %vm162_vm10 = vcmp.eq.s32.totalorder %v4404_v40, %v156_v57 }
  0xa9   :  { %3608 = vmatmul.msk.f32.vlgmr.msra.gmra.mxu1 %vm127_vm2, %v3916_v45  ;;  %3612 = vmatmul.msk.f32.vlgmr.msra.gmra.mxu3 %vm129_vm3, %v3916_v45  ;;  %vm163_vm11 = vcmp.eq.s32.totalorder %v4407_v41, %v156_v57  ;;  %v626_v57 = vld [vmem:[%s6313_s2 + $0x990] sm:$0xff] }
  0xaa   :  { %1111 = vmatpush.msrb.mxu0 %v525_v61  ;;  %1134 = vmatpush.msrb.mxu1 %v541_v62  ;;  %v607_v61 = vld [vmem:[%s6313_s2 + $0x8f8] sm:$0xff] }
  0xab   :  { %1157 = vmatpush.msrb.mxu2 %v557_v63  ;;  %1180 = vmatpush.msrb.mxu3 %v573_v0  ;;  %v623_v62 = vld [vmem:[%s6313_s2 + $0x978] sm:$0xff]  ;;  %v590_v0 = vld [vmem:[%s6313_s2 + $0x870] sm:$0xff] }
  0xac   :  { %1112 = vmatpush.msrb.mxu0 %v524_v1  ;;  %1135 = vmatpush.msrb.mxu1 %v540_v2  ;;  %v639_v63 = vld [vmem:[%s6313_s2 + $0x9f8] sm:$0xff]  ;;  %v606_v1 = vld [vmem:[%s6313_s2 + $0x8f0] sm:$0xff] }
  0xad   :  { %1158 = vmatpush.msrb.mxu2 %v556_v4  ;;  %1181 = vmatpush.msrb.mxu3 %v572_v5  ;;  %v622_v2 = vld [vmem:[%s6313_s2 + $0x970] sm:$0xff]  ;;  %v589_v5 = vld [vmem:[%s6313_s2 + $0x868] sm:$0xff] }
  0xae   :  { %1113 = vmatpush.msrb.mxu0 %v523_v7  ;;  %1136 = vmatpush.msrb.mxu1 %v539_v8  ;;  %v638_v4 = vld [vmem:[%s6313_s2 + $0x9f0] sm:$0xff]  ;;  %v605_v7 = vld [vmem:[%s6313_s2 + $0x8e8] sm:$0xff] }
  0xaf   :  { %1159 = vmatpush.msrb.mxu2 %v555_v10  ;;  %1182 = vmatpush.msrb.mxu3 %v571_v11  ;;  %v621_v8 = vld [vmem:[%s6313_s2 + $0x968] sm:$0xff]  ;;  %v588_v10 = vld [vmem:[%s6313_s2 + $0x860] sm:$0xff] }
  0xb0   :  { %3607 = vmatmul.msk.f32.gmra.mxu0 %vm130_vm4, %v3916_v45  ;;  %3611 = vmatmul.msk.f32.gmra.mxu2 %vm132_vm5, %v3916_v45  ;;  %v604_v11 = vld [vmem:[%s6313_s2 + $0x8e0] sm:$0xff] }
  0xb1   :  { %1114 = vmatpush.msrb.mxu0 %v522_v12  ;;  %1137 = vmatpush.msrb.mxu1 %v538_v13  ;;  %v620_v12 = vld [vmem:[%s6313_s2 + $0x960] sm:$0xff] }
  0xb2   :  { %1160 = vmatpush.msrb.mxu2 %v554_v14  ;;  %1183 = vmatpush.msrb.mxu3 %v570_v15  ;;  %v636_v13 = vld [vmem:[%s6313_s2 + $0x9e0] sm:$0xff]  ;;  %v159_v14 = vpop.permute.xlu1 %158  ;;  %v587_v15 = vld [vmem:[%s6313_s2 + $0x858] sm:$0xff] }
  0xb3   :  { %3609 = vmatmul.msk.f32.gmra.mxu1 %vm131_vm6, %v3916_v45  ;;  %3613 = vmatmul.msk.f32.gmra.mxu3 %vm133_vm7, %v3916_v45  ;;  %vm164_vm12 = vcmp.eq.s32.totalorder %v4398_v38, %v159_v14  ;;  %vm165_vm13 = vcmp.eq.s32.totalorder %v4401_v39, %v159_v14  ;;  %vm166_vm14 = vcmp.eq.s32.totalorder %v4404_v40, %v159_v14 }
  0xb4   :  { %1115 = vmatpush.msrb.mxu0 %v521_v16  ;;  %1138 = vmatpush.msrb.mxu1 %v537_v17  ;;  %v603_v16 = vld [vmem:[%s6313_s2 + $0x8d8] sm:$0xff]  ;;  %vm167_vm15 = vcmp.eq.s32.totalorder %v4407_v41, %v159_v14  ;;  %v669_v14 = vld [vmem:[%s6313_s2 + $0xae8] sm:$0xff] }
  0xb5   :  { %1161 = vmatpush.msrb.mxu2 %v553_v6  ;;  %1184 = vmatpush.msrb.mxu3 %v569_v18  ;;  %v619_v17 = vld [vmem:[%s6313_s2 + $0x958] sm:$0xff]  ;;  %v586_v18 = vld [vmem:[%s6313_s2 + $0x850] sm:$0xff] }
  0xb6   :  { %1116 = vmatpush.msrb.mxu0 %v520_v19  ;;  %1139 = vmatpush.msrb.mxu1 %v536_v20  ;;  %v635_v6 = vld [vmem:[%s6313_s2 + $0x9d8] sm:$0xff]  ;;  %v602_v19 = vld [vmem:[%s6313_s2 + $0x8d0] sm:$0xff] }
  0xb7   :  { %1162 = vmatpush.msrb.mxu2 %v552_v21  ;;  %1185 = vmatpush.msrb.mxu3 %v568_v22  ;;  %v618_v20 = vld [vmem:[%s6313_s2 + $0x950] sm:$0xff]  ;;  %v585_v22 = vld [vmem:[%s6313_s2 + $0x848] sm:$0xff] }
  0xb8   :  { %1117 = vmatpush.msrb.mxu0 %v519_v23  ;;  %1140 = vmatpush.msrb.mxu1 %v535_v24  ;;  %v634_v21 = vld [vmem:[%s6313_s2 + $0x9d0] sm:$0xff]  ;;  %v601_v23 = vld [vmem:[%s6313_s2 + $0x8c8] sm:$0xff] }
  0xb9   :  { %1163 = vmatpush.msrb.mxu2 %v551_v25  ;;  %1186 = vmatpush.msrb.mxu3 %v567_v26  ;;  %v617_v24 = vld [vmem:[%s6313_s2 + $0x948] sm:$0xff]  ;;  %v584_v26 = vld [vmem:[%s6313_s2 + $0x840] sm:$0xff] }
  0xba   :  { %1118 = vmatpush.msrb.mxu0 %v518_v27  ;;  %1141 = vmatpush.msrb.mxu1 %v534_v28  ;;  %v633_v25 = vld [vmem:[%s6313_s2 + $0x9c8] sm:$0xff]  ;;  %v600_v27 = vld [vmem:[%s6313_s2 + $0x8c0] sm:$0xff] }
  0xbb   :  { %1164 = vmatpush.msrb.mxu2 %v550_v29  ;;  %1187 = vmatpush.msrb.mxu3 %v566_v30  ;;  %v616_v28 = vld [vmem:[%s6313_s2 + $0x940] sm:$0xff]  ;;  %v583_v30 = vld [vmem:[%s6313_s2 + $0x838] sm:$0xff] }
  0xbc   :  { %1119 = vmatpush.msrb.mxu0 %v517_v31  ;;  %1142 = vmatpush.msrb.mxu1 %v533_v32  ;;  %v632_v29 = vld [vmem:[%s6313_s2 + $0x9c0] sm:$0xff]  ;;  %v599_v31 = vld [vmem:[%s6313_s2 + $0x8b8] sm:$0xff] }
  0xbd   :  { %1165 = vmatpush.msrb.mxu2 %v549_v33  ;;  %1188 = vmatpush.msrb.mxu3 %v565_v34  ;;  %v615_v32 = vld [vmem:[%s6313_s2 + $0x938] sm:$0xff]  ;;  %v582_v34 = vld [vmem:[%s6313_s2 + $0x830] sm:$0xff] }
  0xbe   :  { %1120 = vmatpush.msrb.mxu0 %v516_v3  ;;  %1143 = vmatpush.msrb.mxu1 %v532_v35  ;;  %v631_v33 = vld [vmem:[%s6313_s2 + $0x9b8] sm:$0xff]  ;;  %v598_v3 = vld [vmem:[%s6313_s2 + $0x8b0] sm:$0xff] }
  0xbf   :  { %1166 = vmatpush.msrb.mxu2 %v548_v36  ;;  %1189 = vmatpush.msrb.mxu3 %v564_v37  ;;  %v614_v35 = vld [vmem:[%s6313_s2 + $0x930] sm:$0xff]  ;;  %v581_v37 = vld [vmem:[%s6313_s2 + $0x828] sm:$0xff] }
  0xc0   :  { %1121 = vmatpush.msrb.mxu0 %v515_v42  ;;  %1144 = vmatpush.msrb.mxu1 %v531_v43  ;;  %v630_v36 = vld [vmem:[%s6313_s2 + $0x9b0] sm:$0xff]  ;;  %v597_v42 = vld [vmem:[%s6313_s2 + $0x8a8] sm:$0xff] }
  0xc1   :  { %1167 = vmatpush.msrb.mxu2 %v547_v44  ;;  %1190 = vmatpush.msrb.mxu3 %v563_v46  ;;  %v613_v43 = vld [vmem:[%s6313_s2 + $0x928] sm:$0xff]  ;;  %v580_v46 = vld [vmem:[%s6313_s2 + $0x820] sm:$0xff] }
  0xc2   :  { %1122 = vmatpush.msrb.mxu0 %v514_v47  ;;  %1145 = vmatpush.msrb.mxu1 %v530_v48  ;;  %v629_v44 = vld [vmem:[%s6313_s2 + $0x9a8] sm:$0xff]  ;;  %v596_v47 = vld [vmem:[%s6313_s2 + $0x8a0] sm:$0xff] }
  0xc3   :  { %1168 = vmatpush.msrb.mxu2 %v546_v49  ;;  %1191 = vmatpush.msrb.mxu3 %v562_v50  ;;  %v612_v48 = vld [vmem:[%s6313_s2 + $0x920] sm:$0xff]  ;;  %v579_v50 = vld [vmem:[%s6313_s2 + $0x818] sm:$0xff] }
  0xc4   :  { %1123 = vmatpush.msrb.mxu0 %v513_v51  ;;  %1146 = vmatpush.msrb.mxu1 %v529_v52  ;;  %v628_v49 = vld [vmem:[%s6313_s2 + $0x9a0] sm:$0xff]  ;;  %v595_v51 = vld [vmem:[%s6313_s2 + $0x898] sm:$0xff] }
  0xc5   :  { %1169 = vmatpush.msrb.mxu2 %v545_v53  ;;  %1192 = vmatpush.msrb.mxu3 %v561_v54  ;;  %v611_v52 = vld [vmem:[%s6313_s2 + $0x918] sm:$0xff]  ;;  %v578_v54 = vld [vmem:[%s6313_s2 + $0x810] sm:$0xff] }
  0xc6   :  { %1124 = vmatpush.msrb.mxu0 %v512_v55  ;;  %1147 = vmatpush.msrb.mxu1 %v528_v56  ;;  %v627_v53 = vld [vmem:[%s6313_s2 + $0x998] sm:$0xff]  ;;  %v594_v55 = vld [vmem:[%s6313_s2 + $0x890] sm:$0xff] }
  0xc7   :  { %1170 = vmatpush.msrb.mxu2 %v544_v58  ;;  %1193 = vmatpush.msrb.mxu3 %v560_v59  ;;  %v610_v56 = vld [vmem:[%s6313_s2 + $0x910] sm:$0xff]  ;;  %v577_v58 = vld [vmem:[%s6313_s2 + $0x808] sm:$0xff] }
  0xc8   :  { %3614 = vmatmul.msk.f32.vlgmr.msrb.gmra.mxu0 %vm160_vm8, %v3916_v45  ;;  %3616 = vmatmul.msk.f32.vlgmr.msrb.gmra.mxu1 %vm161_vm9, %v3916_v45  ;;  %v593_v59 = vld [vmem:[%s6313_s2 + $0x888] sm:$0xff] }
  0xc9   :  { %3618 = vmatmul.msk.f32.vlgmr.msrb.gmra.mxu2 %vm162_vm10, %v3916_v45  ;;  %3620 = vmatmul.msk.f32.vlgmr.msrb.gmra.mxu3 %vm163_vm11, %v3916_v45 }
  0xca   :  { %1201 = vmatpush.msra.mxu0 %v591_v60  ;;  %1224 = vmatpush.msra.mxu1 %v607_v61  ;;  %v609_v60 = vld [vmem:[%s6313_s2 + $0x908] sm:$0xff] }
  0xcb   :  { %1247 = vmatpush.msra.mxu2 %v623_v62  ;;  %1270 = vmatpush.msra.mxu3 %v639_v63  ;;  %v625_v61 = vld [vmem:[%s6313_s2 + $0x988] sm:$0xff]  ;;  %v576_v62 = vld [vmem:[%s6313_s2 + $0x800] sm:$0xff] }
  0xcc   :  { %1202 = vmatpush.msra.mxu0 %v590_v0  ;;  %1225 = vmatpush.msra.mxu1 %v606_v1  ;;  %v592_v63 = vld [vmem:[%s6313_s2 + $0x880] sm:$0xff] }
  0xcd   :  { %1248 = vmatpush.msra.mxu2 %v622_v2  ;;  %1271 = vmatpush.msra.mxu3 %v638_v4  ;;  %v608_v0 = vld [vmem:[%s6313_s2 + $0x900] sm:$0xff]  ;;  %v190_v2 = vpop.permute.xlu2 %189  ;;  %v655_v4 = vld [vmem:[%s6313_s2 + $0xa78] sm:$0xff] }
  0xce   :  { %1203 = vmatpush.msra.mxu0 %v589_v5  ;;  %1226 = vmatpush.msra.mxu1 %v605_v7  ;;  %v624_v1 = vld [vmem:[%s6313_s2 + $0x980] sm:$0xff]  ;;  %vm194_vm0 = vcmp.eq.s32.totalorder %v4398_v38, %v190_v2  ;;  %vm195_vm1 = vcmp.eq.s32.totalorder %v4401_v39, %v190_v2  ;;  %v671_v5 = vld [vmem:[%s6313_s2 + $0xaf8] sm:$0xff]  ;;  %vm196_vm2 = vcmp.eq.s32.totalorder %v4404_v40, %v190_v2 }
  0xcf   :  { %1249 = vmatpush.msra.mxu2 %v621_v8  ;;  %1272 = vmatpush.msra.mxu3 %v637_v9  ;;  %vm197_vm3 = vcmp.eq.s32.totalorder %v4407_v41, %v190_v2  ;;  %v687_v7 = vld [vmem:[%s6313_s2 + $0xb78] sm:$0xff]  ;;  %v654_v9 = vld [vmem:[%s6313_s2 + $0xa70] sm:$0xff]  ;;  %v657_v2 = vld [vmem:[%s6313_s2 + $0xa88] sm:$0xff] }
  0xd0   :  { %1204 = vmatpush.msra.mxu0 %v588_v10  ;;  %1227 = vmatpush.msra.mxu1 %v604_v11  ;;  %v703_v8 = vld [vmem:[%s6313_s2 + $0xbf8] sm:$0xff]  ;;  %v670_v10 = vld [vmem:[%s6313_s2 + $0xaf0] sm:$0xff] }
  0xd1   :  { %1250 = vmatpush.msra.mxu2 %v620_v12  ;;  %1273 = vmatpush.msra.mxu3 %v636_v13  ;;  %v686_v11 = vld [vmem:[%s6313_s2 + $0xb70] sm:$0xff]  ;;  %v653_v13 = vld [vmem:[%s6313_s2 + $0xa68] sm:$0xff] }
  0xd2   :  { %3615 = vmatmul.msk.f32.gmra.mxu0 %vm164_vm12, %v3916_v45  ;;  %3617 = vmatmul.msk.f32.gmra.mxu1 %vm165_vm13, %v3916_v45  ;;  %v702_v12 = vld [vmem:[%s6313_s2 + $0xbf0] sm:$0xff] }
  0xd3   :  { %3619 = vmatmul.msk.f32.gmra.mxu2 %vm166_vm14, %v3916_v45  ;;  %3621 = vmatmul.msk.f32.gmra.mxu3 %vm167_vm15, %v3916_v45 }
  0xd4   :  { %1205 = vmatpush.msra.mxu0 %v587_v15  ;;  %1228 = vmatpush.msra.mxu1 %v603_v16  ;;  %v685_v15 = vld [vmem:[%s6313_s2 + $0xb68] sm:$0xff] }
  0xd5   :  { %1251 = vmatpush.msra.mxu2 %v619_v17  ;;  %1274 = vmatpush.msra.mxu3 %v635_v6  ;;  %v701_v16 = vld [vmem:[%s6313_s2 + $0xbe8] sm:$0xff]  ;;  %v652_v17 = vld [vmem:[%s6313_s2 + $0xa60] sm:$0xff] }
  0xd6   :  { %1206 = vmatpush.msra.mxu0 %v586_v18  ;;  %1229 = vmatpush.msra.mxu1 %v602_v19  ;;  %v668_v6 = vld [vmem:[%s6313_s2 + $0xae0] sm:$0xff]  ;;  %v193_v18 = vpop.permute.xlu0 %192 }
  0xd7   :  { %1252 = vmatpush.msra.mxu2 %v618_v20  ;;  %1275 = vmatpush.msra.mxu3 %v634_v21  ;;  %v684_v19 = vld [vmem:[%s6313_s2 + $0xb60] sm:$0xff]  ;;  %vm198_vm4 = vcmp.eq.s32.totalorder %v4398_v38, %v193_v18  ;;  %vm199_vm5 = vcmp.eq.s32.totalorder %v4401_v39, %v193_v18  ;;  %v651_v21 = vld [vmem:[%s6313_s2 + $0xa58] sm:$0xff]  ;;  %vm200_vm6 = vcmp.eq.s32.totalorder %v4404_v40, %v193_v18 }
  0xd8   :  { %1207 = vmatpush.msra.mxu0 %v585_v22  ;;  %1230 = vmatpush.msra.mxu1 %v601_v23  ;;  %v700_v20 = vld [vmem:[%s6313_s2 + $0xbe0] sm:$0xff]  ;;  %v667_v22 = vld [vmem:[%s6313_s2 + $0xad8] sm:$0xff]  ;;  %vm201_vm7 = vcmp.eq.s32.totalorder %v4407_v41, %v193_v18  ;;  %v766_v18 = vld [vmem:[%s6313_s2 + $0xdf0] sm:$0xff] }
  0xd9   :  { %1253 = vmatpush.msra.mxu2 %v617_v24  ;;  %1276 = vmatpush.msra.mxu3 %v633_v25  ;;  %v683_v23 = vld [vmem:[%s6313_s2 + $0xb58] sm:$0xff]  ;;  %v650_v25 = vld [vmem:[%s6313_s2 + $0xa50] sm:$0xff] }
  0xda   :  { %1208 = vmatpush.msra.mxu0 %v584_v26  ;;  %1231 = vmatpush.msra.mxu1 %v600_v27  ;;  %v699_v24 = vld [vmem:[%s6313_s2 + $0xbd8] sm:$0xff]  ;;  %v666_v26 = vld [vmem:[%s6313_s2 + $0xad0] sm:$0xff] }
  0xdb   :  { %1254 = vmatpush.msra.mxu2 %v616_v28  ;;  %1277 = vmatpush.msra.mxu3 %v632_v29  ;;  %v682_v27 = vld [vmem:[%s6313_s2 + $0xb50] sm:$0xff]  ;;  %v649_v29 = vld [vmem:[%s6313_s2 + $0xa48] sm:$0xff] }
  0xdc   :  { %1209 = vmatpush.msra.mxu0 %v583_v30  ;;  %1232 = vmatpush.msra.mxu1 %v599_v31  ;;  %v698_v28 = vld [vmem:[%s6313_s2 + $0xbd0] sm:$0xff]  ;;  %v665_v30 = vld [vmem:[%s6313_s2 + $0xac8] sm:$0xff] }
  0xdd   :  { %1255 = vmatpush.msra.mxu2 %v615_v32  ;;  %1278 = vmatpush.msra.mxu3 %v631_v33  ;;  %v681_v31 = vld [vmem:[%s6313_s2 + $0xb48] sm:$0xff]  ;;  %v648_v33 = vld [vmem:[%s6313_s2 + $0xa40] sm:$0xff] }
  0xde   :  { %1210 = vmatpush.msra.mxu0 %v582_v34  ;;  %1233 = vmatpush.msra.mxu1 %v598_v3  ;;  %v697_v32 = vld [vmem:[%s6313_s2 + $0xbc8] sm:$0xff]  ;;  %v664_v34 = vld [vmem:[%s6313_s2 + $0xac0] sm:$0xff] }
  0xdf   :  { %1256 = vmatpush.msra.mxu2 %v614_v35  ;;  %1279 = vmatpush.msra.mxu3 %v630_v36  ;;  %v680_v3 = vld [vmem:[%s6313_s2 + $0xb40] sm:$0xff]  ;;  %v647_v36 = vld [vmem:[%s6313_s2 + $0xa38] sm:$0xff] }
  0xe0   :  { %1211 = vmatpush.msra.mxu0 %v581_v37  ;;  %1234 = vmatpush.msra.mxu1 %v597_v42  ;;  %v696_v35 = vld [vmem:[%s6313_s2 + $0xbc0] sm:$0xff]  ;;  %v663_v37 = vld [vmem:[%s6313_s2 + $0xab8] sm:$0xff] }
  0xe1   :  { %1257 = vmatpush.msra.mxu2 %v613_v43  ;;  %1280 = vmatpush.msra.mxu3 %v629_v44  ;;  %v679_v42 = vld [vmem:[%s6313_s2 + $0xb38] sm:$0xff]  ;;  %v646_v44 = vld [vmem:[%s6313_s2 + $0xa30] sm:$0xff] }
  0xe2   :  { %1212 = vmatpush.msra.mxu0 %v580_v46  ;;  %1235 = vmatpush.msra.mxu1 %v596_v47  ;;  %v695_v43 = vld [vmem:[%s6313_s2 + $0xbb8] sm:$0xff]  ;;  %v662_v46 = vld [vmem:[%s6313_s2 + $0xab0] sm:$0xff] }
  0xe3   :  { %1258 = vmatpush.msra.mxu2 %v612_v48  ;;  %1281 = vmatpush.msra.mxu3 %v628_v49  ;;  %v678_v47 = vld [vmem:[%s6313_s2 + $0xb30] sm:$0xff]  ;;  %v645_v49 = vld [vmem:[%s6313_s2 + $0xa28] sm:$0xff] }
  0xe4   :  { %1213 = vmatpush.msra.mxu0 %v579_v50  ;;  %1236 = vmatpush.msra.mxu1 %v595_v51  ;;  %v694_v48 = vld [vmem:[%s6313_s2 + $0xbb0] sm:$0xff]  ;;  %v661_v50 = vld [vmem:[%s6313_s2 + $0xaa8] sm:$0xff] }
  0xe5   :  { %1259 = vmatpush.msra.mxu2 %v611_v52  ;;  %1282 = vmatpush.msra.mxu3 %v627_v53  ;;  %v677_v51 = vld [vmem:[%s6313_s2 + $0xb28] sm:$0xff]  ;;  %v644_v53 = vld [vmem:[%s6313_s2 + $0xa20] sm:$0xff] }
  0xe6   :  { %1214 = vmatpush.msra.mxu0 %v578_v54  ;;  %1237 = vmatpush.msra.mxu1 %v594_v55  ;;  %v693_v52 = vld [vmem:[%s6313_s2 + $0xba8] sm:$0xff]  ;;  %v660_v54 = vld [vmem:[%s6313_s2 + $0xaa0] sm:$0xff] }
  0xe7   :  { %1260 = vmatpush.msra.mxu2 %v610_v56  ;;  %1283 = vmatpush.msra.mxu3 %v626_v57  ;;  %v676_v55 = vld [vmem:[%s6313_s2 + $0xb20] sm:$0xff]  ;;  %v643_v57 = vld [vmem:[%s6313_s2 + $0xa18] sm:$0xff] }
  0xe8   :  { %1215 = vmatpush.msra.mxu0 %v577_v58  ;;  %1238 = vmatpush.msra.mxu1 %v593_v59  ;;  %v692_v56 = vld [vmem:[%s6313_s2 + $0xba0] sm:$0xff]  ;;  %v659_v58 = vld [vmem:[%s6313_s2 + $0xa98] sm:$0xff] }
  0xe9   :  { %1261 = vmatpush.msra.mxu2 %v609_v60  ;;  %1284 = vmatpush.msra.mxu3 %v625_v61  ;;  %v675_v59 = vld [vmem:[%s6313_s2 + $0xb18] sm:$0xff]  ;;  %v642_v61 = vld [vmem:[%s6313_s2 + $0xa10] sm:$0xff] }
  0xea   :  { %1216 = vmatpush.msra.mxu0 %v576_v62  ;;  %1239 = vmatpush.msra.mxu1 %v592_v63  ;;  %v691_v60 = vld [vmem:[%s6313_s2 + $0xb98] sm:$0xff]  ;;  %v658_v62 = vld [vmem:[%s6313_s2 + $0xa90] sm:$0xff] }
  0xeb   :  { %1262 = vmatpush.msra.mxu2 %v608_v0  ;;  %1285 = vmatpush.msra.mxu3 %v624_v1  ;;  %v674_v63 = vld [vmem:[%s6313_s2 + $0xb10] sm:$0xff]  ;;  %v641_v1 = vld [vmem:[%s6313_s2 + $0xa08] sm:$0xff] }
  0xec   :  { %3622 = vmatmul.msk.f32.vlgmr.msra.gmra.mxu0 %vm194_vm0, %v3916_v45  ;;  %3624 = vmatmul.msk.f32.vlgmr.msra.gmra.mxu1 %vm195_vm1, %v3916_v45  ;;  %v690_v0 = vld [vmem:[%s6313_s2 + $0xb90] sm:$0xff] }
  0xed   :  { %3626 = vmatmul.msk.f32.vlgmr.msra.gmra.mxu2 %vm196_vm2, %v3916_v45  ;;  %3628 = vmatmul.msk.f32.vlgmr.msra.gmra.mxu3 %vm197_vm3, %v3916_v45 }
  0xee   :  { %1293 = vmatpush.msrb.mxu0 %v655_v4  ;;  %1316 = vmatpush.msrb.mxu1 %v671_v5  ;;  %v673_v4 = vld [vmem:[%s6313_s2 + $0xb08] sm:$0xff] }
  0xef   :  { %1339 = vmatpush.msrb.mxu2 %v687_v7  ;;  %1362 = vmatpush.msrb.mxu3 %v703_v8  ;;  %v689_v5 = vld [vmem:[%s6313_s2 + $0xb88] sm:$0xff]  ;;  %v640_v7 = vld [vmem:[%s6313_s2 + $0xa00] sm:$0xff] }
  0xf0   :  { %1294 = vmatpush.msrb.mxu0 %v654_v9  ;;  %1317 = vmatpush.msrb.mxu1 %v670_v10  ;;  %v656_v8 = vld [vmem:[%s6313_s2 + $0xa80] sm:$0xff] }
  0xf1   :  { %1340 = vmatpush.msrb.mxu2 %v686_v11  ;;  %1363 = vmatpush.msrb.mxu3 %v702_v12  ;;  %v672_v9 = vld [vmem:[%s6313_s2 + $0xb00] sm:$0xff]  ;;  %v224_v11 = vpop.permute.xlu1 %223  ;;  %v719_v12 = vld [vmem:[%s6313_s2 + $0xc78] sm:$0xff] }
  0xf2   :  { %1295 = vmatpush.msrb.mxu0 %v653_v13  ;;  %1318 = vmatpush.msrb.mxu1 %v669_v14  ;;  %v688_v10 = vld [vmem:[%s6313_s2 + $0xb80] sm:$0xff]  ;;  %vm228_vm8 = vcmp.eq.s32.totalorder %v4398_v38, %v224_v11  ;;  %vm229_vm9 = vcmp.eq.s32.totalorder %v4401_v39, %v224_v11  ;;  %v735_v13 = vld [vmem:[%s6313_s2 + $0xcf8] sm:$0xff]  ;;  %vm230_vm10 = vcmp.eq.s32.totalorder %v4404_v40, %v224_v11 }
  0xf3   :  { %1341 = vmatpush.msrb.mxu2 %v685_v15  ;;  %1364 = vmatpush.msrb.mxu3 %v701_v16  ;;  %vm231_vm11 = vcmp.eq.s32.totalorder %v4407_v41, %v224_v11  ;;  %v751_v14 = vld [vmem:[%s6313_s2 + $0xd78] sm:$0xff]  ;;  %v718_v16 = vld [vmem:[%s6313_s2 + $0xc70] sm:$0xff]  ;;  %v721_v11 = vld [vmem:[%s6313_s2 + $0xc88] sm:$0xff] }
  0xf4   :  { %1296 = vmatpush.msrb.mxu0 %v652_v17  ;;  %1319 = vmatpush.msrb.mxu1 %v668_v6  ;;  %v767_v15 = vld [vmem:[%s6313_s2 + $0xdf8] sm:$0xff]  ;;  %v734_v17 = vld [vmem:[%s6313_s2 + $0xcf0] sm:$0xff] }
  0xf5   :  { %1342 = vmatpush.msrb.mxu2 %v684_v19  ;;  %1365 = vmatpush.msrb.mxu3 %v700_v20  ;;  %v750_v6 = vld [vmem:[%s6313_s2 + $0xd70] sm:$0xff]  ;;  %v717_v19 = vld [vmem:[%s6313_s2 + $0xc68] sm:$0xff] }
  0xf6   :  { %3623 = vmatmul.msk.f32.gmra.mxu0 %vm198_vm4, %v3916_v45  ;;  %3625 = vmatmul.msk.f32.gmra.mxu1 %vm199_vm5, %v3916_v45  ;;  %v733_v20 = vld [vmem:[%s6313_s2 + $0xce8] sm:$0xff] }
  0xf7   :  { %3627 = vmatmul.msk.f32.gmra.mxu2 %vm200_vm6, %v3916_v45  ;;  %3629 = vmatmul.msk.f32.gmra.mxu3 %vm201_vm7, %v3916_v45 }
  0xf8   :  { %1297 = vmatpush.msrb.mxu0 %v651_v21  ;;  %1320 = vmatpush.msrb.mxu1 %v667_v22  ;;  %v749_v21 = vld [vmem:[%s6313_s2 + $0xd68] sm:$0xff] }
  0xf9   :  { %1343 = vmatpush.msrb.mxu2 %v683_v23  ;;  %1366 = vmatpush.msrb.mxu3 %v699_v24  ;;  %v765_v22 = vld [vmem:[%s6313_s2 + $0xde8] sm:$0xff]  ;;  %v716_v23 = vld [vmem:[%s6313_s2 + $0xc60] sm:$0xff] }
  0xfa   :  { %1298 = vmatpush.msrb.mxu0 %v650_v25  ;;  %1321 = vmatpush.msrb.mxu1 %v666_v26  ;;  %v732_v24 = vld [vmem:[%s6313_s2 + $0xce0] sm:$0xff] }
  0xfb   :  { %1344 = vmatpush.msrb.mxu2 %v682_v27  ;;  %1367 = vmatpush.msrb.mxu3 %v698_v28  ;;  %v748_v25 = vld [vmem:[%s6313_s2 + $0xd60] sm:$0xff]  ;;  %v227_v27 = vpop.permute.xlu2 %226  ;;  %v715_v28 = vld [vmem:[%s6313_s2 + $0xc58] sm:$0xff] }
  0xfc   :  { %1299 = vmatpush.msrb.mxu0 %v649_v29  ;;  %1322 = vmatpush.msrb.mxu1 %v665_v30  ;;  %v764_v26 = vld [vmem:[%s6313_s2 + $0xde0] sm:$0xff]  ;;  %vm232_vm12 = vcmp.eq.s32.totalorder %v4398_v38, %v227_v27  ;;  %vm233_vm13 = vcmp.eq.s32.totalorder %v4401_v39, %v227_v27  ;;  %v731_v29 = vld [vmem:[%s6313_s2 + $0xcd8] sm:$0xff]  ;;  %vm234_vm14 = vcmp.eq.s32.totalorder %v4404_v40, %v227_v27 }
  0xfd   :  { %1345 = vmatpush.msrb.mxu2 %v681_v31  ;;  %1368 = vmatpush.msrb.mxu3 %v697_v32  ;;  %vm235_vm15 = vcmp.eq.s32.totalorder %v4407_v41, %v227_v27  ;;  %v747_v30 = vld [vmem:[%s6313_s2 + $0xd58] sm:$0xff]  ;;  %v714_v32 = vld [vmem:[%s6313_s2 + $0xc50] sm:$0xff]  ;;  %v797_v27 = vld [vmem:[%s6313_s2 + $0xee8] sm:$0xff] }
  0xfe   :  { %1300 = vmatpush.msrb.mxu0 %v648_v33  ;;  %1323 = vmatpush.msrb.mxu1 %v664_v34  ;;  %v763_v31 = vld [vmem:[%s6313_s2 + $0xdd8] sm:$0xff]  ;;  %v730_v33 = vld [vmem:[%s6313_s2 + $0xcd0] sm:$0xff] }
  0xff   :  { %1346 = vmatpush.msrb.mxu2 %v680_v3  ;;  %1369 = vmatpush.msrb.mxu3 %v696_v35  ;;  %v746_v34 = vld [vmem:[%s6313_s2 + $0xd50] sm:$0xff]  ;;  %v713_v35 = vld [vmem:[%s6313_s2 + $0xc48] sm:$0xff] }
 0x100   :  { %1301 = vmatpush.msrb.mxu0 %v647_v36  ;;  %1324 = vmatpush.msrb.mxu1 %v663_v37  ;;  %v762_v3 = vld [vmem:[%s6313_s2 + $0xdd0] sm:$0xff]  ;;  %v729_v36 = vld [vmem:[%s6313_s2 + $0xcc8] sm:$0xff] }
 0x101   :  { %1347 = vmatpush.msrb.mxu2 %v679_v42  ;;  %1370 = vmatpush.msrb.mxu3 %v695_v43  ;;  %v745_v37 = vld [vmem:[%s6313_s2 + $0xd48] sm:$0xff]  ;;  %v712_v43 = vld [vmem:[%s6313_s2 + $0xc40] sm:$0xff] }
 0x102   :  { %1302 = vmatpush.msrb.mxu0 %v646_v44  ;;  %1325 = vmatpush.msrb.mxu1 %v662_v46  ;;  %v761_v42 = vld [vmem:[%s6313_s2 + $0xdc8] sm:$0xff]  ;;  %v728_v44 = vld [vmem:[%s6313_s2 + $0xcc0] sm:$0xff] }
 0x103   :  { %1348 = vmatpush.msrb.mxu2 %v678_v47  ;;  %1371 = vmatpush.msrb.mxu3 %v694_v48  ;;  %v744_v46 = vld [vmem:[%s6313_s2 + $0xd40] sm:$0xff]  ;;  %v711_v48 = vld [vmem:[%s6313_s2 + $0xc38] sm:$0xff] }
 0x104   :  { %1303 = vmatpush.msrb.mxu0 %v645_v49  ;;  %1326 = vmatpush.msrb.mxu1 %v661_v50  ;;  %v760_v47 = vld [vmem:[%s6313_s2 + $0xdc0] sm:$0xff]  ;;  %v727_v49 = vld [vmem:[%s6313_s2 + $0xcb8] sm:$0xff] }
 0x105   :  { %1349 = vmatpush.msrb.mxu2 %v677_v51  ;;  %1372 = vmatpush.msrb.mxu3 %v693_v52  ;;  %v743_v50 = vld [vmem:[%s6313_s2 + $0xd38] sm:$0xff]  ;;  %v710_v52 = vld [vmem:[%s6313_s2 + $0xc30] sm:$0xff] }
 0x106   :  { %1304 = vmatpush.msrb.mxu0 %v644_v53  ;;  %1327 = vmatpush.msrb.mxu1 %v660_v54  ;;  %v759_v51 = vld [vmem:[%s6313_s2 + $0xdb8] sm:$0xff]  ;;  %v726_v53 = vld [vmem:[%s6313_s2 + $0xcb0] sm:$0xff] }
 0x107   :  { %1350 = vmatpush.msrb.mxu2 %v676_v55  ;;  %1373 = vmatpush.msrb.mxu3 %v692_v56  ;;  %v742_v54 = vld [vmem:[%s6313_s2 + $0xd30] sm:$0xff]  ;;  %v709_v56 = vld [vmem:[%s6313_s2 + $0xc28] sm:$0xff] }
 0x108   :  { %1305 = vmatpush.msrb.mxu0 %v643_v57  ;;  %1328 = vmatpush.msrb.mxu1 %v659_v58  ;;  %v758_v55 = vld [vmem:[%s6313_s2 + $0xdb0] sm:$0xff]  ;;  %v725_v57 = vld [vmem:[%s6313_s2 + $0xca8] sm:$0xff] }
 0x109   :  { %1351 = vmatpush.msrb.mxu2 %v675_v59  ;;  %1374 = vmatpush.msrb.mxu3 %v691_v60  ;;  %v741_v58 = vld [vmem:[%s6313_s2 + $0xd28] sm:$0xff]  ;;  %v708_v60 = vld [vmem:[%s6313_s2 + $0xc20] sm:$0xff] }
 0x10a   :  { %1306 = vmatpush.msrb.mxu0 %v642_v61  ;;  %1329 = vmatpush.msrb.mxu1 %v658_v62  ;;  %v757_v59 = vld [vmem:[%s6313_s2 + $0xda8] sm:$0xff]  ;;  %v724_v61 = vld [vmem:[%s6313_s2 + $0xca0] sm:$0xff] }
 0x10b   :  { %1352 = vmatpush.msrb.mxu2 %v674_v63  ;;  %1375 = vmatpush.msrb.mxu3 %v690_v0  ;;  %v740_v62 = vld [vmem:[%s6313_s2 + $0xd20] sm:$0xff]  ;;  %v707_v0 = vld [vmem:[%s6313_s2 + $0xc18] sm:$0xff] }
 0x10c   :  { %1307 = vmatpush.msrb.mxu0 %v641_v1  ;;  %1330 = vmatpush.msrb.mxu1 %v657_v2  ;;  %v756_v63 = vld [vmem:[%s6313_s2 + $0xda0] sm:$0xff]  ;;  %v723_v1 = vld [vmem:[%s6313_s2 + $0xc98] sm:$0xff] }
 0x10d   :  { %1353 = vmatpush.msrb.mxu2 %v673_v4  ;;  %1376 = vmatpush.msrb.mxu3 %v689_v5  ;;  %v739_v2 = vld [vmem:[%s6313_s2 + $0xd18] sm:$0xff]  ;;  %v706_v5 = vld [vmem:[%s6313_s2 + $0xc10] sm:$0xff] }
 0x10e   :  { %1308 = vmatpush.msrb.mxu0 %v640_v7  ;;  %1331 = vmatpush.msrb.mxu1 %v656_v8  ;;  %v755_v4 = vld [vmem:[%s6313_s2 + $0xd98] sm:$0xff]  ;;  %v722_v7 = vld [vmem:[%s6313_s2 + $0xc90] sm:$0xff] }
 0x10f   :  { %1354 = vmatpush.msrb.mxu2 %v672_v9  ;;  %1377 = vmatpush.msrb.mxu3 %v688_v10  ;;  %v738_v8 = vld [vmem:[%s6313_s2 + $0xd10] sm:$0xff]  ;;  %v705_v10 = vld [vmem:[%s6313_s2 + $0xc08] sm:$0xff] }
 0x110   :  { %3630 = vmatmul.msk.f32.vlgmr.msrb.gmra.mxu0 %vm228_vm8, %v3916_v45  ;;  %3632 = vmatmul.msk.f32.vlgmr.msrb.gmra.mxu1 %vm229_vm9, %v3916_v45  ;;  %v754_v9 = vld [vmem:[%s6313_s2 + $0xd90] sm:$0xff] }
 0x111   :  { %3634 = vmatmul.msk.f32.vlgmr.msrb.gmra.mxu2 %vm230_vm10, %v3916_v45  ;;  %3636 = vmatmul.msk.f32.vlgmr.msrb.gmra.mxu3 %vm231_vm11, %v3916_v45 }
 0x112   :  { %1385 = vmatpush.msra.mxu0 %v719_v12  ;;  %1408 = vmatpush.msra.mxu1 %v735_v13  ;;  %v737_v12 = vld [vmem:[%s6313_s2 + $0xd08] sm:$0xff] }
 0x113   :  { %1431 = vmatpush.msra.mxu2 %v751_v14  ;;  %1454 = vmatpush.msra.mxu3 %v767_v15  ;;  %v753_v13 = vld [vmem:[%s6313_s2 + $0xd88] sm:$0xff]  ;;  %v704_v14 = vld [vmem:[%s6313_s2 + $0xc00] sm:$0xff] }
 0x114   :  { %1386 = vmatpush.msra.mxu0 %v718_v16  ;;  %1409 = vmatpush.msra.mxu1 %v734_v17  ;;  %v720_v15 = vld [vmem:[%s6313_s2 + $0xc80] sm:$0xff]  ;;  %v258_v16 = vpop.permute.xlu0 %257 }
 0x115   :  { %1432 = vmatpush.msra.mxu2 %v750_v6  ;;  %1455 = vmatpush.msra.mxu3 %v766_v18  ;;  %v736_v17 = vld [vmem:[%s6313_s2 + $0xd00] sm:$0xff]  ;;  %vm262_vm0 = vcmp.eq.s32.totalorder %v4398_v38, %v258_v16  ;;  %vm263_vm1 = vcmp.eq.s32.totalorder %v4401_v39, %v258_v16  ;;  %v783_v18 = vld [vmem:[%s6313_s2 + $0xe78] sm:$0xff]  ;;  %vm264_vm2 = vcmp.eq.s32.totalorder %v4404_v40, %v258_v16 }
 0x116   :  { %1387 = vmatpush.msra.mxu0 %v717_v19  ;;  %1410 = vmatpush.msra.mxu1 %v733_v20  ;;  %v752_v6 = vld [vmem:[%s6313_s2 + $0xd80] sm:$0xff]  ;;  %v799_v19 = vld [vmem:[%s6313_s2 + $0xef8] sm:$0xff]  ;;  %vm265_vm3 = vcmp.eq.s32.totalorder %v4407_v41, %v258_v16  ;;  %v818_v16 = vld [vmem:[%s6313_s2 + $0xf90] sm:$0xff] }
 0x117   :  { %1433 = vmatpush.msra.mxu2 %v749_v21  ;;  %1456 = vmatpush.msra.mxu3 %v765_v22  ;;  %v815_v20 = vld [vmem:[%s6313_s2 + $0xf78] sm:$0xff]  ;;  %v782_v22 = vld [vmem:[%s6313_s2 + $0xe70] sm:$0xff] }
 0x118   :  { %1388 = vmatpush.msra.mxu0 %v716_v23  ;;  %1411 = vmatpush.msra.mxu1 %v732_v24  ;;  %v831_v21 = vld [vmem:[%s6313_s2 + $0xff8] sm:$0xff]  ;;  %v798_v23 = vld [vmem:[%s6313_s2 + $0xef0] sm:$0xff] }
 0x119   :  { %1434 = vmatpush.msra.mxu2 %v748_v25  ;;  %1457 = vmatpush.msra.mxu3 %v764_v26  ;;  %v814_v24 = vld [vmem:[%s6313_s2 + $0xf70] sm:$0xff]  ;;  %v781_v26 = vld [vmem:[%s6313_s2 + $0xe68] sm:$0xff] }
 0x11a   :  { %3631 = vmatmul.msk.f32.gmra.mxu0 %vm232_vm12, %v3916_v45  ;;  %3633 = vmatmul.msk.f32.gmra.mxu1 %vm233_vm13, %v3916_v45  ;;  %v830_v25 = vld [vmem:[%s6313_s2 + $0xff0] sm:$0xff] }
 0x11b   :  { %3635 = vmatmul.msk.f32.gmra.mxu2 %vm234_vm14, %v3916_v45  ;;  %3637 = vmatmul.msk.f32.gmra.mxu3 %vm235_vm15, %v3916_v45 }
 0x11c   :  { %1389 = vmatpush.msra.mxu0 %v715_v28  ;;  %1412 = vmatpush.msra.mxu1 %v731_v29  ;;  %v813_v28 = vld [vmem:[%s6313_s2 + $0xf68] sm:$0xff] }
 0x11d   :  { %1435 = vmatpush.msra.mxu2 %v747_v30  ;;  %1458 = vmatpush.msra.mxu3 %v763_v31  ;;  %v829_v29 = vld [vmem:[%s6313_s2 + $0xfe8] sm:$0xff]  ;;  %v780_v30 = vld [vmem:[%s6313_s2 + $0xe60] sm:$0xff] }
 0x11e   :  { %1390 = vmatpush.msra.mxu0 %v714_v32  ;;  %1413 = vmatpush.msra.mxu1 %v730_v33  ;;  %v796_v31 = vld [vmem:[%s6313_s2 + $0xee0] sm:$0xff]  ;;  %v261_v32 = vpop.permute.xlu1 %260 }
 0x11f   :  { %1436 = vmatpush.msra.mxu2 %v746_v34  ;;  %1459 = vmatpush.msra.mxu3 %v762_v3  ;;  %v812_v33 = vld [vmem:[%s6313_s2 + $0xf60] sm:$0xff]  ;;  %vm266_vm4 = vcmp.eq.s32.totalorder %v4398_v38, %v261_v32  ;;  %vm267_vm5 = vcmp.eq.s32.totalorder %v4401_v39, %v261_v32  ;;  %v779_v3 = vld [vmem:[%s6313_s2 + $0xe58] sm:$0xff]  ;;  %vm268_vm6 = vcmp.eq.s32.totalorder %v4404_v40, %v261_v32 }
 0x120   :  { %1391 = vmatpush.msra.mxu0 %v713_v35  ;;  %1414 = vmatpush.msra.mxu1 %v729_v36  ;;  %v828_v34 = vld [vmem:[%s6313_s2 + $0xfe0] sm:$0xff]  ;;  %v795_v35 = vld [vmem:[%s6313_s2 + $0xed8] sm:$0xff]  ;;  %vm269_vm7 = vcmp.eq.s32.totalorder %v4407_v41, %v261_v32 }
 0x121   :  { %1437 = vmatpush.msra.mxu2 %v745_v37  ;;  %1460 = vmatpush.msra.mxu3 %v761_v42  ;;  %v811_v36 = vld [vmem:[%s6313_s2 + $0xf58] sm:$0xff]  ;;  %v778_v42 = vld [vmem:[%s6313_s2 + $0xe50] sm:$0xff] }
 0x122   :  { %1392 = vmatpush.msra.mxu0 %v712_v43  ;;  %1415 = vmatpush.msra.mxu1 %v728_v44  ;;  %v827_v37 = vld [vmem:[%s6313_s2 + $0xfd8] sm:$0xff]  ;;  %v794_v43 = vld [vmem:[%s6313_s2 + $0xed0] sm:$0xff] }
 0x123   :  { %1438 = vmatpush.msra.mxu2 %v744_v46  ;;  %1461 = vmatpush.msra.mxu3 %v760_v47  ;;  %v810_v44 = vld [vmem:[%s6313_s2 + $0xf50] sm:$0xff]  ;;  %v777_v47 = vld [vmem:[%s6313_s2 + $0xe48] sm:$0xff] }
 0x124   :  { %1393 = vmatpush.msra.mxu0 %v711_v48  ;;  %1416 = vmatpush.msra.mxu1 %v727_v49  ;;  %v826_v46 = vld [vmem:[%s6313_s2 + $0xfd0] sm:$0xff]  ;;  %v793_v48 = vld [vmem:[%s6313_s2 + $0xec8] sm:$0xff] }
 0x125   :  { %1439 = vmatpush.msra.mxu2 %v743_v50  ;;  %1462 = vmatpush.msra.mxu3 %v759_v51  ;;  %v809_v49 = vld [vmem:[%s6313_s2 + $0xf48] sm:$0xff]  ;;  %v776_v51 = vld [vmem:[%s6313_s2 + $0xe40] sm:$0xff] }
 0x126   :  { %1394 = vmatpush.msra.mxu0 %v710_v52  ;;  %1417 = vmatpush.msra.mxu1 %v726_v53  ;;  %v825_v50 = vld [vmem:[%s6313_s2 + $0xfc8] sm:$0xff]  ;;  %v792_v52 = vld [vmem:[%s6313_s2 + $0xec0] sm:$0xff] }
 0x127   :  { %1440 = vmatpush.msra.mxu2 %v742_v54  ;;  %1463 = vmatpush.msra.mxu3 %v758_v55  ;;  %v808_v53 = vld [vmem:[%s6313_s2 + $0xf40] sm:$0xff]  ;;  %v775_v55 = vld [vmem:[%s6313_s2 + $0xe38] sm:$0xff] }
 0x128   :  { %1395 = vmatpush.msra.mxu0 %v709_v56  ;;  %1418 = vmatpush.msra.mxu1 %v725_v57  ;;  %v824_v54 = vld [vmem:[%s6313_s2 + $0xfc0] sm:$0xff]  ;;  %v791_v56 = vld [vmem:[%s6313_s2 + $0xeb8] sm:$0xff] }
 0x129   :  { %1441 = vmatpush.msra.mxu2 %v741_v58  ;;  %1464 = vmatpush.msra.mxu3 %v757_v59  ;;  %v807_v57 = vld [vmem:[%s6313_s2 + $0xf38] sm:$0xff]  ;;  %v774_v59 = vld [vmem:[%s6313_s2 + $0xe30] sm:$0xff] }
 0x12a   :  { %1396 = vmatpush.msra.mxu0 %v708_v60  ;;  %1419 = vmatpush.msra.mxu1 %v724_v61  ;;  %v823_v58 = vld [vmem:[%s6313_s2 + $0xfb8] sm:$0xff]  ;;  %v790_v60 = vld [vmem:[%s6313_s2 + $0xeb0] sm:$0xff] }
 0x12b   :  { %1442 = vmatpush.msra.mxu2 %v740_v62  ;;  %1465 = vmatpush.msra.mxu3 %v756_v63  ;;  %v806_v61 = vld [vmem:[%s6313_s2 + $0xf30] sm:$0xff]  ;;  %v773_v63 = vld [vmem:[%s6313_s2 + $0xe28] sm:$0xff] }
 0x12c   :  { %1397 = vmatpush.msra.mxu0 %v707_v0  ;;  %1420 = vmatpush.msra.mxu1 %v723_v1  ;;  %v822_v62 = vld [vmem:[%s6313_s2 + $0xfb0] sm:$0xff]  ;;  %v789_v0 = vld [vmem:[%s6313_s2 + $0xea8] sm:$0xff] }
 0x12d   :  { %1443 = vmatpush.msra.mxu2 %v739_v2  ;;  %1466 = vmatpush.msra.mxu3 %v755_v4  ;;  %v805_v1 = vld [vmem:[%s6313_s2 + $0xf28] sm:$0xff]  ;;  %v772_v4 = vld [vmem:[%s6313_s2 + $0xe20] sm:$0xff] }
 0x12e   :  { %1398 = vmatpush.msra.mxu0 %v706_v5  ;;  %1421 = vmatpush.msra.mxu1 %v722_v7  ;;  %v821_v2 = vld [vmem:[%s6313_s2 + $0xfa8] sm:$0xff]  ;;  %v788_v5 = vld [vmem:[%s6313_s2 + $0xea0] sm:$0xff] }
 0x12f   :  { %1444 = vmatpush.msra.mxu2 %v738_v8  ;;  %1467 = vmatpush.msra.mxu3 %v754_v9  ;;  %v804_v7 = vld [vmem:[%s6313_s2 + $0xf20] sm:$0xff]  ;;  %v771_v9 = vld [vmem:[%s6313_s2 + $0xe18] sm:$0xff] }
 0x130   :  { %1399 = vmatpush.msra.mxu0 %v705_v10  ;;  %1422 = vmatpush.msra.mxu1 %v721_v11  ;;  %v820_v8 = vld [vmem:[%s6313_s2 + $0xfa0] sm:$0xff]  ;;  %v787_v10 = vld [vmem:[%s6313_s2 + $0xe98] sm:$0xff] }
 0x131   :  { %1445 = vmatpush.msra.mxu2 %v737_v12  ;;  %1468 = vmatpush.msra.mxu3 %v753_v13  ;;  %v803_v11 = vld [vmem:[%s6313_s2 + $0xf18] sm:$0xff]  ;;  %v770_v13 = vld [vmem:[%s6313_s2 + $0xe10] sm:$0xff] }
 0x132   :  { %1400 = vmatpush.msra.mxu0 %v704_v14  ;;  %1423 = vmatpush.msra.mxu1 %v720_v15  ;;  %v819_v12 = vld [vmem:[%s6313_s2 + $0xf98] sm:$0xff]  ;;  %v786_v14 = vld [vmem:[%s6313_s2 + $0xe90] sm:$0xff] }
 0x133   :  { %1446 = vmatpush.msra.mxu2 %v736_v17  ;;  %1469 = vmatpush.msra.mxu3 %v752_v6  ;;  %v802_v15 = vld [vmem:[%s6313_s2 + $0xf10] sm:$0xff]  ;;  %v769_v17 = vld [vmem:[%s6313_s2 + $0xe08] sm:$0xff] }
 0x134   :  { %3638 = vmatmul.msk.f32.vlgmr.msra.gmra.mxu0 %vm262_vm0, %v3916_v45  ;;  %3640 = vmatmul.msk.f32.vlgmr.msra.gmra.mxu1 %vm263_vm1, %v3916_v45  ;;  %v785_v6 = vld [vmem:[%s6313_s2 + $0xe88] sm:$0xff]  ;;  %vm1570_vm0 = vcmask 261120  }
 0x135   :  { %3642 = vmatmul.msk.f32.vlgmr.msra.gmra.mxu2 %vm264_vm2, %v3916_v45  ;;  %3644 = vmatmul.msk.f32.vlgmr.msra.gmra.mxu3 %vm265_vm3, %v3916_v45 }
 0x136   :  { %1477 = vmatpush.msrb.mxu0 %v783_v18  ;;  %1500 = vmatpush.msrb.mxu1 %v799_v19  ;;  %v801_v18 = vld [vmem:[%s6313_s2 + $0xf08] sm:$0xff] }
 0x137   :  { %1523 = vmatpush.msrb.mxu2 %v815_v20  ;;  %1546 = vmatpush.msrb.mxu3 %v831_v21  ;;  %v817_v19 = vld [vmem:[%s6313_s2 + $0xf88] sm:$0xff]  ;;  %v850_v20 = vpop.f32.mrf.mxu0  ;;  %v768_v21 = vld [vmem:[%s6313_s2 + $0xe00] sm:$0xff] }
 0x138   :  { %1478 = vmatpush.msrb.mxu0 %v782_v22  ;;  %1501 = vmatpush.msrb.mxu1 %v798_v23  ;;  %v784_v22 = vld [vmem:[%s6313_s2 + $0xe80] sm:$0xff]  ;;  %v292_v23 = vpop.permute.xlu2 %291 }
 0x139   :  { %1524 = vmatpush.msrb.mxu2 %v814_v24  ;;  %1547 = vmatpush.msrb.mxu3 %v830_v25  ;;  %v800_v24 = vld [vmem:[%s6313_s2 + $0xf00] sm:$0xff]  ;;  %vm296_vm8 = vcmp.eq.s32.totalorder %v4398_v38, %v292_v23  ;;  %vm297_vm9 = vcmp.eq.s32.totalorder %v4401_v39, %v292_v23  ;;  %vm298_vm10 = vcmp.eq.s32.totalorder %v4404_v40, %v292_v23 }
 0x13a   :  { %1479 = vmatpush.msrb.mxu0 %v781_v26  ;;  %1502 = vmatpush.msrb.mxu1 %v797_v27  ;;  %v816_v25 = vld [vmem:[%s6313_s2 + $0xf80] sm:$0xff]  ;;  %v873_v26 = vpop.f32.mrf.mxu1  ;;  %vm299_vm11 = vcmp.eq.s32.totalorder %v4407_v41, %v292_v23  ;;  %v896_v27 = vpop.f32.mrf.mxu2 }
 0x13b   :  { %1525 = vmatpush.msrb.mxu2 %v813_v28  ;;  %1548 = vmatpush.msrb.mxu3 %v829_v29  ;;  %v295_v28 = vpop.permute.xlu0 %294  ;;  %v919_v29 = vpop.f32.mrf.mxu3 }
 0x13c   :  { %1480 = vmatpush.msrb.mxu0 %v780_v30  ;;  %1503 = vmatpush.msrb.mxu1 %v796_v31  ;;  %vm300_vm12 = vcmp.eq.s32.totalorder %v4398_v38, %v295_v28  ;;  %vm301_vm13 = vcmp.eq.s32.totalorder %v4401_v39, %v295_v28  ;;  %vm302_vm14 = vcmp.eq.s32.totalorder %v4404_v40, %v295_v28  ;;  %v832_v40 = vld [vmem:[%s6312_s1] sm:$0xff] }
 0x13d   :  { %1526 = vmatpush.msrb.mxu2 %v812_v33  ;;  %1549 = vmatpush.msrb.mxu3 %v828_v34  ;;  %vm303_vm15 = vcmp.eq.s32.totalorder %v4407_v41, %v295_v28 }
 0x13e   :  { %3639 = vmatmul.msk.f32.gmra.mxu0 %vm266_vm4, %v3916_v45  ;;  %3641 = vmatmul.msk.f32.gmra.mxu1 %vm267_vm5, %v3916_v45 }
 0x13f   :  { %3643 = vmatmul.msk.f32.gmra.mxu2 %vm268_vm6, %v3916_v45  ;;  %3645 = vmatmul.msk.f32.gmra.mxu3 %vm269_vm7, %v3916_v45  ;;  %v853_v30 = vpop.f32.mrf.mxu0 }
 0x140   :  { %1481 = vmatpush.msrb.mxu0 %v779_v3  ;;  %1504 = vmatpush.msrb.mxu1 %v795_v35 }
 0x141   :  { %1527 = vmatpush.msrb.mxu2 %v811_v36  ;;  %1550 = vmatpush.msrb.mxu3 %v827_v37 }
 0x142   :  { %1482 = vmatpush.msrb.mxu0 %v778_v42  ;;  %1505 = vmatpush.msrb.mxu1 %v794_v43  ;;  %v876_v31 = vpop.f32.mrf.mxu1  ;;  %v899_v32 = vpop.f32.mrf.mxu2 }
 0x143   :  { %1528 = vmatpush.msrb.mxu2 %v810_v44  ;;  %1551 = vmatpush.msrb.mxu3 %v826_v46  ;;  %v922_v33 = vpop.f32.mrf.mxu3 }
 0x144   :  { %1483 = vmatpush.msrb.mxu0 %v777_v47  ;;  %1506 = vmatpush.msrb.mxu1 %v793_v48 }
 0x145   :  { %1529 = vmatpush.msrb.mxu2 %v809_v49  ;;  %1552 = vmatpush.msrb.mxu3 %v825_v50 }
 0x146   :  { %1484 = vmatpush.msrb.mxu0 %v776_v51  ;;  %1507 = vmatpush.msrb.mxu1 %v792_v52  ;;  %v854_v51 = vadd.f32 %v853_v30, %v832_v40 }
 0x147   :  { %1530 = vmatpush.msrb.mxu2 %v808_v53  ;;  %1553 = vmatpush.msrb.mxu3 %v824_v54  ;;  %v942_v34 = vpop.f32.mrf.mxu0 }
 0x148   :  { %1485 = vmatpush.msrb.mxu0 %v775_v55  ;;  %1508 = vmatpush.msrb.mxu1 %v791_v56  ;;  %v877_v56 = vadd.f32 %v876_v31, %v854_v51 }
 0x149   :  { %1531 = vmatpush.msrb.mxu2 %v807_v57  ;;  %1554 = vmatpush.msrb.mxu3 %v823_v58 }
 0x14a   :  { %1486 = vmatpush.msrb.mxu0 %v774_v59  ;;  %1509 = vmatpush.msrb.mxu1 %v790_v60  ;;  %v965_v3 = vpop.f32.mrf.mxu1  ;;  %v988_v38 = vpop.f32.mrf.mxu2  ;;  %v900_v59 = vadd.f32 %v899_v32, %v877_v56 }
 0x14b   :  { %1532 = vmatpush.msrb.mxu2 %v806_v61  ;;  %1555 = vmatpush.msrb.mxu3 %v822_v62  ;;  %v1011_v35 = vpop.f32.mrf.mxu3 }
 0x14c   :  { %1487 = vmatpush.msrb.mxu0 %v773_v63  ;;  %1510 = vmatpush.msrb.mxu1 %v789_v0  ;;  %v923_v63 = vadd.f32 %v922_v33, %v900_v59 }
 0x14d   :  { %1533 = vmatpush.msrb.mxu2 %v805_v1  ;;  %1556 = vmatpush.msrb.mxu3 %v821_v2 }
 0x14e   :  { %1488 = vmatpush.msrb.mxu0 %v772_v4  ;;  %1511 = vmatpush.msrb.mxu1 %v788_v5 }
 0x14f   :  { %1534 = vmatpush.msrb.mxu2 %v804_v7  ;;  %1557 = vmatpush.msrb.mxu3 %v820_v8  ;;  %v945_v39 = vpop.f32.mrf.mxu0 }
 0x150   :  { %1489 = vmatpush.msrb.mxu0 %v771_v9  ;;  %1512 = vmatpush.msrb.mxu1 %v787_v10  ;;  %v946_v1 = vadd.f32 %v945_v39, %v923_v63 }
 0x151   :  { %1535 = vmatpush.msrb.mxu2 %v803_v11  ;;  %1558 = vmatpush.msrb.mxu3 %v819_v12 }
 0x152   :  { %1490 = vmatpush.msrb.mxu0 %v770_v13  ;;  %1513 = vmatpush.msrb.mxu1 %v786_v14  ;;  %v968_v36 = vpop.f32.mrf.mxu1  ;;  %v991_v37 = vpop.f32.mrf.mxu2 }
 0x153   :  { %1536 = vmatpush.msrb.mxu2 %v802_v15  ;;  %1559 = vmatpush.msrb.mxu3 %v818_v16  ;;  %v1014_v42 = vpop.f32.mrf.mxu3  ;;  %v969_v7 = vadd.f32 %v968_v36, %v946_v1 }
 0x154   :  { %1491 = vmatpush.msrb.mxu0 %v769_v17  ;;  %1514 = vmatpush.msrb.mxu1 %v785_v6 }
 0x155   :  { %1537 = vmatpush.msrb.mxu2 %v801_v18  ;;  %1560 = vmatpush.msrb.mxu3 %v817_v19  ;;  %v992_v9 = vadd.f32 %v991_v37, %v969_v7 }
 0x156   :  { %1492 = vmatpush.msrb.mxu0 %v768_v21  ;;  %1515 = vmatpush.msrb.mxu1 %v784_v22 }
 0x157   :  { %1538 = vmatpush.msrb.mxu2 %v800_v24  ;;  %1561 = vmatpush.msrb.mxu3 %v816_v25  ;;  %v1034_v43 = vpop.f32.mrf.mxu0  ;;  %v1015_v14 = vadd.f32 %v1014_v42, %v992_v9 }
 0x158   :  { %3646 = vmatmul.msk.f32.vlgmr.msrb.gmra.mxu0 %vm296_vm8, %v3916_v45  ;;  %3648 = vmatmul.msk.f32.vlgmr.msrb.gmra.mxu1 %vm297_vm9, %v3916_v45  ;;  %vm1709_vm8 = vcmask 64512  }
 0x159   :  { %3650 = vmatmul.msk.f32.vlgmr.msrb.gmra.mxu2 %vm298_vm10, %v3916_v45  ;;  %3652 = vmatmul.msk.f32.vlgmr.msrb.gmra.mxu3 %vm299_vm11, %v3916_v45 }
 0x15a   :  { %v1057_v44 = vpop.f32.mrf.mxu1  ;;  %v1080_v41 = vpop.f32.mrf.mxu2 }
 0x15b   :  { %v1103_v46 = vpop.f32.mrf.mxu3 }
 0x15f   :  { %v1037_v47 = vpop.f32.mrf.mxu0 }
 0x160   :  { %3647 = vmatmul.msk.f32.gmra.mxu0 %vm300_vm12, %v3916_v45  ;;  %3649 = vmatmul.msk.f32.gmra.mxu1 %vm301_vm13, %v3916_v45  ;;  %v1038_v17 = vadd.f32 %v1037_v47, %v1015_v14 }
 0x161   :  { %3651 = vmatmul.msk.f32.gmra.mxu2 %vm302_vm14, %v3916_v45  ;;  %3653 = vmatmul.msk.f32.gmra.mxu3 %vm303_vm15, %v3916_v45  ;;  %v851_v45 = vadd.f32 %v850_v20, %v832_v40 }
 0x162   :  { %v1060_v49 = vpop.f32.mrf.mxu1  ;;  %v1083_v52 = vpop.f32.mrf.mxu2 }
 0x163   :  { %v874_v48 = vadd.f32 %v873_v26, %v851_v45  ;;  %v1106_v53 = vpop.f32.mrf.mxu3  ;;  %v1061_v20 = vadd.f32 %v1060_v49, %v1038_v17 }
 0x165   :  { %v897_v50 = vadd.f32 %v896_v27, %v874_v48  ;;  %v1084_v22 = vadd.f32 %v1083_v52, %v1061_v20 }
 0x167   :  { %v920_v54 = vadd.f32 %v919_v29, %v897_v50  ;;  %v1126_v55 = vpop.f32.mrf.mxu0  ;;  %v1107_v26 = vadd.f32 %v1106_v53, %v1084_v22 }
 0x169   :  { %v943_v57 = vadd.f32 %v942_v34, %v920_v54 }
 0x16a   :  { %v1149_v58 = vpop.f32.mrf.mxu1  ;;  %v1172_v61 = vpop.f32.mrf.mxu2 }
 0x16b   :  { %v966_v60 = vadd.f32 %v965_v3, %v943_v57  ;;  %v1195_v62 = vpop.f32.mrf.mxu3 }
 0x16d   :  { %v989_v0 = vadd.f32 %v988_v38, %v966_v60 }
 0x16f   :  { %v1129_v2 = vpop.f32.mrf.mxu0  ;;  %v1012_v4 = vadd.f32 %v1011_v35, %v989_v0 }
 0x170   :  { %v1130_v28 = vadd.f32 %v1129_v2, %v1107_v26 }
 0x171   :  { %v1035_v8 = vadd.f32 %v1034_v43, %v1012_v4 }
 0x172   :  { %v1152_v5 = vpop.f32.mrf.mxu1  ;;  %v1175_v10 = vpop.f32.mrf.mxu2 }
 0x173   :  { %v1198_v11 = vpop.f32.mrf.mxu3  ;;  %v1058_v12 = vadd.f32 %v1057_v44, %v1035_v8  ;;  %v1153_v33 = vadd.f32 %v1152_v5, %v1130_v28 }
 0x175   :  { %v1081_v15 = vadd.f32 %v1080_v41, %v1058_v12  ;;  %v1176_v38 = vadd.f32 %v1175_v10, %v1153_v33 }
 0x177   :  { %v1218_v13 = vpop.f32.mrf.mxu0  ;;  %v1104_v6 = vadd.f32 %v1103_v46, %v1081_v15  ;;  %v1199_v37 = vadd.f32 %v1198_v11, %v1176_v38 }
 0x179   :  { %v1127_v21 = vadd.f32 %v1126_v55, %v1104_v6 }
 0x17a   :  { %v1241_v16 = vpop.f32.mrf.mxu1  ;;  %v1264_v18 = vpop.f32.mrf.mxu2 }
 0x17b   :  { %v1287_v19 = vpop.f32.mrf.mxu3  ;;  %v1150_v24 = vadd.f32 %v1149_v58, %v1127_v21 }
 0x17d   :  { %v1173_v27 = vadd.f32 %v1172_v61, %v1150_v24 }
 0x17f   :  { %v1221_v23 = vpop.f32.mrf.mxu0  ;;  %v1196_v31 = vadd.f32 %v1195_v62, %v1173_v27 }
 0x180   :  { %v1222_v43 = vadd.f32 %v1221_v23, %v1199_v37 }
 0x181   :  { %v1219_v34 = vadd.f32 %v1218_v13, %v1196_v31 }
 0x182   :  { %v1244_v25 = vpop.f32.mrf.mxu1  ;;  %v1267_v29 = vpop.f32.mrf.mxu2 }
 0x183   :  { %v1290_v30 = vpop.f32.mrf.mxu3  ;;  %v1242_v35 = vadd.f32 %v1241_v16, %v1219_v34  ;;  %v1245_v46 = vadd.f32 %v1244_v25, %v1222_v43 }
 0x185   :  { %v1265_v42 = vadd.f32 %v1264_v18, %v1242_v35  ;;  %v1268_v47 = vadd.f32 %v1267_v29, %v1245_v46  ;;  %v3917_v29 = vmov 32.0   ;;  %v1633_v46 = vld [vmem:[%s6315_s4 + $0x18] sm:$0xff] }
 0x186   :  { %3795 = vrcp.f32 %v3917_v29  ;;  %1682 = vmatpush.msra.mxu0 %v1633_v46 }
 0x187   :  { %v1288_v40 = vadd.f32 %v1287_v19, %v1265_v42  ;;  %v1291_v52 = vadd.f32 %v1290_v30, %v1268_v47  ;;  %v1631_v47 = vld [vmem:[%s6315_s4 + $0x8] sm:$0xff] }
 0x18c   :  { %v3796_v30 = vpop.eup %3795 }
 0x18d   :  { %v1310_v32 = vpop.f32.mrf.mxu0  ;;  %v1333_v3 = vpop.f32.mrf.mxu1  ;;  %v1578_v31 = vmul.f32 32.0, %v3796_v30  ;;  %vm1582_vm1 = vweird.f32 %v3796_v30 }
 0x18e   :  { %v1311_v45 = vadd.f32 %v1310_v32, %v1288_v40 }
 0x18f   :  { %v1579_v32 = vsub.f32 1.0, %v1578_v31 }
 0x190   :  { %v1334_v50 = vadd.f32 %v1333_v3, %v1311_v45  ;;  %v1632_v45 = vld [vmem:[%s6315_s4 + $0x10] sm:$0xff] }
 0x191   :  { %v1580_v33 = vmul.f32 %v3796_v30, %v1579_v32  ;;  %1683 = vmatpush.msra.mxu0 %v1632_v45 }
 0x193   :  { %v1581_v34 = vadd.f32 %v3796_v30, %v1580_v33  ;;  %1684 = vmatpush.msra.mxu0 %v1631_v47 }
 0x194   :  { %v1356_v39 = vpop.f32.mrf.mxu2  ;;  %v1379_v36 = vpop.f32.mrf.mxu3 }
 0x195   :  { %v1357_v53 = vadd.f32 %v1356_v39, %v1334_v50  ;;  %v5694_v3 = vsel %vm1582_vm1, %v3796_v30, %v1581_v34 }
 0x197   :  { %v1313_v44 = vpop.f32.mrf.mxu0  ;;  %v1336_v41 = vpop.f32.mrf.mxu1  ;;  %v1380_v56 = vadd.f32 %v1379_v36, %v1357_v53 }
 0x198   :  { %v1314_v55 = vadd.f32 %v1313_v44, %v1291_v52 }
 0x19a   :  { %v1337_v59 = vadd.f32 %v1336_v41, %v1314_v55 }
 0x19e   :  { %v1359_v48 = vpop.f32.mrf.mxu2  ;;  %v1382_v49 = vpop.f32.mrf.mxu3 }
 0x19f   :  { %v1360_v61 = vadd.f32 %v1359_v48, %v1337_v59  ;;  %v1630_v48 = vld [vmem:[%s6315_s4] sm:$0xff] }
 0x1a0   :  { %1685 = vmatpush.msra.mxu0 %v1630_v48  ;;  %v1569_v59 = vld [vmem:[%s6314_s3] sm:$0x3] }
 0x1a1   :  { %v1383_v1 = vadd.f32 %v1382_v49, %v1360_v61 }
 0x1b1   :  { %v1402_v51 = vpop.f32.mrf.mxu0  ;;  %v1425_v54 = vpop.f32.mrf.mxu1 }
 0x1b2   :  { %v1403_v60 = vadd.f32 %v1402_v51, %v1380_v56 }
 0x1b4   :  { %v1426_v63 = vadd.f32 %v1425_v54, %v1403_v60 }
 0x1b8   :  { %v1448_v57 = vpop.f32.mrf.mxu2  ;;  %v1471_v58 = vpop.f32.mrf.mxu3 }
 0x1b9   :  { %v1449_v2 = vadd.f32 %v1448_v57, %v1426_v63 }
 0x1bb   :  { %v1405_v62 = vpop.f32.mrf.mxu0  ;;  %v1428_v0 = vpop.f32.mrf.mxu1  ;;  %v1472_v8 = vadd.f32 %v1471_v58, %v1449_v2 }
 0x1bc   :  { %v1406_v4 = vadd.f32 %v1405_v62, %v1383_v1 }
 0x1be   :  { %v1429_v10 = vadd.f32 %v1428_v0, %v1406_v4  ;;  %v1622_v0 = vperm.slane %v1569_v59, 0 }
 0x1c2   :  { %v1451_v5 = vpop.f32.mrf.mxu2  ;;  %v1474_v7 = vpop.f32.mrf.mxu3 }
 0x1c3   :  { %v1452_v13 = vadd.f32 %v1451_v5, %v1429_v10  ;;  %v1625_v5 = vperm.slane %v1569_v59, 1 }
 0x1c5   :  { %v1475_v17 = vadd.f32 %v1474_v7, %v1452_v13 }
 0x1d5   :  { %v1494_v9 = vpop.f32.mrf.mxu0  ;;  %v1517_v12 = vpop.f32.mrf.mxu1 }
 0x1d6   :  { %v1495_v11 = vadd.f32 %v1494_v9, %v1472_v8 }
 0x1d8   :  { %v1518_v14 = vadd.f32 %v1517_v12, %v1495_v11 }
 0x1dc   :  { %v1540_v15 = vpop.f32.mrf.mxu2  ;;  %v1563_v16 = vpop.f32.mrf.mxu3 }
 0x1dd   :  { %v1541_v6 = vadd.f32 %v1540_v15, %v1518_v14  ;;  %v1497_v18 = vpop.f32.mrf.mxu0  ;;  %v1520_v22 = vpop.f32.mrf.mxu1 }
 0x1de   :  { %v1498_v20 = vadd.f32 %v1497_v18, %v1475_v17 }
 0x1df   :  { %v1564_v19 = vadd.f32 %v1563_v16, %v1541_v6  ;;  %v3791_v16 = vld [vmem:[%s6316_s5] ss:$0 sm:$0xff] }
 0x1e0   :  { %v1521_v23 = vadd.f32 %v1520_v22, %v1498_v20 }
 0x1e1   :  { %v1571_v21 = vsel %vm1570_vm0, %v1564_v19, 0.0 }
 0x1e2   :  { %1572 = vadd.xlane.f32.xlu1 %v1571_v21 }
 0x1e4   :  { %v1543_v24 = vpop.f32.mrf.mxu2  ;;  %v1566_v26 = vpop.f32.mrf.mxu3 }
 0x1e5   :  { %v1544_v25 = vadd.f32 %v1543_v24, %v1521_v23 }
 0x1e7   :  { %v1567_v27 = vadd.f32 %v1566_v26, %v1544_v25 }
 0x1e9   :  { %v1574_v28 = vsel %vm1570_vm0, %v1567_v27, 0.0 }
 0x1ea   :  { %1575 = vadd.xlane.f32.xlu2 %v1574_v28 }
 0x255   :  { %v1573_v38 = vpop.xlane.xlu1 %1572 }
 0x256   :  { %v1584_v35 = vmul.f32 %v5694_v3, %v1573_v38 }
 0x258   :  { %v1586_v39 = vsub.f32 %v1564_v19, %v1584_v35 }
 0x25a   :  { %v1588_v36 = vmul.f32 %v1586_v39, %v1586_v39 }
 0x25c   :  { %v1590_v37 = vsel %vm1570_vm0, %v1588_v36, 0.0 }
 0x25d   :  { %1591 = vadd.xlane.f32.xlu0 %v1590_v37  ;;  %v1576_v42 = vpop.xlane.xlu2 %1575 }
 0x25e   :  { %v1585_v43 = vmul.f32 %v5694_v3, %v1576_v42 }
 0x260   :  { %v1587_v44 = vsub.f32 %v1567_v27, %v1585_v43 }
 0x262   :  { %v1589_v40 = vmul.f32 %v1587_v44, %v1587_v44 }
 0x264   :  { %v1593_v41 = vsel %vm1570_vm0, %v1589_v40, 0.0 }
 0x265   :  { %1594 = vadd.xlane.f32.xlu2 %v1593_v41 }
 0x2d0   :  { %v1592_v49 = vpop.xlane.xlu0 %1591 }
 0x2d1   :  { %v1596_v50 = vmul.f32 %v1592_v49, %v5694_v3 }
 0x2d3   :  { %v1598_v51 = vadd.f32 1e-12, %v1596_v50 }
 0x2d5   :  { %3797 = vrsqrt.f32 %v1598_v51  ;;  %vm1606_vm3 = vweird.f32 %v1598_v51 }
 0x2d8   :  { %v1595_v52 = vpop.xlane.xlu2 %1594 }
 0x2d9   :  { %v1597_v53 = vmul.f32 %v1595_v52, %v5694_v3 }
 0x2db   :  { %v3798_v54 = vpop.eup %3797  ;;  %v1599_v55 = vadd.f32 1e-12, %v1597_v53 }
 0x2dc   :  { %v1601_v56 = vmul.f32 %v3798_v54, %v1598_v51  ;;  %vm1607_vm2 = vweird.f32 %v3798_v54 }
 0x2dd   :  { %3799 = vrsqrt.f32 %v1599_v55  ;;  %vm1608_vm4 = vmor %vm1606_vm3, %vm1607_vm2  ;;  %vm1616_vm6 = vweird.f32 %v1599_v55 }
 0x2de   :  { %v1602_v57 = vmul.f32 %v3798_v54, %v1601_v56 }
 0x2e0   :  { %v1603_v58 = vmul.f32 0.5, %v1602_v57 }
 0x2e2   :  { %v1604_v60 = vsub.f32 1.5, %v1603_v58 }
 0x2e3   :  { %v3800_v61 = vpop.eup %3799 }
 0x2e4   :  { %v1605_v62 = vmul.f32 %v3798_v54, %v1604_v60  ;;  %v1611_v63 = vmul.f32 %v3800_v61, %v1599_v55  ;;  %vm1617_vm5 = vweird.f32 %v3800_v61 }
 0x2e5   :  { %vm1618_vm7 = vmor %vm1616_vm6, %vm1617_vm5 }
 0x2e6   :  { %v1609_v1 = vsel %vm1608_vm4, %v3798_v54, %v1605_v62  ;;  %v1612_v2 = vmul.f32 %v3800_v61, %v1611_v63 }
 0x2e7   :  { %v1620_v4 = vmul.f32 %v1609_v1, %v1586_v39 }
 0x2e8   :  { %v1613_v7 = vmul.f32 0.5, %v1612_v2 }
 0x2e9   :  { %v1623_v8 = vmul.f32 %v1622_v0, %v1620_v4 }
 0x2ea   :  { %v1614_v9 = vsub.f32 1.5, %v1613_v7 }
 0x2eb   :  { %v5717_v10 = vadd.f32 %v1625_v5, %v1623_v8 }
 0x2ec   :  { %v1615_v11 = vmul.f32 %v3800_v61, %v1614_v9 }
 0x2ed   :  { %1628 = vst.msk [vmem:[#allocation2] sm:$0xff] %vm1570_vm0, %v5717_v10  ;;  %3654 = vmatmul.msk.f32.vlgmr.msra.gmra.mxu0 %vm1570_vm0, %v5717_v10 }
 0x2ee   :  { %v1619_v12 = vsel %vm1618_vm7, %v3800_v61, %v1615_v11 }
 0x2ef   :  { %v1621_v13 = vmul.f32 %v1619_v12, %v1587_v44 }
 0x2f1   :  { %v1624_v14 = vmul.f32 %v1622_v0, %v1621_v13 }
 0x2f3   :  { %v5723_v15 = vadd.f32 %v1625_v5, %v1624_v14 }
 0x2f5   :  { %1629 = vst.msk [vmem:[#allocation2 + $0x8] sm:$0xff] %vm1570_vm0, %v5723_v15  ;;  %3655 = vmatmul.msk.f32.gmra.mxu0 %vm1570_vm0, %v5723_v15 }
 0x36a   :  { %v1687_v17 = vpop.f32.mrf.mxu0 }
 0x36b   :  { %v5732_v6 = vadd.f32 %v3791_v16, %v1687_v17 }
 0x36d   :  { %1699 = vrot.lane.b32.xlu2 %v5732_v6, %s3918_s16  ;;  %1695 = vrot.lane.b32.xlu1 %v5732_v6, %s3919_s17 }
 0x372   :  { %v1690_v18 = vpop.f32.mrf.mxu0 }
 0x373   :  { %v5738_v19 = vadd.f32 %v3791_v16, %v1690_v18 }
 0x375   :  { %1701 = vrot.lane.b32.xlu0 %v5738_v19, %s3918_s16  ;;  %1705 = vrot.lane.b32.xlu2 %v5738_v19, %s3920_s18 }
 0x376   :  { %1697 = vrot.lane.b32.xlu1 %v5738_v19, %s3919_s17 }
 0x37d   :  { %1703 = vrot.lane.b32.xlu0 %v5732_v6, %s3920_s18 }
 0x37e   :  { %1734 = vrot.lane.b32.xlu1 %v5738_v19, %s3921_s19 }
 0x385   :  { %1707 = vrot.lane.b32.xlu0 %v5732_v6, %s3921_s19 }
 0x3c7   :  { %v5752_v20 = vpop.permute.xlu2 %1699 }
 0x3c8   :  { %1812 = vrot.lane.b32.xlu1 %v5752_v20, %s3921_s19  ;;  %v3766_v7 = vpack.i.bf16 %v5752_v20, %v5738_v19 }
 0x3cf   :  { %v5768_v24 = vpop.permute.xlu2 %1705 }
 0x3df   :  { %v5756_v21 = vpop.permute.xlu1 %1695 }
 0x3e0   :  { %1760 = vrot.lane.b32.xlu2 %v5756_v21, %s3921_s19  ;;  %v3761_v4 = vpack.i.bf16 %v5756_v21, %v5732_v6 }
 0x3e7   :  { %v5760_v22 = vpop.permute.xlu0 %1701 }
 0x3e8   :  { %v5762_v23 = vpop.permute.xlu1 %1697  ;;  %1838 = vrot.lane.b32.xlu0 %v5760_v22, %s3921_s19 }
 0x3e9   :  { %1786 = vrot.lane.b32.xlu2 %v5762_v23, %s3921_s19 }
 0x3ef   :  { %v5770_v25 = vpop.permute.xlu0 %1703 }
 0x3f0   :  { %v1735_v26 = vpop.permute.xlu1 %1734  ;;  %1890 = vrot.lane.b32.xlu0 %v5768_v24, %s3921_s19  ;;  %1864 = vrot.lane.b32.xlu1 %v5770_v25, %s3921_s19 }
 0x3f1   :  { %3658 = vmatpush.xpose.msk.msra.mxu2 %vm1709_vm8, %v1735_v26 }
 0x3f4   :  { %3659 = vmatmul.msk.f32.vlgmr.msra.gmra.mxu2 %vm1709_vm8, %v5738_v19 }
 0x3f7   :  { %v1708_v27 = vpop.permute.xlu0 %1707 }
 0x3f8   :  { %3656 = vmatpush.xpose.msk.msra.mxu1 %vm1709_vm8, %v1708_v27 }
 0x3fb   :  { %3657 = vmatmul.msk.f32.vlgmr.msra.gmra.mxu1 %vm1709_vm8, %v5732_v6 }
 0x43a   :  { %v1761_v28 = vpop.permute.xlu2 %1760  ;;  %v1813_v29 = vpop.permute.xlu1 %1812 }
 0x43b   :  { %3660 = vmatpush.xpose.msk.msra.mxu3 %vm1709_vm8, %v1761_v28  ;;  %3664 = vmatpush.xpose.msk.msrb.mxu2 %vm1709_vm8, %v1813_v29 }
 0x43e   :  { %3661 = vmatmul.msk.f32.vlgmr.msra.gmra.mxu3 %vm1709_vm8, %v5756_v21  ;;  %3665 = vmatmul.msk.f32.vlgmr.msrb.gmra.mxu2 %vm1709_vm8, %v5752_v20 }
 0x443   :  { %v1787_v30 = vpop.permute.xlu2 %1786 }
 0x444   :  { %3662 = vmatpush.xpose.msk.msrb.mxu1 %vm1709_vm8, %v1787_v30 }
 0x447   :  { %3663 = vmatmul.msk.f32.vlgmr.msrb.gmra.mxu1 %vm1709_vm8, %v5762_v23 }
 0x45a   :  { %v1839_v31 = vpop.permute.xlu0 %1838 }
 0x45b   :  { %3666 = vmatpush.xpose.msk.msrb.mxu3 %vm1709_vm8, %v1839_v31 }
 0x45e   :  { %3667 = vmatmul.msk.f32.vlgmr.msrb.gmra.mxu3 %vm1709_vm8, %v5760_v22 }
 0x462   :  { %v1891_v32 = vpop.permute.xlu0 %1890  ;;  %v1865_v33 = vpop.permute.xlu1 %1864 }
 0x463   :  { %3668 = vmatpush.xpose.msk.msrb.mxu0 %vm1709_vm8, %v1865_v33  ;;  %3670 = vmatpush.xpose.msk.msra.mxu1 %vm1709_vm8, %v1891_v32 }
 0x466   :  { %3669 = vmatmul.msk.f32.vlgmr.msrb.gmra.mxu0 %vm1709_vm8, %v5770_v25  ;;  %3671 = vmatmul.msk.f32.vlgmr.msra.gmra.mxu1 %vm1709_vm8, %v5768_v24 }
 0x477   :  { %v1757_v34 = vpop.f32.mrf.mxu2 }
 0x478   :  { %v1917_v38 = vmul.f32 0.35355338, %v1757_v34  ;;  %v1731_v35 = vpop.f32.mrf.mxu1 }
 0x479   :  { %v1916_v39 = vmul.f32 0.35355338, %v1731_v35 }
 0x47a   :  { %v1927_v36 = vsel %vm1709_vm8, %v1917_v38, -inf }
 0x47b   :  { %1928 = vmax.xlane.f32.xlu0 %v1927_v36  ;;  %v1924_v37 = vsel %vm1709_vm8, %v1916_v39, -inf }
 0x47c   :  { %1925 = vmax.xlane.f32.xlu2 %v1924_v37 }
 0x4c1   :  { %v1783_v42 = vpop.f32.mrf.mxu3  ;;  %v1835_v43 = vpop.f32.mrf.mxu2 }
 0x4c2   :  { %v1918_v44 = vmul.f32 0.35355338, %v1783_v42  ;;  %v1920_v40 = vmul.f32 0.35355338, %v1835_v43 }
 0x4c4   :  { %v1930_v41 = vsel %vm1709_vm8, %v1918_v44, -inf  ;;  %v1936_v46 = vsel %vm1709_vm8, %v1920_v40, -inf  ;;  %v1809_v45 = vpop.f32.mrf.mxu1 }
 0x4c5   :  { %1931 = vmax.xlane.f32.xlu1 %v1930_v41  ;;  %1937 = vmax.xlane.f32.xlu2 %v1936_v46  ;;  %v1919_v47 = vmul.f32 0.35355338, %v1809_v45 }
 0x4c7   :  { %v1933_v48 = vsel %vm1709_vm8, %v1919_v47, -inf }
 0x4cd   :  { %1934 = vmax.xlane.f32.xlu1 %v1933_v48 }
 0x4e1   :  { %v1861_v49 = vpop.f32.mrf.mxu3 }
 0x4e2   :  { %v1921_v50 = vmul.f32 0.35355338, %v1861_v49 }
 0x4e3   :  { %v1887_v51 = vpop.f32.mrf.mxu0  ;;  %v1913_v52 = vpop.f32.mrf.mxu1 }
 0x4e4   :  { %v1922_v53 = vmul.f32 0.35355338, %v1887_v51  ;;  %v1923_v54 = vmul.f32 0.35355338, %v1913_v52  ;;  %v1939_v55 = vsel %vm1709_vm8, %v1921_v50, -inf }
 0x4e5   :  { %1940 = vmax.xlane.f32.xlu2 %v1939_v55 }
 0x4e6   :  { %v1945_v56 = vsel %vm1709_vm8, %v1923_v54, -inf  ;;  %v1942_v57 = vsel %vm1709_vm8, %v1922_v53, -inf }
 0x4e7   :  { %1946 = vmax.xlane.f32.xlu1 %v1945_v56  ;;  %1943 = vmax.xlane.f32.xlu0 %v1942_v57 }
 0x4ee   :  { %v1929_v58 = vpop.xlane.xlu0 %1928 }
 0x4ef   :  { %v1949_v59 = vsub.f32 %v1917_v38, %v1929_v58  ;;  %v1926_v60 = vpop.xlane.xlu2 %1925 }
 0x4f0   :  { %v1948_v61 = vsub.f32 %v1916_v39, %v1926_v60 }
 0x4f1   :  { %v1958_v62 = vmul.f32 1.442695, %v1949_v59 }
 0x4f2   :  { %v1956_v63 = vmul.f32 1.442695, %v1948_v61 }
 0x4f3   :  { %3801 = vpow2.f32 %v1958_v62 }
 0x4f4   :  { %3803 = vpow2.f32 %v1956_v63 }
 0x4f9   :  { %v5808_v0 = vpop.eup %3801 }
 0x4fa   :  { %v5810_v1 = vpop.eup %3803  ;;  %v1975_v2 = vsel %vm1709_vm8, %v5808_v0, 0.0 }
 0x4fb   :  { %1976 = vadd.xlane.f32.xlu1 %v1975_v2  ;;  %v1972_v5 = vsel %vm1709_vm8, %v5810_v1, 0.0 }
 0x4fc   :  { %1973 = vadd.xlane.f32.xlu0 %v1972_v5 }
 0x4fd   :  { %3762 = vrot.lane.b32.xlu2 %v3761_v4, %s3922_s20 }
 0x510   :  { %3767 = vrot.lane.b32.xlu0 %v3766_v7, %s3922_s20 }
 0x538   :  { %v1938_v8 = vpop.xlane.xlu2 %1937  ;;  %v1932_v9 = vpop.xlane.xlu1 %1931 }
 0x539   :  { %v1952_v11 = vsub.f32 %v1920_v40, %v1938_v8  ;;  %v1950_v12 = vsub.f32 %v1918_v44, %v1932_v9 }
 0x53b   :  { %v1964_v13 = vmul.f32 1.442695, %v1952_v11  ;;  %v1960_v14 = vmul.f32 1.442695, %v1950_v12  ;;  %v3771_v12 = vpack.i.bf16 %v5770_v25, %v5762_v23 }
 0x53d   :  { %3805 = vpow2.f32 %v1964_v13 }
 0x53e   :  { %3807 = vpow2.f32 %v1960_v14 }
 0x540   :  { %v1935_v16 = vpop.xlane.xlu1 %1934 }
 0x541   :  { %v1951_v17 = vsub.f32 %v1919_v47, %v1935_v16 }
 0x543   :  { %v5822_v6 = vpop.eup %3805  ;;  %v1962_v18 = vmul.f32 1.442695, %v1951_v17 }
 0x544   :  { %v5824_v21 = vpop.eup %3807  ;;  %v1984_v19 = vsel %vm1709_vm8, %v5822_v6, 0.0 }
 0x545   :  { %3809 = vpow2.f32 %v1962_v18  ;;  %1985 = vadd.xlane.f32.xlu0 %v1984_v19  ;;  %v1978_v20 = vsel %vm1709_vm8, %v5824_v21, 0.0 }
 0x546   :  { %1979 = vadd.xlane.f32.xlu2 %v1978_v20 }
 0x54b   :  { %v5830_v26 = vpop.eup %3809 }
 0x54c   :  { %v1981_v27 = vsel %vm1709_vm8, %v5830_v26, 0.0 }
 0x54e   :  { %1982 = vadd.xlane.f32.xlu2 %v1981_v27 }
 0x558   :  { %v1941_v28 = vpop.xlane.xlu2 %1940 }
 0x559   :  { %v1953_v29 = vsub.f32 %v1921_v50, %v1941_v28 }
 0x55a   :  { %v1944_v30 = vpop.xlane.xlu0 %1943  ;;  %v1947_v31 = vpop.xlane.xlu1 %1946 }
 0x55b   :  { %v1966_v32 = vmul.f32 1.442695, %v1953_v29  ;;  %v1954_v33 = vsub.f32 %v1922_v53, %v1944_v30  ;;  %v1955_v38 = vsub.f32 %v1923_v54, %v1947_v31 }
 0x55d   :  { %3811 = vpow2.f32 %v1966_v32  ;;  %v1968_v34 = vmul.f32 1.442695, %v1954_v33  ;;  %v1970_v39 = vmul.f32 1.442695, %v1955_v38 }
 0x55f   :  { %3813 = vpow2.f32 %v1968_v34 }
 0x560   :  { %v3763_v35 = vpop.permute.xlu2 %3762  ;;  %3815 = vpow2.f32 %v1970_v39 }
 0x561   :  { %v3765_v36 = vunpack.i.h.bf16 %v3763_v35  ;;  %v3764_v37 = vunpack.i.l.bf16 %v3763_v35 }
 0x563   :  { %v5834_v42 = vpop.eup %3811  ;;  %2137 = vmatpush.msra.mxu2 %v3764_v37  ;;  %2189 = vmatpush.msra.mxu0 %v3765_v36 }
 0x564   :  { %v1987_v43 = vsel %vm1709_vm8, %v5834_v42, 0.0 }
 0x565   :  { %v5838_v44 = vpop.eup %3813  ;;  %1988 = vadd.xlane.f32.xlu0 %v1987_v43 }
 0x566   :  { %2246 = vrot.lane.b32.xlu2 %v5760_v22, %s3922_s20  ;;  %v1990_v40 = vsel %vm1709_vm8, %v5838_v44, 0.0  ;;  %v5844_v41 = vpop.eup %3815 }
 0x567   :  { %1991 = vadd.xlane.f32.xlu1 %v1990_v40  ;;  %v1993_v45 = vsel %vm1709_vm8, %v5844_v41, 0.0 }
 0x56e   :  { %v1977_v46 = vpop.xlane.xlu1 %1976 }
 0x56f   :  { %3817 = vrcp.f32 %v1977_v46  ;;  %v1974_v47 = vpop.xlane.xlu0 %1973  ;;  %1994 = vadd.xlane.f32.xlu1 %v1993_v45  ;;  %v2022_v55 = vand.u32 2147483648, %v1977_v46  ;;  %vm2016_vm11 = vweird.f32 %v1977_v46  ;;  %v2020_v59 = vand.u32 2147483647, %v1977_v46 }
 0x570   :  { %3819 = vrcp.f32 %v1974_v47  ;;  %v2007_v54 = vand.u32 2147483648, %v1974_v47  ;;  %v2005_v57 = vand.u32 2147483647, %v1974_v47  ;;  %vm2001_vm13 = vweird.f32 %v1974_v47 }
 0x571   :  { %v2023_v63 = vor.u32 1.1754944e-38, %v2022_v55  ;;  %vm2021_vm1 = vcmp.eq.f32.partialorder %v2020_v59, 8.507059e+37 }
 0x572   :  { %v2008_v62 = vor.u32 1.1754944e-38, %v2007_v54  ;;  %vm2006_vm15 = vcmp.eq.f32.partialorder %v2005_v57, 8.507059e+37 }
 0x575   :  { %v3818_v48 = vpop.eup %3817 }
 0x576   :  { %v3820_v49 = vpop.eup %3819  ;;  %v2012_v50 = vmul.f32 %v3818_v48, %v1977_v46  ;;  %vm2017_vm9 = vweird.f32 %v3818_v48 }
 0x577   :  { %v1997_v51 = vmul.f32 %v3820_v49, %v1974_v47  ;;  %vm2002_vm10 = vweird.f32 %v3820_v49  ;;  %vm2018_vm12 = vmor %vm2016_vm11, %vm2017_vm9 }
 0x578   :  { %v2013_v52 = vsub.f32 1.0, %v2012_v50  ;;  %vm2003_vm14 = vmor %vm2001_vm13, %vm2002_vm10 }
 0x579   :  { %v1998_v22 = vsub.f32 1.0, %v1997_v51  ;;  %2298 = vrot.lane.b32.xlu0 %v5768_v24, %s3922_s20 }
 0x57a   :  { %v2014_v53 = vmul.f32 %v3818_v48, %v2013_v52 }
 0x57b   :  { %v1999_v56 = vmul.f32 %v3820_v49, %v1998_v22 }
 0x57c   :  { %v2015_v58 = vadd.f32 %v3818_v48, %v2014_v53 }
 0x57d   :  { %v2000_v60 = vadd.f32 %v3820_v49, %v1999_v56 }
 0x57e   :  { %v2019_v61 = vsel %vm2018_vm12, %v3818_v48, %v2015_v58 }
 0x57f   :  { %v2004_v2 = vsel %vm2003_vm14, %v3820_v49, %v2000_v60  ;;  %v2024_v4 = vsel %vm2021_vm1, %v2023_v63, %v2019_v61 }
 0x580   :  { %v2009_v24 = vsel %vm2006_vm15, %v2008_v62, %v2004_v2  ;;  %v2025_v11 = vmul.f32 %v5808_v0, %v2024_v4 }
 0x581   :  { %v2010_v5 = vmul.f32 %v5810_v1, %v2009_v24 }
 0x582   :  { %v3768_v7 = vpop.permute.xlu0 %3767 }
 0x583   :  { %v3770_v8 = vunpack.i.h.bf16 %v3768_v7  ;;  %v3769_v9 = vunpack.i.l.bf16 %v3768_v7  ;;  %3672 = vmatmul.msk.f32.vlgmr.msra.gmra.mxu2 %vm1709_vm8, %v2010_v5 }
 0x585   :  { %2163 = vmatpush.msra.mxu3 %v3769_v9  ;;  %2241 = vmatpush.msrb.mxu2 %v3770_v8 }
 0x586   :  { %3673 = vmatmul.msk.f32.vlgmr.msra.gmra.mxu3 %vm1709_vm8, %v2025_v11 }
 0x588   :  { %3772 = vrot.lane.b32.xlu1 %v3771_v12, %s3922_s20 }
 0x5b8   :  { %v1986_v13 = vpop.xlane.xlu0 %1985 }
 0x5b9   :  { %3821 = vrcp.f32 %v1986_v13  ;;  %v1980_v14 = vpop.xlane.xlu2 %1979  ;;  %v2067_v20 = vand.u32 2147483648, %v1986_v13  ;;  %v2065_v23 = vand.u32 2147483647, %v1986_v13  ;;  %vm2061_vm4 = vweird.f32 %v1986_v13 }
 0x5ba   :  { %3823 = vrcp.f32 %v1980_v14  ;;  %v2037_v25 = vand.u32 2147483648, %v1980_v14  ;;  %v2035_v30 = vand.u32 2147483647, %v1980_v14  ;;  %vm2031_vm6 = vweird.f32 %v1980_v14 }
 0x5bb   :  { %v2068_v32 = vor.u32 1.1754944e-38, %v2067_v20  ;;  %vm2066_vm7 = vcmp.eq.f32.partialorder %v2065_v23, 8.507059e+37 }
 0x5bc   :  { %v2038_v38 = vor.u32 1.1754944e-38, %v2037_v25  ;;  %vm2036_vm10 = vcmp.eq.f32.partialorder %v2035_v30, 8.507059e+37 }
 0x5bf   :  { %v3822_v1 = vpop.eup %3821 }
 0x5c0   :  { %v3824_v16 = vpop.eup %3823  ;;  %v2057_v17 = vmul.f32 %v3822_v1, %v1986_v13  ;;  %vm2062_vm2 = vweird.f32 %v3822_v1 }
 0x5c1   :  { %v2027_v18 = vmul.f32 %v3824_v16, %v1980_v14  ;;  %v5857_v19 = vpop.xlane.xlu2 %1982  ;;  %vm2032_vm3 = vweird.f32 %v3824_v16  ;;  %vm2063_vm5 = vmor %vm2061_vm4, %vm2062_vm2 }
 0x5c2   :  { %v2058_v0 = vsub.f32 1.0, %v2057_v17  ;;  %vm2033_vm9 = vmor %vm2031_vm6, %vm2032_vm3  ;;  %vm2046_vm2 = vweird.f32 %v5857_v19  ;;  %v2052_v8 = vand.u32 2147483648, %v5857_v19 }
 0x5c3   :  { %v2028_v27 = vsub.f32 1.0, %v2027_v18 }
 0x5c4   :  { %v2059_v28 = vmul.f32 %v3822_v1, %v2058_v0 }
 0x5c5   :  { %v2029_v29 = vmul.f32 %v3824_v16, %v2028_v27 }
 0x5c6   :  { %v2060_v31 = vadd.f32 %v3822_v1, %v2059_v28 }
 0x5c7   :  { %v2030_v33 = vadd.f32 %v3824_v16, %v2029_v29 }
 0x5c8   :  { %v2064_v34 = vsel %vm2063_vm5, %v3822_v1, %v2060_v31  ;;  %v2053_v1 = vor.u32 1.1754944e-38, %v2052_v8 }
 0x5c9   :  { %v2069_v35 = vsel %vm2066_vm7, %v2068_v32, %v2064_v34  ;;  %v2034_v39 = vsel %vm2033_vm9, %v3824_v16, %v2030_v33  ;;  %v2247_v36 = vpop.permute.xlu2 %2246 }
 0x5ca   :  { %v2039_v37 = vsel %vm2036_vm10, %v2038_v38, %v2034_v39  ;;  %2267 = vmatpush.msrb.mxu3 %v2247_v36  ;;  %v2070_v43 = vmul.f32 %v5822_v6, %v2069_v35 }
 0x5cb   :  { %v2040_v40 = vmul.f32 %v5824_v21, %v2039_v37 }
 0x5cc   :  { %3676 = vmatmul.msk.f32.vlgmr.msrb.gmra.mxu2 %vm1709_vm8, %v2070_v43  ;;  %v1638_v43 = vld [vmem:[%s6317_s6 + $0x18] sm:$0xff] }
 0x5cd   :  { %3674 = vmatmul.msk.f32.vlgmr.msra.gmra.mxu0 %vm1709_vm8, %v2040_v40  ;;  %v1637_v40 = vld [vmem:[%s6317_s6 + $0x10] sm:$0xff]  ;;  %2375 = vmatpush.msra.mxu2 %v1638_v43 }
 0x5cf   :  { %2376 = vmatpush.msra.mxu2 %v1637_v40 }
 0x5d8   :  { %v1989_v46 = vpop.xlane.xlu0 %1988 }
 0x5d9   :  { %3825 = vrcp.f32 %v1989_v46  ;;  %v2082_v6 = vand.u32 2147483648, %v1989_v46  ;;  %v2080_v21 = vand.u32 2147483647, %v1989_v46  ;;  %vm2076_vm12 = vweird.f32 %v1989_v46 }
 0x5da   :  { %v1992_v45 = vpop.xlane.xlu1 %1991  ;;  %3827 = vrcp.f32 %v5857_v19 }
 0x5db   :  { %3829 = vrcp.f32 %v1992_v45  ;;  %v2083_v56 = vor.u32 1.1754944e-38, %v2082_v6  ;;  %vm2081_vm14 = vcmp.eq.f32.partialorder %v2080_v21, 8.507059e+37  ;;  %v2097_v9 = vand.u32 2147483648, %v1992_v45 }
 0x5dc   :  { %vm2091_vm4 = vweird.f32 %v1992_v45  ;;  %v2095_v11 = vand.u32 2147483647, %v1992_v45 }
 0x5dd   :  { %v2098_v16 = vor.u32 1.1754944e-38, %v2097_v9 }
 0x5de   :  { %vm2096_vm7 = vcmp.eq.f32.partialorder %v2095_v11, 8.507059e+37 }
 0x5df   :  { %v3826_v47 = vpop.eup %3825 }
 0x5e0   :  { %v2072_v48 = vmul.f32 %v3826_v47, %v1989_v46  ;;  %v3828_v49 = vpop.eup %3827  ;;  %vm2077_vm11 = vweird.f32 %v3826_v47  ;;  %v1636_v46 = vld [vmem:[%s6317_s6 + $0x8] sm:$0xff] }
 0x5e1   :  { %v3830_v52 = vpop.eup %3829  ;;  %v2042_v53 = vmul.f32 %v3828_v49, %v5857_v19  ;;  %vm2078_vm13 = vmor %vm2076_vm12, %vm2077_vm11  ;;  %vm2047_vm15 = vweird.f32 %v3828_v49  ;;  %2377 = vmatpush.msra.mxu2 %v1636_v46 }
 0x5e2   :  { %v2073_v50 = vsub.f32 1.0, %v2072_v48  ;;  %v5864_v51 = vpop.xlane.xlu1 %1994  ;;  %v2087_v55 = vmul.f32 %v3830_v52, %v1992_v45  ;;  %vm2092_vm1 = vweird.f32 %v3830_v52  ;;  %vm2048_vm3 = vmor %vm2046_vm2, %vm2047_vm15  ;;  %v1635_v45 = vld [vmem:[%s6317_s6] sm:$0xff] }
 0x5e3   :  { %3831 = vrcp.f32 %v5864_v51  ;;  %v2043_v59 = vsub.f32 1.0, %v2042_v53  ;;  %vm2093_vm5 = vmor %vm2091_vm4, %vm2092_vm1  ;;  %v2112_v27 = vand.u32 2147483648, %v5864_v51  ;;  %vm2106_vm10 = vweird.f32 %v5864_v51  ;;  %2378 = vmatpush.msra.mxu2 %v1635_v45 }
 0x5e4   :  { %v2074_v22 = vmul.f32 %v3826_v47, %v2073_v50  ;;  %v2088_v60 = vsub.f32 1.0, %v2087_v55 }
 0x5e5   :  { %v2044_v63 = vmul.f32 %v3828_v49, %v2043_v59  ;;  %v2113_v32 = vor.u32 1.1754944e-38, %v2112_v27  ;;  %v1659_v27 = vld [vmem:[%s6321_s10 + $0x70] sm:$0xff] }
 0x5e6   :  { %v2075_v54 = vadd.f32 %v3826_v47, %v2074_v22  ;;  %v2089_v2 = vmul.f32 %v3830_v52, %v2088_v60 }
 0x5e7   :  { %v2045_v4 = vadd.f32 %v3828_v49, %v2044_v63 }
 0x5e8   :  { %v2079_v57 = vsel %vm2078_vm13, %v3826_v47, %v2075_v54  ;;  %v2090_v5 = vadd.f32 %v3830_v52, %v2089_v2  ;;  %vm2350_vm13 = vcmask 130048  }
 0x5e9   :  { %v2084_v58 = vsel %vm2081_vm14, %v2083_v56, %v2079_v57  ;;  %v3832_v62 = vpop.eup %3831  ;;  %v2049_v12 = vsel %vm2048_vm3, %v3828_v49, %v2045_v4  ;;  %vm2353_vm14 = vcmask 195584   ;;  %v5912_v56 = vld [vmem:[%s6318_s7] sm:$0x3f] }
 0x5ea   :  { %v2085_v61 = vmul.f32 %v5834_v42, %v2084_v58  ;;  %v2102_v24 = vmul.f32 %v3832_v62, %v5864_v51  ;;  %v2050_v42 = vand.u32 2147483647, %v5857_v19  ;;  %v2094_v13 = vsel %vm2093_vm5, %v3830_v52, %v2090_v5 }
 0x5eb   :  { %v2099_v18 = vsel %vm2096_vm7, %v2098_v16, %v2094_v13  ;;  %vm2107_vm9 = vweird.f32 %v3832_v62  ;;  %v2110_v19 = vand.u32 2147483647, %v5864_v51  ;;  %v2299_v31 = vpop.permute.xlu0 %2298  ;;  %v2356_v57 = vperm.slane %v5912_v56, 0  ;;  %v1640_v16 = vld [vmem:[%s6319_s8] sm:$0xff] }
 0x5ec   :  { %3677 = vmatmul.msk.f32.vlgmr.msrb.gmra.mxu3 %vm1709_vm8, %v2085_v61  ;;  %v2103_v7 = vsub.f32 1.0, %v2102_v24  ;;  %vm2051_vm6 = vcmp.eq.f32.partialorder %v2050_v42, 8.507059e+37  ;;  %v2100_v29 = vmul.f32 %v5838_v44, %v2099_v18  ;;  %vm2108_vm11 = vmor %vm2106_vm10, %vm2107_vm9 }
 0x5ed   :  { %v2054_v17 = vsel %vm2051_vm6, %v2053_v1, %v2049_v12  ;;  %vm2111_vm12 = vcmp.eq.f32.partialorder %v2110_v19, 8.507059e+37  ;;  %v1641_v1 = vld [vmem:[%s6319_s8 + $0x8] sm:$0xff] }
 0x5ee   :  { %v2104_v14 = vmul.f32 %v3832_v62, %v2103_v7  ;;  %v2055_v25 = vmul.f32 %v5830_v26, %v2054_v17 }
 0x5f0   :  { %v2105_v0 = vadd.f32 %v3832_v62, %v2104_v14  ;;  %v1642_v14 = vld [vmem:[%s6319_s8 + $0x10] sm:$0xff] }
 0x5f2   :  { %v2109_v30 = vsel %vm2108_vm11, %v3832_v62, %v2105_v0 }
 0x5f3   :  { %v2114_v33 = vsel %vm2111_vm12, %v2113_v32, %v2109_v30 }
 0x5f4   :  { %v2115_v34 = vmul.f32 %v5844_v41, %v2114_v33 }
 0x5fa   :  { %v3773_v20 = vpop.permute.xlu1 %3772 }
 0x5fb   :  { %v3775_v28 = vunpack.i.h.bf16 %v3773_v20  ;;  %v3774_v23 = vunpack.i.l.bf16 %v3773_v20  ;;  %v1660_v20 = vld [vmem:[%s6321_s10 + $0x78] sm:$0xff] }
 0x5fd   :  { %2215 = vmatpush.msrb.mxu1 %v3774_v23  ;;  %2293 = vmatpush.msrb.mxu0 %v3775_v28  ;;  %v1658_v28 = vld [vmem:[%s6321_s10 + $0x68] sm:$0xff] }
 0x5fe   :  { %3675 = vmatmul.msk.f32.vlgmr.msrb.gmra.mxu1 %vm1709_vm8, %v2055_v25  ;;  %3678 = vmatmul.msk.f32.vlgmr.msrb.gmra.mxu0 %vm1709_vm8, %v2100_v29  ;;  %v1657_v25 = vld [vmem:[%s6321_s10 + $0x60] sm:$0xff] }
 0x5ff   :  { %2319 = vmatpush.msra.mxu1 %v2299_v31 }
 0x606   :  { %3679 = vmatmul.msk.f32.vlgmr.msra.gmra.mxu1 %vm1709_vm8, %v2115_v34  ;;  %v2139_v26 = vpop.f32.mrf.mxu2 }
 0x609   :  { %v2165_v35 = vpop.f32.mrf.mxu3 }
 0x64a   :  { %v2191_v38 = vpop.f32.mrf.mxu0 }
 0x64b   :  { %2326 = vrot.lane.b32.xlu2 %v2191_v38, %s3923_s0 }
 0x64f   :  { %v2243_v44 = vpop.f32.mrf.mxu2 }
 0x650   :  { %2334 = vrot.lane.b32.xlu0 %v2243_v44, %s3924_s21 }
 0x66f   :  { %v2269_v39 = vpop.f32.mrf.mxu3 }
 0x670   :  { %2336 = vrot.lane.b32.xlu0 %v2269_v39, %s3924_s21 }
 0x67b   :  { %v2217_v36 = vpop.f32.mrf.mxu1  ;;  %v2295_v37 = vpop.f32.mrf.mxu0 }
 0x67c   :  { %2342 = vrot.lane.b32.xlu1 %v2295_v37, %s3925_s22  ;;  %2328 = vrot.lane.b32.xlu2 %v2217_v36, %s3923_s0 }
 0x683   :  { %v2321_v41 = vpop.f32.mrf.mxu1 }
 0x684   :  { %2344 = vrot.lane.b32.xlu1 %v2321_v41, %s3925_s22  ;;  %v2435_v41 = vperm.slane %v5912_v56, 2 }
 0x6a5   :  { %v2327_v47 = vpop.permute.xlu2 %2326 }
 0x6a6   :  { %v2348_v49 = vsel %vm1709_vm8, %v2139_v26, %v2327_v47 }
 0x6c2   :  { %v2335_v48 = vpop.permute.xlu0 %2334 }
 0x6c3   :  { %v2351_v50 = vsel %vm2350_vm13, %v2348_v49, %v2335_v48 }
 0x6d6   :  { %v2329_v6 = vpop.permute.xlu2 %2328 }
 0x6d7   :  { %v2349_v21 = vsel %vm1709_vm8, %v2165_v35, %v2329_v6  ;;  %v2432_v35 = vperm.slane %v5912_v56, 1  ;;  %v1655_v6 = vld [vmem:[%s6321_s10 + $0x50] sm:$0xff] }
 0x6e2   :  { %v2337_v22 = vpop.permute.xlu0 %2336 }
 0x6e3   :  { %v2352_v53 = vsel %vm2350_vm13, %v2349_v21, %v2337_v22  ;;  %v1654_v22 = vld [vmem:[%s6321_s10 + $0x48] sm:$0xff]  ;;  %v1653_v21 = vld [vmem:[%s6321_s10 + $0x40] sm:$0xff] }
 0x6ee   :  { %v2343_v51 = vpop.permute.xlu1 %2342 }
 0x6ef   :  { %v2354_v52 = vsel %vm2353_vm14, %v2351_v50, %v2343_v51 }
 0x6f0   :  { %3680 = vmatmul.msk.f32.vlgmr.msra.gmra.mxu2 %vm1570_vm0, %v2354_v52  ;;  %v1656_v52 = vld [vmem:[%s6321_s10 + $0x58] sm:$0xff] }
 0x6f6   :  { %v2345_v54 = vpop.permute.xlu1 %2344 }
 0x6f7   :  { %v2355_v55 = vsel %vm2353_vm14, %v2352_v53, %v2345_v54  ;;  %v1652_v53 = vld [vmem:[%s6321_s10 + $0x38] sm:$0xff]  ;;  %v1651_v54 = vld [vmem:[%s6321_s10 + $0x30] sm:$0xff] }
 0x6f8   :  { %3681 = vmatmul.msk.f32.gmra.mxu2 %vm1570_vm0, %v2355_v55  ;;  %v1650_v55 = vld [vmem:[%s6321_s10 + $0x28] sm:$0xff] }
 0x773   :  { %v2380_v58 = vpop.f32.mrf.mxu2 }
 0x774   :  { %v2381_v59 = vadd.f32 %v2380_v58, %v2356_v57  ;;  %v1648_v58 = vld [vmem:[%s6321_s10 + $0x18] sm:$0xff] }
 0x776   :  { %v2386_v60 = vadd.f32 %v2381_v59, %v5717_v10  ;;  %v1647_v59 = vld [vmem:[%s6321_s10 + $0x10] sm:$0xff] }
 0x778   :  { %v2388_v61 = vsel %vm1570_vm0, %v2386_v60, 0.0 }
 0x779   :  { %2389 = vadd.xlane.f32.xlu2 %v2388_v61  ;;  %v1645_v61 = vld [vmem:[%s6321_s10] sm:$0xff] }
 0x77b   :  { %v2383_v62 = vpop.f32.mrf.mxu2 }
 0x77c   :  { %v2384_v63 = vadd.f32 %v2383_v62, %v2356_v57  ;;  %v1649_v57 = vld [vmem:[%s6321_s10 + $0x20] sm:$0xff] }
 0x77d   :  { %v3792_v62 = vld [vmem:[%s6320_s9] ss:$0 sm:$0xff] }
 0x77e   :  { %v2387_v2 = vadd.f32 %v2384_v63, %v5723_v15  ;;  %v1643_v15 = vld [vmem:[%s6319_s8 + $0x18] sm:$0xff] }
 0x77f   :  { %2459 = vmatpush.msra.mxu0 %v1643_v15 }
 0x780   :  { %v2391_v24 = vsel %vm1570_vm0, %v2387_v2, 0.0 }
 0x781   :  { %2392 = vadd.xlane.f32.xlu0 %v2391_v24  ;;  %2460 = vmatpush.msra.mxu0 %v1642_v14 }
 0x783   :  { %2461 = vmatpush.msra.mxu0 %v1641_v1 }
 0x785   :  { %2462 = vmatpush.msra.mxu0 %v1640_v16 }
 0x787   :  { %2489 = vmatpush.msrb.mxu0 %v1660_v20 }
 0x789   :  { %2490 = vmatpush.msrb.mxu0 %v1659_v27 }
 0x78b   :  { %2491 = vmatpush.msrb.mxu0 %v1658_v28  ;;  %v2488_v28 = vperm.slane %v5912_v56, 3 }
 0x78d   :  { %2492 = vmatpush.msrb.mxu0 %v1657_v25 }
 0x78f   :  { %2493 = vmatpush.msrb.mxu0 %v1656_v52 }
 0x791   :  { %2494 = vmatpush.msrb.mxu0 %v1655_v6 }
 0x793   :  { %2495 = vmatpush.msrb.mxu0 %v1654_v22 }
 0x795   :  { %2496 = vmatpush.msrb.mxu0 %v1653_v21 }
 0x797   :  { %2497 = vmatpush.msrb.mxu0 %v1652_v53 }
 0x799   :  { %2498 = vmatpush.msrb.mxu0 %v1651_v54 }
 0x79b   :  { %2499 = vmatpush.msrb.mxu0 %v1650_v55 }
 0x79d   :  { %2500 = vmatpush.msrb.mxu0 %v1649_v57 }
 0x79f   :  { %2501 = vmatpush.msrb.mxu0 %v1648_v58 }
 0x7a1   :  { %2502 = vmatpush.msrb.mxu0 %v1647_v59 }
 0x7ec   :  { %v2390_v4 = vpop.xlane.xlu2 %2389 }
 0x7ed   :  { %v2394_v5 = vmul.f32 %v2390_v4, %v5694_v3 }
 0x7ef   :  { %v2396_v7 = vsub.f32 %v2386_v60, %v2394_v5  ;;  %v1646_v60 = vld [vmem:[%s6321_s10 + $0x8] sm:$0xff] }
 0x7f0   :  { %2503 = vmatpush.msrb.mxu0 %v1646_v60  ;;  %v2558_v60 = vperm.slane %v5912_v56, 4 }
 0x7f1   :  { %v2398_v8 = vmul.f32 %v2396_v7, %v2396_v7 }
 0x7f2   :  { %2504 = vmatpush.msrb.mxu0 %v1645_v61 }
 0x7f3   :  { %v2400_v9 = vsel %vm1570_vm0, %v2398_v8, 0.0 }
 0x7f4   :  { %2401 = vadd.xlane.f32.xlu1 %v2400_v9  ;;  %v2393_v42 = vpop.xlane.xlu0 %2392 }
 0x7f5   :  { %v2395_v10 = vmul.f32 %v2393_v42, %v5694_v3 }
 0x7f7   :  { %v2397_v11 = vsub.f32 %v2387_v2, %v2395_v10 }
 0x7f9   :  { %v2399_v12 = vmul.f32 %v2397_v11, %v2397_v11 }
 0x7fb   :  { %v2403_v13 = vsel %vm1570_vm0, %v2399_v12, 0.0 }
 0x7fc   :  { %2404 = vadd.xlane.f32.xlu2 %v2403_v13 }
 0x867   :  { %v2402_v17 = vpop.xlane.xlu1 %2401 }
 0x868   :  { %v2406_v18 = vmul.f32 %v2402_v17, %v5694_v3 }
 0x86a   :  { %v2408_v0 = vadd.f32 1e-12, %v2406_v18 }
 0x86c   :  { %3833 = vrsqrt.f32 %v2408_v0  ;;  %vm2416_vm1 = vweird.f32 %v2408_v0 }
 0x86f   :  { %v2405_v23 = vpop.xlane.xlu2 %2404 }
 0x870   :  { %v2407_v19 = vmul.f32 %v2405_v23, %v5694_v3 }
 0x872   :  { %v3834_v29 = vpop.eup %3833  ;;  %v2409_v30 = vadd.f32 1e-12, %v2407_v19 }
 0x873   :  { %v2411_v31 = vmul.f32 %v3834_v29, %v2408_v0  ;;  %vm2417_vm15 = vweird.f32 %v3834_v29 }
 0x874   :  { %3835 = vrsqrt.f32 %v2409_v30  ;;  %vm2418_vm2 = vmor %vm2416_vm1, %vm2417_vm15  ;;  %vm2426_vm4 = vweird.f32 %v2409_v30 }
 0x875   :  { %v2412_v32 = vmul.f32 %v3834_v29, %v2411_v31 }
 0x877   :  { %v2413_v33 = vmul.f32 0.5, %v2412_v32 }
 0x879   :  { %v2414_v34 = vsub.f32 1.5, %v2413_v33 }
 0x87a   :  { %v3836_v26 = vpop.eup %3835 }
 0x87b   :  { %v2415_v38 = vmul.f32 %v3834_v29, %v2414_v34  ;;  %v2421_v44 = vmul.f32 %v3836_v26, %v2409_v30  ;;  %vm2427_vm3 = vweird.f32 %v3836_v26 }
 0x87c   :  { %vm2428_vm5 = vmor %vm2426_vm4, %vm2427_vm3 }
 0x87d   :  { %v2419_v39 = vsel %vm2418_vm2, %v3834_v29, %v2415_v38  ;;  %v2422_v36 = vmul.f32 %v3836_v26, %v2421_v44 }
 0x87e   :  { %v2430_v37 = vmul.f32 %v2419_v39, %v2396_v7 }
 0x87f   :  { %v2423_v43 = vmul.f32 0.5, %v2422_v36 }
 0x880   :  { %v2433_v40 = vmul.f32 %v2432_v35, %v2430_v37 }
 0x881   :  { %v2424_v46 = vsub.f32 1.5, %v2423_v43 }
 0x882   :  { %v5951_v45 = vadd.f32 %v2435_v41, %v2433_v40  ;;  %v3687_v40 = vld [vmem:[%s6315_s4 + $0x38] sm:$0xff] }
 0x883   :  { %v2425_v47 = vmul.f32 %v3836_v26, %v2424_v46  ;;  %2626 = vmatpush.msrb.mxu1 %v3687_v40  ;;  %v3686_v46 = vld [vmem:[%s6315_s4 + $0x30] sm:$0xff] }
 0x884   :  { %3682 = vmatmul.msk.f32.vlgmr.msra.gmra.mxu0 %vm1570_vm0, %v5951_v45 }
 0x885   :  { %v2429_v48 = vsel %vm2428_vm5, %v3836_v26, %v2425_v47  ;;  %2627 = vmatpush.msrb.mxu1 %v3686_v46  ;;  %v3684_v47 = vld [vmem:[%s6315_s4 + $0x20] sm:$0xff] }
 0x886   :  { %v2431_v49 = vmul.f32 %v2429_v48, %v2397_v11 }
 0x888   :  { %v2434_v50 = vmul.f32 %v2432_v35, %v2431_v49 }
 0x88a   :  { %v2437_v51 = vadd.f32 %v2435_v41, %v2434_v50 }
 0x88c   :  { %3683 = vmatmul.msk.f32.gmra.mxu0 %vm1570_vm0, %v2437_v51 }
 0x901   :  { %v2464_v63 = vpop.f32.mrf.mxu0 }
 0x902   :  { %v2465_v2 = vadd.f32 %v3792_v62, %v2464_v63 }
 0x904   :  { %v2472_v24 = vmul.f32 0.044715, %v2465_v2  ;;  %v2470_v1 = vmul.f32 0.5, %v2465_v2 }
 0x906   :  { %v2474_v4 = vmul.f32 %v2472_v24, %v2465_v2 }
 0x908   :  { %v2476_v5 = vmul.f32 %v2474_v4, %v2465_v2 }
 0x909   :  { %v2467_v7 = vpop.f32.mrf.mxu0 }
 0x90a   :  { %v2468_v8 = vadd.f32 %v3792_v62, %v2467_v7  ;;  %v2478_v9 = vadd.f32 %v2476_v5, %v2465_v2  ;;  %v2561_v2 = vperm.slane %v5912_v56, 5  ;;  %v3793_v56 = vld [vmem:[%s6316_s5 + $0x1] ss:$0 sm:$0xff]  ;;  %s3514_s5 = sshll.u32 %s6322_s11, 4  ;;  %s3515_s5 = int_to_ptr.hbm [resolvable:$true] %s3514_s5 }
 0x90c   :  { %v2473_v42 = vmul.f32 0.044715, %v2468_v8  ;;  %v2480_v10 = vmul.f32 0.7978846, %v2478_v9  ;;  %v2471_v0 = vmul.f32 0.5, %v2468_v8 }
 0x90e   :  { %3837 = vtanh.f32 %v2480_v10  ;;  %v2475_v11 = vmul.f32 %v2473_v42, %v2468_v8 }
 0x910   :  { %v2477_v12 = vmul.f32 %v2475_v11, %v2468_v8 }
 0x912   :  { %v2479_v13 = vadd.f32 %v2477_v12, %v2468_v8 }
 0x914   :  { %v3838_v15 = vpop.eup %3837  ;;  %v2481_v14 = vmul.f32 0.7978846, %v2479_v13 }
 0x915   :  { %v2484_v16 = vadd.f32 1.0, %v3838_v15 }
 0x916   :  { %3839 = vtanh.f32 %v2481_v14 }
 0x917   :  { %v2486_v17 = vmul.f32 %v2484_v16, %v2470_v1 }
 0x919   :  { %2505 = vmatmul.f32.vlgmr.msrb.gmra.mxu0 %v2486_v17 }
 0x91c   :  { %v3840_v18 = vpop.eup %3839 }
 0x91d   :  { %v2485_v20 = vadd.f32 1.0, %v3840_v18 }
 0x91f   :  { %v2487_v27 = vmul.f32 %v2485_v20, %v2471_v0 }
 0x921   :  { %2508 = vmatmul.f32.gmra.mxu0 %v2487_v27 }
 0x996   :  { %v2506_v23 = vpop.f32.mrf.mxu0 }
 0x997   :  { %v2507_v19 = vadd.f32 %v2506_v23, %v2488_v28 }
 0x999   :  { %v2512_v25 = vadd.f32 %v2507_v19, %v5951_v45  ;;  %v3685_v45 = vld [vmem:[%s6315_s4 + $0x28] sm:$0xff] }
 0x99a   :  { %2628 = vmatpush.msrb.mxu1 %v3685_v45 }
 0x99b   :  { %v2514_v29 = vsel %vm1570_vm0, %v2512_v25, 0.0 }
 0x99c   :  { %2515 = vadd.xlane.f32.xlu0 %v2514_v29  ;;  %2629 = vmatpush.msrb.mxu1 %v3684_v47 }
 0x99e   :  { %v2509_v30 = vpop.f32.mrf.mxu0 }
 0x99f   :  { %v2510_v31 = vadd.f32 %v2509_v30, %v2488_v28 }
 0x9a1   :  { %v2513_v32 = vadd.f32 %v2510_v31, %v2437_v51 }
 0x9a3   :  { %v2517_v33 = vsel %vm1570_vm0, %v2513_v32, 0.0 }
 0x9a4   :  { %2518 = vadd.xlane.f32.xlu1 %v2517_v33 }
 0xa0f   :  { %v2516_v34 = vpop.xlane.xlu0 %2515 }
 0xa10   :  { %v2520_v26 = vmul.f32 %v2516_v34, %v5694_v3 }
 0xa12   :  { %v2522_v38 = vsub.f32 %v2512_v25, %v2520_v26 }
 0xa14   :  { %v2524_v44 = vmul.f32 %v2522_v38, %v2522_v38 }
 0xa16   :  { %v2526_v35 = vsel %vm1570_vm0, %v2524_v44, 0.0 }
 0xa17   :  { %v2519_v39 = vpop.xlane.xlu1 %2518  ;;  %2527 = vadd.xlane.f32.xlu2 %v2526_v35 }
 0xa18   :  { %v2521_v36 = vmul.f32 %v2519_v39, %v5694_v3 }
 0xa1a   :  { %v2523_v37 = vsub.f32 %v2513_v32, %v2521_v36 }
 0xa1c   :  { %v2525_v41 = vmul.f32 %v2523_v37, %v2523_v37 }
 0xa1e   :  { %v2529_v43 = vsel %vm1570_vm0, %v2525_v41, 0.0 }
 0xa1f   :  { %2530 = vadd.xlane.f32.xlu0 %v2529_v43 }
 0xa8a   :  { %v2528_v48 = vpop.xlane.xlu2 %2527 }
 0xa8b   :  { %v2532_v49 = vmul.f32 %v2528_v48, %v5694_v3 }
 0xa8d   :  { %v2534_v50 = vadd.f32 1e-12, %v2532_v49 }
 0xa8f   :  { %3841 = vrsqrt.f32 %v2534_v50  ;;  %vm2542_vm7 = vweird.f32 %v2534_v50 }
 0xa92   :  { %v2531_v51 = vpop.xlane.xlu0 %2530 }
 0xa93   :  { %v2533_v52 = vmul.f32 %v2531_v51, %v5694_v3 }
 0xa95   :  { %v3842_v6 = vpop.eup %3841  ;;  %v2535_v22 = vadd.f32 1e-12, %v2533_v52 }
 0xa96   :  { %v2537_v21 = vmul.f32 %v3842_v6, %v2534_v50  ;;  %vm2543_vm6 = vweird.f32 %v3842_v6 }
 0xa97   :  { %3843 = vrsqrt.f32 %v2535_v22  ;;  %vm2544_vm9 = vmor %vm2542_vm7, %vm2543_vm6  ;;  %vm2552_vm11 = vweird.f32 %v2535_v22 }
 0xa98   :  { %v2538_v53 = vmul.f32 %v3842_v6, %v2537_v21 }
 0xa9a   :  { %v2539_v54 = vmul.f32 0.5, %v2538_v53 }
 0xa9c   :  { %v2540_v55 = vsub.f32 1.5, %v2539_v54 }
 0xa9d   :  { %v3844_v57 = vpop.eup %3843 }
 0xa9e   :  { %v2541_v58 = vmul.f32 %v3842_v6, %v2540_v55  ;;  %v2547_v59 = vmul.f32 %v3844_v57, %v2535_v22  ;;  %vm2553_vm10 = vweird.f32 %v3844_v57 }
 0xa9f   :  { %vm2554_vm12 = vmor %vm2552_vm11, %vm2553_vm10 }
 0xaa0   :  { %v2545_v61 = vsel %vm2544_vm9, %v3842_v6, %v2541_v58  ;;  %v2548_v62 = vmul.f32 %v3844_v57, %v2547_v59 }
 0xaa1   :  { %v2556_v63 = vmul.f32 %v2545_v61, %v2522_v38 }
 0xaa2   :  { %v2549_v24 = vmul.f32 0.5, %v2548_v62 }
 0xaa3   :  { %v2559_v4 = vmul.f32 %v2558_v60, %v2556_v63 }
 0xaa4   :  { %v2550_v5 = vsub.f32 1.5, %v2549_v24 }
 0xaa5   :  { %v6019_v7 = vadd.f32 %v2561_v2, %v2559_v4 }
 0xaa6   :  { %v2551_v8 = vmul.f32 %v3844_v57, %v2550_v5 }
 0xaa7   :  { %2565 = vst.msk [vmem:[#allocation2 + $0x10] sm:$0xff] %vm1570_vm0, %v6019_v7  ;;  %3715 = vmatmul.msk.f32.vlgmr.msrb.gmra.mxu1 %vm1570_vm0, %v6019_v7 }
 0xaa8   :  { %v2555_v9 = vsel %vm2554_vm12, %v3844_v57, %v2551_v8 }
 0xaa9   :  { %v2557_v42 = vmul.f32 %v2555_v9, %v2523_v37 }
 0xaab   :  { %v2560_v10 = vmul.f32 %v2558_v60, %v2557_v42 }
 0xaad   :  { %v6025_v11 = vadd.f32 %v2561_v2, %v2560_v10 }
 0xaaf   :  { %2566 = vst.msk [vmem:[#allocation2 + $0x18] sm:$0xff] %vm1570_vm0, %v6025_v11  ;;  %3716 = vmatmul.msk.f32.gmra.mxu1 %vm1570_vm0, %v6025_v11 }
 0xb24   :  { %v2631_v12 = vpop.f32.mrf.mxu1 }
 0xb25   :  { %v6034_v13 = vadd.f32 %v3793_v56, %v2631_v12 }
 0xb27   :  { %2647 = vrot.lane.b32.xlu0 %v6034_v13, %s3920_s18  ;;  %2639 = vrot.lane.b32.xlu2 %v6034_v13, %s3919_s17 }
 0xb2c   :  { %v2634_v15 = vpop.f32.mrf.mxu1 }
 0xb2d   :  { %v6040_v14 = vadd.f32 %v3793_v56, %v2634_v15 }
 0xb2f   :  { %2649 = vrot.lane.b32.xlu2 %v6040_v14, %s3920_s18  ;;  %2645 = vrot.lane.b32.xlu0 %v6040_v14, %s3918_s16 }
 0xb30   :  { %2641 = vrot.lane.b32.xlu1 %v6040_v14, %s3919_s17 }
 0xb37   :  { %2677 = vrot.lane.b32.xlu2 %v6040_v14, %s3921_s19 }
 0xb38   :  { %2643 = vrot.lane.b32.xlu1 %v6034_v13, %s3918_s16  ;;  %s3927_s16 = smov 128  }
 0xb40   :  { %2651 = vrot.lane.b32.xlu1 %v6034_v13, %s3921_s19 }
 0xb81   :  { %v6054_v1 = vpop.permute.xlu2 %2639 }
 0xb82   :  { %2703 = vrot.lane.b32.xlu1 %v6054_v1, %s3921_s19  ;;  %v3776_v24 = vpack.i.bf16 %v6034_v13, %v6054_v1 }
 0xb89   :  { %v6058_v16 = vpop.permute.xlu2 %2649 }
 0xb91   :  { %v2678_v17 = vpop.permute.xlu2 %2677 }
 0xb92   :  { %3719 = vmatpush.xpose.msk.msra.mxu3 %vm1709_vm8, %v2678_v17 }
 0xb95   :  { %3720 = vmatmul.msk.f32.vlgmr.msra.gmra.mxu3 %vm1709_vm8, %v6040_v14 }
 0xb99   :  { %v6063_v18 = vpop.permute.xlu0 %2647 }
 0xb9a   :  { %v3781_v55 = vpack.i.bf16 %v6063_v18, %v6040_v14 }
 0xba1   :  { %v6065_v0 = vpop.permute.xlu0 %2645 }
 0xba2   :  { %v6067_v20 = vpop.permute.xlu1 %2641  ;;  %2781 = vrot.lane.b32.xlu1 %v6065_v0, %s3921_s19 }
 0xba3   :  { %2729 = vrot.lane.b32.xlu0 %v6067_v20, %s3921_s19 }
 0xbaa   :  { %v6073_v27 = vpop.permute.xlu1 %2643 }
 0xbab   :  { %2755 = vrot.lane.b32.xlu2 %v6073_v27, %s3921_s19  ;;  %2807 = vrot.lane.b32.xlu0 %v6063_v18, %s3921_s19 }
 0xbb2   :  { %v2652_v28 = vpop.permute.xlu1 %2651 }
 0xbb3   :  { %3717 = vmatpush.xpose.msk.msrb.mxu2 %vm1709_vm8, %v2652_v28  ;;  %2833 = vrot.lane.b32.xlu0 %v6058_v16, %s3921_s19 }
 0xbb6   :  { %3718 = vmatmul.msk.f32.vlgmr.msrb.gmra.mxu2 %vm1709_vm8, %v6034_v13 }
 0xbf4   :  { %v2704_v23 = vpop.permute.xlu1 %2703 }
 0xbf5   :  { %3721 = vmatpush.xpose.msk.msra.mxu1 %vm1709_vm8, %v2704_v23 }
 0xbf8   :  { %3722 = vmatmul.msk.f32.vlgmr.msra.gmra.mxu1 %vm1709_vm8, %v6054_v1 }
 0xc05   :  { %v2756_v19 = vpop.permute.xlu2 %2755 }
 0xc06   :  { %3725 = vmatpush.xpose.msk.msrb.mxu3 %vm1709_vm8, %v2756_v19 }
 0xc09   :  { %3726 = vmatmul.msk.f32.vlgmr.msrb.gmra.mxu3 %vm1709_vm8, %v6073_v27 }
 0xc14   :  { %v2782_v25 = vpop.permute.xlu1 %2781 }
 0xc15   :  { %v2730_v29 = vpop.permute.xlu0 %2729  ;;  %3727 = vmatpush.xpose.msk.msrb.mxu1 %vm1709_vm8, %v2782_v25 }
 0xc16   :  { %3723 = vmatpush.xpose.msk.msra.mxu2 %vm1709_vm8, %v2730_v29 }
 0xc18   :  { %v2700_v30 = vpop.f32.mrf.mxu3  ;;  %3728 = vmatmul.msk.f32.vlgmr.msrb.gmra.mxu1 %vm1709_vm8, %v6065_v0 }
 0xc19   :  { %v2860_v31 = vmul.f32 0.35355338, %v2700_v30  ;;  %3724 = vmatmul.msk.f32.vlgmr.msra.gmra.mxu2 %vm1709_vm8, %v6067_v20 }
 0xc1b   :  { %v2870_v32 = vsel %vm1709_vm8, %v2860_v31, -inf }
 0xc1c   :  { %2871 = vmax.xlane.f32.xlu0 %v2870_v32 }
 0xc1d   :  { %v2808_v33 = vpop.permute.xlu0 %2807 }
 0xc1e   :  { %3729 = vmatpush.xpose.msk.msrb.mxu2 %vm1709_vm8, %v2808_v33 }
 0xc21   :  { %3730 = vmatmul.msk.f32.vlgmr.msrb.gmra.mxu2 %vm1709_vm8, %v6063_v18 }
 0xc25   :  { %v2834_v34 = vpop.permute.xlu0 %2833 }
 0xc26   :  { %3731 = vmatpush.xpose.msk.msra.mxu3 %vm1709_vm8, %v2834_v34 }
 0xc29   :  { %3732 = vmatmul.msk.f32.vlgmr.msra.gmra.mxu3 %vm1709_vm8, %v6058_v16 }
 0xc39   :  { %v2674_v26 = vpop.f32.mrf.mxu2 }
 0xc3a   :  { %v2859_v38 = vmul.f32 0.35355338, %v2674_v26 }
 0xc3c   :  { %v2867_v44 = vsel %vm1709_vm8, %v2859_v38, -inf }
 0xc3d   :  { %2868 = vmax.xlane.f32.xlu1 %v2867_v44 }
 0xc75   :  { %v2726_v35 = vpop.f32.mrf.mxu1 }
 0xc76   :  { %v2861_v39 = vmul.f32 0.35355338, %v2726_v35 }
 0xc78   :  { %v2873_v36 = vsel %vm1709_vm8, %v2861_v39, -inf }
 0xc79   :  { %2874 = vmax.xlane.f32.xlu2 %v2873_v36 }
 0xc8c   :  { %v2778_v37 = vpop.f32.mrf.mxu3 }
 0xc8d   :  { %v2863_v41 = vmul.f32 0.35355338, %v2778_v37 }
 0xc8f   :  { %v2879_v43 = vsel %vm1709_vm8, %v2863_v41, -inf  ;;  %v2872_v50 = vpop.xlane.xlu0 %2871 }
 0xc90   :  { %2880 = vmax.xlane.f32.xlu1 %v2879_v43  ;;  %v2892_v51 = vsub.f32 %v2860_v31, %v2872_v50 }
 0xc92   :  { %v2901_v52 = vmul.f32 1.442695, %v2892_v51 }
 0xc94   :  { %3845 = vpow2.f32 %v2901_v52 }
 0xc95   :  { %v2804_v40 = vpop.f32.mrf.mxu1 }
 0xc96   :  { %v2864_v46 = vmul.f32 0.35355338, %v2804_v40 }
 0xc98   :  { %v2882_v45 = vsel %vm1709_vm8, %v2864_v46, -inf }
 0xc99   :  { %2883 = vmax.xlane.f32.xlu2 %v2882_v45 }
 0xc9a   :  { %v6111_v58 = vpop.eup %3845 }
 0xc9b   :  { %v2918_v59 = vsel %vm1709_vm8, %v6111_v58, 0.0 }
 0xc9c   :  { %v2752_v47 = vpop.f32.mrf.mxu2 }
 0xc9d   :  { %v2862_v48 = vmul.f32 0.35355338, %v2752_v47 }
 0xc9f   :  { %v2876_v49 = vsel %vm1709_vm8, %v2862_v48, -inf }
 0xca0   :  { %2877 = vmax.xlane.f32.xlu0 %v2876_v49 }
 0xca4   :  { %v2830_v62 = vpop.f32.mrf.mxu2 }
 0xca5   :  { %v6120_v63 = vmul.f32 0.35355338, %v2830_v62 }
 0xca7   :  { %v2885_v2 = vsel %vm1709_vm8, %v6120_v63, -inf }
 0xcac   :  { %v2856_v6 = vpop.f32.mrf.mxu3 }
 0xcad   :  { %v2866_v22 = vmul.f32 0.35355338, %v2856_v6 }
 0xcaf   :  { %v2888_v21 = vsel %vm1709_vm8, %v2866_v22, -inf }
 0xcb0   :  { %v2869_v53 = vpop.xlane.xlu1 %2868  ;;  %2889 = vmax.xlane.f32.xlu1 %v2888_v21 }
 0xcb1   :  { %v2891_v54 = vsub.f32 %v2859_v38, %v2869_v53 }
 0xcb3   :  { %v2899_v57 = vmul.f32 1.442695, %v2891_v54 }
 0xcb4   :  { %3782 = vrot.lane.b32.xlu0 %v3781_v55, %s3922_s20 }
 0xcb5   :  { %3847 = vpow2.f32 %v2899_v57 }
 0xcb8   :  { %2919 = vadd.xlane.f32.xlu1 %v2918_v59 }
 0xcbb   :  { %v6116_v60 = vpop.eup %3847 }
 0xcbc   :  { %v2915_v61 = vsel %vm1709_vm8, %v6116_v60, 0.0 }
 0xcbd   :  { %2916 = vadd.xlane.f32.xlu2 %v2915_v61 }
 0xcc5   :  { %2886 = vmax.xlane.f32.xlu2 %v2885_v2 }
 0xcdd   :  { %3777 = vrot.lane.b32.xlu2 %v3776_v24, %s3922_s20 }
 0xcec   :  { %v2875_v4 = vpop.xlane.xlu2 %2874 }
 0xced   :  { %v2893_v5 = vsub.f32 %v2861_v39, %v2875_v4 }
 0xcef   :  { %v2903_v8 = vmul.f32 1.442695, %v2893_v5 }
 0xcf1   :  { %3849 = vpow2.f32 %v2903_v8 }
 0xcf7   :  { %v6127_v9 = vpop.eup %3849 }
 0xcf8   :  { %v2921_v42 = vsel %vm1709_vm8, %v6127_v9, 0.0 }
 0xcf9   :  { %2922 = vadd.xlane.f32.xlu0 %v2921_v42  ;;  %v3786_v42 = vpack.i.bf16 %v6067_v20, %v6073_v27 }
 0xd03   :  { %v2881_v10 = vpop.xlane.xlu1 %2880 }
 0xd04   :  { %v2895_v56 = vsub.f32 %v2863_v41, %v2881_v10 }
 0xd06   :  { %v2907_v12 = vmul.f32 1.442695, %v2895_v56 }
 0xd08   :  { %3851 = vpow2.f32 %v2907_v12 }
 0xd0c   :  { %v2884_v15 = vpop.xlane.xlu2 %2883 }
 0xd0d   :  { %v2896_v14 = vsub.f32 %v2864_v46, %v2884_v15 }
 0xd0e   :  { %v6131_v17 = vpop.eup %3851 }
 0xd0f   :  { %v2909_v13 = vmul.f32 1.442695, %v2896_v14  ;;  %v2927_v1 = vsel %vm1709_vm8, %v6131_v17, 0.0 }
 0xd10   :  { %2928 = vadd.xlane.f32.xlu2 %v2927_v1 }
 0xd11   :  { %3853 = vpow2.f32 %v2909_v13 }
 0xd13   :  { %v2878_v18 = vpop.xlane.xlu0 %2877 }
 0xd14   :  { %v2894_v28 = vsub.f32 %v2862_v48, %v2878_v18 }
 0xd16   :  { %v2905_v23 = vmul.f32 1.442695, %v2894_v28 }
 0xd17   :  { %v6135_v19 = vpop.eup %3853 }
 0xd18   :  { %3855 = vpow2.f32 %v2905_v23  ;;  %v2930_v25 = vsel %vm1709_vm8, %v6135_v19, 0.0 }
 0xd19   :  { %2931 = vadd.xlane.f32.xlu0 %v2930_v25 }
 0xd1e   :  { %v6139_v29 = vpop.eup %3855 }
 0xd1f   :  { %v2924_v30 = vsel %vm1709_vm8, %v6139_v29, 0.0 }
 0xd20   :  { %2925 = vadd.xlane.f32.xlu1 %v2924_v30 }
 0xd23   :  { %v2890_v31 = vpop.xlane.xlu1 %2889 }
 0xd24   :  { %v2898_v32 = vsub.f32 %v2866_v22, %v2890_v31 }
 0xd26   :  { %v2913_v33 = vmul.f32 1.442695, %v2898_v32  ;;  %v3783_v34 = vpop.permute.xlu0 %3782 }
 0xd27   :  { %v3784_v26 = vunpack.i.l.bf16 %v3783_v34  ;;  %v3785_v4 = vunpack.i.h.bf16 %v3783_v34 }
 0xd28   :  { %3857 = vpow2.f32 %v2913_v33  ;;  %3189 = vrot.lane.b32.xlu2 %v6065_v0, %s3922_s20 }
 0xd29   :  { %3106 = vmatpush.msra.mxu2 %v3784_v26 }
 0xd2b   :  { %v2920_v38 = vpop.xlane.xlu1 %2919 }
 0xd2c   :  { %3859 = vrcp.f32 %v2920_v38  ;;  %v2965_v43 = vand.u32 2147483648, %v2920_v38  ;;  %v2963_v45 = vand.u32 2147483647, %v2920_v38  ;;  %vm2959_vm1 = vweird.f32 %v2920_v38 }
 0xd2e   :  { %v6145_v44 = vpop.eup %3857  ;;  %v2966_v50 = vor.u32 1.1754944e-38, %v2965_v43  ;;  %vm2964_vm3 = vcmp.eq.f32.partialorder %v2963_v45, 8.507059e+37 }
 0xd2f   :  { %v2936_v35 = vsel %vm1709_vm8, %v6145_v44, 0.0 }
 0xd30   :  { %v2917_v39 = vpop.xlane.xlu2 %2916  ;;  %2937 = vadd.xlane.f32.xlu1 %v2936_v35 }
 0xd31   :  { %3861 = vrcp.f32 %v2917_v39  ;;  %v2950_v6 = vand.u32 2147483648, %v2917_v39  ;;  %v2948_v54 = vand.u32 2147483647, %v2917_v39  ;;  %vm2944_vm5 = vweird.f32 %v2917_v39 }
 0xd32   :  { %v3860_v36 = vpop.eup %3859 }
 0xd33   :  { %v2955_v37 = vmul.f32 %v3860_v36, %v2920_v38  ;;  %vm2960_vm15 = vweird.f32 %v3860_v36  ;;  %v2951_v59 = vor.u32 1.1754944e-38, %v2950_v6  ;;  %vm2949_vm7 = vcmp.eq.f32.partialorder %v2948_v54, 8.507059e+37 }
 0xd34   :  { %vm2961_vm2 = vmor %vm2959_vm1, %vm2960_vm15 }
 0xd35   :  { %v2956_v41 = vsub.f32 1.0, %v2955_v37 }
 0xd37   :  { %v3862_v40 = vpop.eup %3861  ;;  %v2957_v46 = vmul.f32 %v3860_v36, %v2956_v41 }
 0xd38   :  { %v2940_v0 = vmul.f32 %v3862_v40, %v2917_v39  ;;  %v2887_v47 = vpop.xlane.xlu2 %2886  ;;  %vm2945_vm4 = vweird.f32 %v3862_v40 }
 0xd39   :  { %v2958_v48 = vadd.f32 %v3860_v36, %v2957_v46  ;;  %v2897_v49 = vsub.f32 %v6120_v63, %v2887_v47  ;;  %vm2946_vm6 = vmor %vm2944_vm5, %vm2945_vm4 }
 0xd3a   :  { %v2941_v51 = vsub.f32 1.0, %v2940_v0 }
 0xd3b   :  { %v2962_v52 = vsel %vm2961_vm2, %v3860_v36, %v2958_v48  ;;  %v2911_v22 = vmul.f32 1.442695, %v2897_v49 }
 0xd3c   :  { %v2967_v21 = vsel %vm2964_vm3, %v2966_v50, %v2962_v52  ;;  %v2942_v53 = vmul.f32 %v3862_v40, %v2941_v51 }
 0xd3d   :  { %v2968_v55 = vmul.f32 %v6111_v58, %v2967_v21  ;;  %3863 = vpow2.f32 %v2911_v22  ;;  %v6210_v22 = vld [vmem:[%s6318_s7 + $0x8] sm:$0x3f] }
 0xd3e   :  { %v2943_v57 = vadd.f32 %v3862_v40, %v2942_v53 }
 0xd3f   :  { %3734 = vmatmul.msk.f32.vlgmr.msra.gmra.mxu2 %vm1709_vm8, %v2968_v55 }
 0xd40   :  { %v2947_v61 = vsel %vm2946_vm6, %v3862_v40, %v2943_v57  ;;  %v3778_v62 = vpop.permute.xlu2 %3777 }
 0xd41   :  { %v2952_v63 = vsel %vm2949_vm7, %v2951_v59, %v2947_v61  ;;  %v3780_v2 = vunpack.i.h.bf16 %v3778_v62  ;;  %v3779_v24 = vunpack.i.l.bf16 %v3778_v62 }
 0xd42   :  { %v2953_v5 = vmul.f32 %v6116_v60, %v2952_v63 }
 0xd43   :  { %v6153_v8 = vpop.eup %3863  ;;  %3080 = vmatpush.msra.mxu1 %v3780_v2  ;;  %3132 = vmatpush.msrb.mxu3 %v3779_v24 }
 0xd44   :  { %3733 = vmatmul.msk.f32.vlgmr.msra.gmra.mxu1 %vm1709_vm8, %v2953_v5  ;;  %v2933_v58 = vsel %vm1709_vm8, %v6153_v8, 0.0 }
 0xd45   :  { %3236 = vmatpush.msra.mxu3 %v3785_v4  ;;  %2934 = vadd.xlane.f32.xlu0 %v2933_v58 }
 0xd49   :  { %3787 = vrot.lane.b32.xlu1 %v3786_v42, %s3922_s20 }
 0xd59   :  { %3241 = vrot.lane.b32.xlu0 %v6058_v16, %s3922_s20 }
 0xd6c   :  { %v2923_v60 = vpop.xlane.xlu0 %2922 }
 0xd6d   :  { %3865 = vrcp.f32 %v2923_v60  ;;  %v2980_v15 = vand.u32 2147483648, %v2923_v60  ;;  %v2978_v13 = vand.u32 2147483647, %v2923_v60  ;;  %vm2974_vm10 = vweird.f32 %v2923_v60 }
 0xd6f   :  { %v2981_v18 = vor.u32 1.1754944e-38, %v2980_v15  ;;  %vm2979_vm12 = vcmp.eq.f32.partialorder %v2978_v13, 8.507059e+37 }
 0xd73   :  { %v3866_v10 = vpop.eup %3865 }
 0xd74   :  { %v2970_v56 = vmul.f32 %v3866_v10, %v2923_v60  ;;  %vm2975_vm9 = vweird.f32 %v3866_v10 }
 0xd75   :  { %vm2976_vm11 = vmor %vm2974_vm10, %vm2975_vm9 }
 0xd76   :  { %v2971_v12 = vsub.f32 1.0, %v2970_v56 }
 0xd78   :  { %v2972_v14 = vmul.f32 %v3866_v10, %v2971_v12 }
 0xd7a   :  { %v2973_v1 = vadd.f32 %v3866_v10, %v2972_v14 }
 0xd7c   :  { %v2977_v28 = vsel %vm2976_vm11, %v3866_v10, %v2973_v1 }
 0xd7d   :  { %v2982_v20 = vsel %vm2979_vm12, %v2981_v18, %v2977_v28 }
 0xd7e   :  { %v2983_v27 = vmul.f32 %v6127_v9, %v2982_v20 }
 0xd80   :  { %3735 = vmatmul.msk.f32.vlgmr.msrb.gmra.mxu3 %vm1709_vm8, %v2983_v27 }
 0xd83   :  { %v2929_v16 = vpop.xlane.xlu2 %2928 }
 0xd84   :  { %vm3004_vm6 = vweird.f32 %v2929_v16  ;;  %v3008_v21 = vand.u32 2147483647, %v2929_v16 }
 0xd86   :  { %vm3009_vm11 = vcmp.eq.f32.partialorder %v3008_v21, 8.507059e+37  ;;  %v3297_v21 = vperm.slane %v6210_v22, 0 }
 0xd8b   :  { %v3190_v23 = vpop.permute.xlu2 %3189 }
 0xd8c   :  { %3210 = vmatpush.msrb.mxu2 %v3190_v23  ;;  %v2932_v25 = vpop.xlane.xlu0 %2931 }
 0xd8d   :  { %3867 = vrcp.f32 %v2932_v25  ;;  %v3025_v33 = vand.u32 2147483648, %v2932_v25  ;;  %v3023_v26 = vand.u32 2147483647, %v2932_v25  ;;  %vm3019_vm1 = vweird.f32 %v2932_v25 }
 0xd8e   :  { %3869 = vrcp.f32 %v2929_v16 }
 0xd8f   :  { %v3026_v35 = vor.u32 1.1754944e-38, %v3025_v33  ;;  %vm3024_vm3 = vcmp.eq.f32.partialorder %v3023_v26, 8.507059e+37 }
 0xd93   :  { %v3868_v30 = vpop.eup %3867  ;;  %v2926_v39 = vpop.xlane.xlu1 %2925 }
 0xd94   :  { %v3015_v31 = vmul.f32 %v3868_v30, %v2932_v25  ;;  %vm3020_vm15 = vweird.f32 %v3868_v30  ;;  %3871 = vrcp.f32 %v2926_v39  ;;  %v3870_v41 = vpop.eup %3869  ;;  %v2995_v6 = vand.u32 2147483648, %v2926_v39 }
 0xd95   :  { %vm3021_vm2 = vmor %vm3019_vm1, %vm3020_vm15  ;;  %v3000_v40 = vmul.f32 %v3870_v41, %v2929_v16  ;;  %vm3005_vm4 = vweird.f32 %v3870_v41  ;;  %vm2989_vm9 = vweird.f32 %v2926_v39  ;;  %v2993_v53 = vand.u32 2147483647, %v2926_v39 }
 0xd96   :  { %v3016_v32 = vsub.f32 1.0, %v3015_v31  ;;  %vm6167_vm7 = vmor %vm3004_vm6, %vm3005_vm4  ;;  %v2996_v61 = vor.u32 1.1754944e-38, %v2995_v6 }
 0xd97   :  { %v3001_v0 = vsub.f32 1.0, %v3000_v40  ;;  %vm2994_vm12 = vcmp.eq.f32.partialorder %v2993_v53, 8.507059e+37 }
 0xd98   :  { %v3017_v34 = vmul.f32 %v3868_v30, %v3016_v32 }
 0xd99   :  { %v3002_v48 = vmul.f32 %v3870_v41, %v3001_v0 }
 0xd9a   :  { %v3018_v38 = vadd.f32 %v3868_v30, %v3017_v34  ;;  %v3872_v43 = vpop.eup %3871 }
 0xd9b   :  { %v2985_v46 = vmul.f32 %v3872_v43, %v2926_v39  ;;  %v3003_v51 = vadd.f32 %v3870_v41, %v3002_v48  ;;  %vm2990_vm5 = vweird.f32 %v3872_v43 }
 0xd9c   :  { %v3022_v9 = vsel %vm3021_vm2, %v3868_v30, %v3018_v38  ;;  %vm2991_vm10 = vmor %vm2989_vm9, %vm2990_vm5 }
 0xd9d   :  { %v3027_v36 = vsel %vm3024_vm3, %v3026_v35, %v3022_v9  ;;  %v2986_v47 = vsub.f32 1.0, %v2985_v46  ;;  %v3007_v55 = vsel %vm6167_vm7, %v3870_v41, %v3003_v51  ;;  %v3690_v41 = vld [vmem:[%s6317_s6 + $0x28] sm:$0xff] }
 0xd9e   :  { %v3028_v37 = vmul.f32 %v6135_v19, %v3027_v36  ;;  %v3010_v19 = vand.u32 2147483648, %v2929_v16  ;;  %v3692_v36 = vld [vmem:[%s6317_s6 + $0x38] sm:$0xff] }
 0xd9f   :  { %v2987_v49 = vmul.f32 %v3872_v43, %v2986_v47 }
 0xda0   :  { %3738 = vmatmul.msk.f32.vlgmr.msrb.gmra.mxu2 %vm1709_vm8, %v3028_v37  ;;  %v3011_v59 = vor.u32 1.1754944e-38, %v3010_v19  ;;  %v3691_v37 = vld [vmem:[%s6317_s6 + $0x30] sm:$0xff] }
 0xda1   :  { %v2988_v52 = vadd.f32 %v3872_v43, %v2987_v49 }
 0xda2   :  { %v3012_v2 = vsel %vm3009_vm11, %v3011_v59, %v3007_v55 }
 0xda3   :  { %v2938_v45 = vpop.xlane.xlu1 %2937  ;;  %v2992_v57 = vsel %vm2991_vm10, %v3872_v43, %v2988_v52  ;;  %v3013_v42 = vmul.f32 %v6131_v17, %v3012_v2  ;;  %v3689_v43 = vld [vmem:[%s6317_s6 + $0x20] sm:$0xff] }
 0xda4   :  { %3873 = vrcp.f32 %v2938_v45  ;;  %v2997_v24 = vsel %vm2994_vm12, %v2996_v61, %v2992_v57  ;;  %v3055_v14 = vand.u32 2147483648, %v2938_v45  ;;  %vm3049_vm1 = vweird.f32 %v2938_v45 }
 0xda5   :  { %v2998_v60 = vmul.f32 %v6139_v29, %v2997_v24  ;;  %v3053_v1 = vand.u32 2147483647, %v2938_v45 }
 0xda6   :  { %v3056_v20 = vor.u32 1.1754944e-38, %v3055_v14  ;;  %v3694_v14 = vld [vmem:[%s6319_s8 + $0x20] sm:$0xff] }
 0xda7   :  { %vm3054_vm5 = vcmp.eq.f32.partialorder %v3053_v1, 8.507059e+37 }
 0xdaa   :  { %v3874_v50 = vpop.eup %3873 }
 0xdab   :  { %v3045_v54 = vmul.f32 %v3874_v50, %v2938_v45  ;;  %vm3050_vm15 = vweird.f32 %v3874_v50 }
 0xdac   :  { %vm3051_vm2 = vmor %vm3049_vm1, %vm3050_vm15 }
 0xdad   :  { %v3046_v63 = vsub.f32 1.0, %v3045_v54 }
 0xdaf   :  { %v3047_v10 = vmul.f32 %v3874_v50, %v3046_v63 }
 0xdb1   :  { %v3048_v15 = vadd.f32 %v3874_v50, %v3047_v10 }
 0xdb3   :  { %v3052_v28 = vsel %vm3051_vm2, %v3874_v50, %v3048_v15  ;;  %v3695_v15 = vld [vmem:[%s6319_s8 + $0x28] sm:$0xff] }
 0xdb4   :  { %v3057_v23 = vsel %vm3054_vm5, %v3056_v20, %v3052_v28  ;;  %v3712_v28 = vld [vmem:[%s6321_s10 + $0xe8] sm:$0xff] }
 0xdb5   :  { %v3058_v32 = vmul.f32 %v6145_v44, %v3057_v23 }
 0xdb8   :  { %v2935_v62 = vpop.xlane.xlu0 %2934 }
 0xdb9   :  { %3875 = vrcp.f32 %v2935_v62  ;;  %v3040_v18 = vand.u32 2147483648, %v2935_v62  ;;  %v3038_v29 = vand.u32 2147483647, %v2935_v62  ;;  %vm3034_vm4 = vweird.f32 %v2935_v62 }
 0xdbb   :  { %v3788_v4 = vpop.permute.xlu1 %3787  ;;  %v3041_v16 = vor.u32 1.1754944e-38, %v3040_v18  ;;  %vm3039_vm7 = vcmp.eq.f32.partialorder %v3038_v29, 8.507059e+37  ;;  %v3713_v29 = vld [vmem:[%s6321_s10 + $0xf0] sm:$0xff] }
 0xdbc   :  { %v3790_v5 = vunpack.i.h.bf16 %v3788_v4  ;;  %v3789_v58 = vunpack.i.l.bf16 %v3788_v4 }
 0xdbe   :  { %3158 = vmatpush.msra.mxu0 %v3790_v5  ;;  %3184 = vmatpush.msrb.mxu1 %v3789_v58 }
 0xdbf   :  { %v3876_v56 = vpop.eup %3875  ;;  %3736 = vmatmul.msk.f32.vlgmr.msra.gmra.mxu0 %vm1709_vm8, %v2998_v60  ;;  %3737 = vmatmul.msk.f32.vlgmr.msrb.gmra.mxu1 %vm1709_vm8, %v3013_v42 }
 0xdc0   :  { %v3030_v12 = vmul.f32 %v3876_v56, %v2935_v62  ;;  %vm3035_vm3 = vweird.f32 %v3876_v56  ;;  %3316 = vmatpush.msra.mxu1 %v3692_v36 }
 0xdc1   :  { %vm3036_vm6 = vmor %vm3034_vm4, %vm3035_vm3  ;;  %v3082_v26 = vpop.f32.mrf.mxu1 }
 0xdc2   :  { %v3031_v13 = vsub.f32 1.0, %v3030_v12  ;;  %v3108_v38 = vpop.f32.mrf.mxu2  ;;  %3317 = vmatpush.msra.mxu1 %v3691_v37  ;;  %v3696_v12 = vld [vmem:[%s6319_s8 + $0x30] sm:$0xff] }
 0xdc4   :  { %v3032_v17 = vmul.f32 %v3876_v56, %v3031_v13  ;;  %3318 = vmatpush.msra.mxu1 %v3690_v41 }
 0xdc6   :  { %v3033_v27 = vadd.f32 %v3876_v56, %v3032_v17  ;;  %3319 = vmatpush.msra.mxu1 %v3689_v43  ;;  %v3714_v17 = vld [vmem:[%s6321_s10 + $0xf8] sm:$0xff] }
 0xdc7   :  { %3430 = vmatpush.msrb.mxu3 %v3714_v17 }
 0xdc8   :  { %v3037_v25 = vsel %vm3036_vm6, %v3876_v56, %v3033_v27 }
 0xdc9   :  { %v3042_v30 = vsel %vm3039_vm7, %v3041_v16, %v3037_v25  ;;  %3431 = vmatpush.msrb.mxu3 %v3713_v29  ;;  %v3711_v16 = vld [vmem:[%s6321_s10 + $0xe0] sm:$0xff] }
 0xdca   :  { %v3043_v31 = vmul.f32 %v6153_v8, %v3042_v30 }
 0xdcb   :  { %v3242_v33 = vpop.permute.xlu0 %3241  ;;  %3432 = vmatpush.msrb.mxu3 %v3712_v28  ;;  %v3429_v28 = vperm.slane %v6210_v22, 3 }
 0xdcc   :  { %3739 = vmatmul.msk.f32.vlgmr.msra.gmra.mxu3 %vm1709_vm8, %v3043_v31  ;;  %3262 = vmatpush.msrb.mxu0 %v3242_v33 }
 0xdcd   :  { %3740 = vmatmul.msk.f32.vlgmr.msrb.gmra.mxu0 %vm1709_vm8, %v3058_v32  ;;  %3433 = vmatpush.msrb.mxu3 %v3711_v16 }
 0xe03   :  { %v3134_v34 = vpop.f32.mrf.mxu3 }
 0xe04   :  { %3269 = vrot.lane.b32.xlu2 %v3134_v34, %s3923_s0 }
 0xe23   :  { %v3212_v8 = vpop.f32.mrf.mxu2 }
 0xe3c   :  { %v3160_v35 = vpop.f32.mrf.mxu0  ;;  %v3186_v39 = vpop.f32.mrf.mxu1 }
 0xe3d   :  { %3277 = vrot.lane.b32.xlu0 %v3186_v39, %s3924_s21  ;;  %3271 = vrot.lane.b32.xlu2 %v3160_v35, %s3923_s0  ;;  %v3373_v35 = vperm.slane %v6210_v22, 1 }
 0xe45   :  { %3279 = vrot.lane.b32.xlu0 %v3212_v8, %s3924_s21 }
 0xe4a   :  { %v3264_v9 = vpop.f32.mrf.mxu0 }
 0xe4f   :  { %v3238_v44 = vpop.f32.mrf.mxu3 }
 0xe50   :  { %3285 = vrot.lane.b32.xlu1 %v3238_v44, %s3925_s22  ;;  %v3376_v44 = vperm.slane %v6210_v22, 2 }
 0xe58   :  { %3287 = vrot.lane.b32.xlu1 %v3264_v9, %s3925_s22 }
 0xe5e   :  { %v3270_v46 = vpop.permute.xlu2 %3269 }
 0xe5f   :  { %v3291_v45 = vsel %vm1709_vm8, %v3082_v26, %v3270_v46 }
 0xe97   :  { %v3272_v49 = vpop.permute.xlu2 %3271 }
 0xe98   :  { %v3292_v51 = vsel %vm1709_vm8, %v3108_v38, %v3272_v49  ;;  %v3709_v49 = vld [vmem:[%s6321_s10 + $0xd0] sm:$0xff] }
 0xeaf   :  { %v3278_v40 = vpop.permute.xlu0 %3277 }
 0xeb0   :  { %v3293_v0 = vsel %vm2350_vm13, %v3291_v45, %v3278_v40 }
 0xeb7   :  { %v3280_v50 = vpop.permute.xlu0 %3279 }
 0xeb8   :  { %v3294_v52 = vsel %vm2350_vm13, %v3292_v51, %v3280_v50  ;;  %v3708_v50 = vld [vmem:[%s6321_s10 + $0xc8] sm:$0xff]  ;;  %v3707_v51 = vld [vmem:[%s6321_s10 + $0xc0] sm:$0xff] }
 0xec2   :  { %v3286_v47 = vpop.permute.xlu1 %3285 }
 0xec3   :  { %v3295_v48 = vsel %vm2353_vm14, %v3293_v0, %v3286_v47 }
 0xec4   :  { %3741 = vmatmul.msk.f32.vlgmr.msra.gmra.mxu1 %vm1570_vm0, %v3295_v48  ;;  %v3710_v48 = vld [vmem:[%s6321_s10 + $0xd8] sm:$0xff] }
 0xec5   :  { %3434 = vmatpush.msrb.mxu3 %v3710_v48 }
 0xec7   :  { %3435 = vmatpush.msrb.mxu3 %v3709_v49 }
 0xec9   :  { %3436 = vmatpush.msrb.mxu3 %v3708_v50 }
 0xeca   :  { %v3288_v19 = vpop.permute.xlu1 %3287 }
 0xecb   :  { %v3296_v6 = vsel %vm2353_vm14, %v3294_v52, %v3288_v19  ;;  %3437 = vmatpush.msrb.mxu3 %v3707_v51  ;;  %v3706_v52 = vld [vmem:[%s6321_s10 + $0xb8] sm:$0xff]  ;;  %v3705_v19 = vld [vmem:[%s6321_s10 + $0xb0] sm:$0xff] }
 0xecc   :  { %3742 = vmatmul.msk.f32.gmra.mxu1 %vm1570_vm0, %v3296_v6  ;;  %v3704_v6 = vld [vmem:[%s6321_s10 + $0xa8] sm:$0xff] }
 0xecd   :  { %3438 = vmatpush.msrb.mxu3 %v3706_v52 }
 0xecf   :  { %3439 = vmatpush.msrb.mxu3 %v3705_v19 }
 0xed1   :  { %3440 = vmatpush.msrb.mxu3 %v3704_v6  ;;  %v3499_v6 = vperm.slane %v6210_v22, 4 }
 0xf41   :  { %v3321_v53 = vpop.f32.mrf.mxu1 }
 0xf42   :  { %v3322_v54 = vadd.f32 %v3321_v53, %v3297_v21  ;;  %v3702_v53 = vld [vmem:[%s6321_s10 + $0x98] sm:$0xff] }
 0xf44   :  { %v3327_v55 = vadd.f32 %v3322_v54, %v6019_v7  ;;  %v3701_v54 = vld [vmem:[%s6321_s10 + $0x90] sm:$0xff] }
 0xf46   :  { %v3329_v57 = vsel %vm1570_vm0, %v3327_v55, 0.0 }
 0xf47   :  { %3330 = vadd.xlane.f32.xlu2 %v3329_v57  ;;  %v3699_v57 = vld [vmem:[%s6321_s10 + $0x80] sm:$0xff] }
 0xf49   :  { %v3324_v59 = vpop.f32.mrf.mxu1 }
 0xf4a   :  { %v3325_v61 = vadd.f32 %v3324_v59, %v3297_v21  ;;  %v3703_v21 = vld [vmem:[%s6321_s10 + $0xa0] sm:$0xff] }
 0xf4b   :  { %3441 = vmatpush.msrb.mxu3 %v3703_v21  ;;  %v3794_v59 = vld [vmem:[%s6320_s9 + $0x1] ss:$0 sm:$0xff]  ;;  %s3926_s9 = smov [#allocation2]  }
 0xf4c   :  { %v3328_v62 = vadd.f32 %v3325_v61, %v6025_v11  ;;  %v3697_v11 = vld [vmem:[%s6319_s8 + $0x38] sm:$0xff] }
 0xf4d   :  { %3400 = vmatpush.msra.mxu2 %v3697_v11  ;;  %3442 = vmatpush.msrb.mxu3 %v3702_v53 }
 0xf4e   :  { %v3332_v63 = vsel %vm1570_vm0, %v3328_v62, 0.0 }
 0xf4f   :  { %3333 = vadd.xlane.f32.xlu0 %v3332_v63  ;;  %3401 = vmatpush.msra.mxu2 %v3696_v12 }
 0xf50   :  { %3443 = vmatpush.msrb.mxu3 %v3701_v54  ;;  %v3502_v54 = vperm.slane %v6210_v22, 5 }
 0xf51   :  { %3402 = vmatpush.msra.mxu2 %v3695_v15 }
 0xf53   :  { %3403 = vmatpush.msra.mxu2 %v3694_v14 }
 0xfba   :  { %v3331_v2 = vpop.xlane.xlu2 %3330 }
 0xfbb   :  { %v3335_v24 = vmul.f32 %v3331_v2, %v5694_v3 }
 0xfbd   :  { %v3337_v4 = vsub.f32 %v3327_v55, %v3335_v24  ;;  %v3700_v55 = vld [vmem:[%s6321_s10 + $0x88] sm:$0xff]  ;;  %s3512_s10 = sshll.u32 %s3926_s9, 4  ;;  %s3513_s10 = int_to_ptr.vmem [resolvable:$true] %s3512_s10 }
 0xfbe   :  { %3444 = vmatpush.msrb.mxu3 %v3700_v55 }
 0xfbf   :  { %v3339_v5 = vmul.f32 %v3337_v4, %v3337_v4 }
 0xfc0   :  { %3445 = vmatpush.msrb.mxu3 %v3699_v57 }
 0xfc1   :  { %v3341_v58 = vsel %vm1570_vm0, %v3339_v5, 0.0 }
 0xfc2   :  { %3342 = vadd.xlane.f32.xlu1 %v3341_v58  ;;  %v3334_v42 = vpop.xlane.xlu0 %3333 }
 0xfc3   :  { %v3336_v7 = vmul.f32 %v3334_v42, %v5694_v3 }
 0xfc5   :  { %v3338_v60 = vsub.f32 %v3328_v62, %v3336_v7 }
 0xfc7   :  { %v3340_v10 = vmul.f32 %v3338_v60, %v3338_v60 }
 0xfc9   :  { %v3344_v56 = vsel %vm1570_vm0, %v3340_v10, 0.0 }
 0xfca   :  { %3345 = vadd.xlane.f32.xlu2 %v3344_v56 }
0x1035   :  { %v3343_v13 = vpop.xlane.xlu1 %3342 }
0x1036   :  { %v3347_v1 = vmul.f32 %v3343_v13, %v5694_v3 }
0x1038   :  { %v3349_v18 = vadd.f32 1e-12, %v3347_v1 }
0x103a   :  { %3877 = vrsqrt.f32 %v3349_v18  ;;  %vm3357_vm13 = vweird.f32 %v3349_v18 }
0x103d   :  { %v3346_v20 = vpop.xlane.xlu2 %3345 }
0x103e   :  { %v3348_v27 = vmul.f32 %v3346_v20, %v5694_v3 }
0x1040   :  { %v3878_v23 = vpop.eup %3877  ;;  %v3350_v25 = vadd.f32 1e-12, %v3348_v27 }
0x1041   :  { %v3352_v30 = vmul.f32 %v3878_v23, %v3349_v18  ;;  %vm3358_vm8 = vweird.f32 %v3878_v23 }
0x1042   :  { %3879 = vrsqrt.f32 %v3350_v25  ;;  %vm3359_vm14 = vmor %vm3357_vm13, %vm3358_vm8  ;;  %vm3367_vm10 = vweird.f32 %v3350_v25 }
0x1043   :  { %v3353_v31 = vmul.f32 %v3878_v23, %v3352_v30 }
0x1045   :  { %v3354_v32 = vmul.f32 0.5, %v3353_v31 }
0x1047   :  { %v3355_v33 = vsub.f32 1.5, %v3354_v32 }
0x1048   :  { %v3880_v34 = vpop.eup %3879 }
0x1049   :  { %v3356_v26 = vmul.f32 %v3878_v23, %v3355_v33  ;;  %v3362_v38 = vmul.f32 %v3880_v34, %v3350_v25  ;;  %vm3368_vm9 = vweird.f32 %v3880_v34 }
0x104a   :  { %vm3369_vm11 = vmor %vm3367_vm10, %vm3368_vm9 }
0x104b   :  { %v3360_v39 = vsel %vm3359_vm14, %v3878_v23, %v3356_v26  ;;  %v3363_v8 = vmul.f32 %v3880_v34, %v3362_v38 }
0x104c   :  { %v3371_v9 = vmul.f32 %v3360_v39, %v3337_v4 }
0x104d   :  { %v3364_v36 = vmul.f32 0.5, %v3363_v8 }
0x104e   :  { %v3374_v37 = vmul.f32 %v3373_v35, %v3371_v9 }
0x104f   :  { %v3365_v41 = vsub.f32 1.5, %v3364_v36 }
0x1050   :  { %v6249_v43 = vadd.f32 %v3376_v44, %v3374_v37 }
0x1051   :  { %v3366_v40 = vmul.f32 %v3880_v34, %v3365_v41 }
0x1052   :  { %3743 = vmatmul.msk.f32.vlgmr.msra.gmra.mxu2 %vm1570_vm0, %v6249_v43 }
0x1053   :  { %v3370_v46 = vsel %vm3369_vm11, %v3880_v34, %v3366_v40 }
0x1054   :  { %v3372_v45 = vmul.f32 %v3370_v46, %v3338_v60 }
0x1056   :  { %v3375_v0 = vmul.f32 %v3373_v35, %v3372_v45 }
0x1058   :  { %v3378_v47 = vadd.f32 %v3376_v44, %v3375_v0 }
0x105a   :  { %3744 = vmatmul.msk.f32.gmra.mxu2 %vm1570_vm0, %v3378_v47 }
0x10d5   :  { %v3405_v61 = vpop.f32.mrf.mxu2 }
0x10d6   :  { %v3406_v62 = vadd.f32 %v3794_v59, %v3405_v61 }
0x10d8   :  { %v3413_v63 = vmul.f32 0.044715, %v3406_v62  ;;  %v3411_v15 = vmul.f32 0.5, %v3406_v62 }
0x10da   :  { %v3415_v2 = vmul.f32 %v3413_v63, %v3406_v62 }
0x10dc   :  { %v3417_v24 = vmul.f32 %v3415_v2, %v3406_v62 }
0x10dd   :  { %v3408_v4 = vpop.f32.mrf.mxu2 }
0x10de   :  { %v3419_v5 = vadd.f32 %v3417_v24, %v3406_v62  ;;  %v3409_v58 = vadd.f32 %v3794_v59, %v3408_v4 }
0x10e0   :  { %v3421_v42 = vmul.f32 0.7978846, %v3419_v5  ;;  %v3414_v7 = vmul.f32 0.044715, %v3409_v58  ;;  %v3412_v18 = vmul.f32 0.5, %v3409_v58 }
0x10e2   :  { %3881 = vtanh.f32 %v3421_v42  ;;  %v3416_v60 = vmul.f32 %v3414_v7, %v3409_v58 }
0x10e4   :  { %v3418_v10 = vmul.f32 %v3416_v60, %v3409_v58 }
0x10e6   :  { %v3420_v56 = vadd.f32 %v3418_v10, %v3409_v58 }
0x10e8   :  { %v3882_v11 = vpop.eup %3881  ;;  %v3422_v12 = vmul.f32 0.7978846, %v3420_v56 }
0x10e9   :  { %v3425_v14 = vadd.f32 1.0, %v3882_v11 }
0x10ea   :  { %3883 = vtanh.f32 %v3422_v12 }
0x10eb   :  { %v3427_v13 = vmul.f32 %v3425_v14, %v3411_v15 }
0x10ed   :  { %3446 = vmatmul.f32.vlgmr.msrb.gmra.mxu3 %v3427_v13 }
0x10f0   :  { %v3884_v1 = vpop.eup %3883 }
0x10f1   :  { %v3426_v17 = vadd.f32 1.0, %v3884_v1 }
0x10f3   :  { %v3428_v29 = vmul.f32 %v3426_v17, %v3412_v18 }
0x10f5   :  { %3449 = vmatmul.f32.gmra.mxu3 %v3428_v29 }
0x1170   :  { %v3447_v20 = vpop.f32.mrf.mxu3 }
0x1171   :  { %v3448_v27 = vadd.f32 %v3447_v20, %v3429_v28 }
0x1173   :  { %v3453_v16 = vadd.f32 %v3448_v27, %v6249_v43 }
0x1175   :  { %v3455_v23 = vsel %vm1570_vm0, %v3453_v16, 0.0 }
0x1176   :  { %3456 = vadd.xlane.f32.xlu0 %v3455_v23 }
0x1178   :  { %v3450_v25 = vpop.f32.mrf.mxu3 }
0x1179   :  { %v3451_v30 = vadd.f32 %v3450_v25, %v3429_v28 }
0x117b   :  { %v3454_v31 = vadd.f32 %v3451_v30, %v3378_v47 }
0x117d   :  { %v3458_v32 = vsel %vm1570_vm0, %v3454_v31, 0.0 }
0x117e   :  { %3459 = vadd.xlane.f32.xlu2 %v3458_v32 }
0x11e9   :  { %v3457_v33 = vpop.xlane.xlu0 %3456 }
0x11ea   :  { %v3461_v34 = vmul.f32 %v3457_v33, %v5694_v3 }
0x11ec   :  { %v3463_v26 = vsub.f32 %v3453_v16, %v3461_v34 }
0x11ee   :  { %v3465_v38 = vmul.f32 %v3463_v26, %v3463_v26 }
0x11f0   :  { %v3467_v35 = vsel %vm1570_vm0, %v3465_v38, 0.0 }
0x11f1   :  { %v3460_v39 = vpop.xlane.xlu2 %3459  ;;  %3468 = vadd.xlane.f32.xlu1 %v3467_v35 }
0x11f2   :  { %v3462_v8 = vmul.f32 %v3460_v39, %v5694_v3 }
0x11f4   :  { %v3464_v44 = vsub.f32 %v3454_v31, %v3462_v8 }
0x11f6   :  { %v3466_v9 = vmul.f32 %v3464_v44, %v3464_v44 }
0x11f8   :  { %v3470_v36 = vsel %vm1570_vm0, %v3466_v9, 0.0 }
0x11f9   :  { %3471 = vadd.xlane.f32.xlu0 %v3470_v36 }
0x1264   :  { %v3469_v37 = vpop.xlane.xlu1 %3468 }
0x1265   :  { %v3473_v41 = vmul.f32 %v3469_v37, %v5694_v3 }
0x1267   :  { %v3475_v43 = vadd.f32 1e-12, %v3473_v41 }
0x1269   :  { %3885 = vrsqrt.f32 %v3475_v43  ;;  %vm3483_vm15 = vweird.f32 %v3475_v43 }
0x126c   :  { %v3472_v40 = vpop.xlane.xlu0 %3471 }
0x126d   :  { %v3474_v46 = vmul.f32 %v3472_v40, %v5694_v3 }
0x126f   :  { %v3886_v45 = vpop.eup %3885  ;;  %v3476_v0 = vadd.f32 1e-12, %v3474_v46 }
0x1270   :  { %v3478_v47 = vmul.f32 %v3886_v45, %v3475_v43  ;;  %vm3484_vm12 = vweird.f32 %v3886_v45 }
0x1271   :  { %3887 = vrsqrt.f32 %v3476_v0  ;;  %vm3485_vm1 = vmor %vm3483_vm15, %vm3484_vm12  ;;  %vm3493_vm3 = vweird.f32 %v3476_v0 }
0x1272   :  { %v3479_v48 = vmul.f32 %v3886_v45, %v3478_v47 }
0x1274   :  { %v3480_v49 = vmul.f32 0.5, %v3479_v48 }
0x1276   :  { %v3481_v50 = vsub.f32 1.5, %v3480_v49 }
0x1277   :  { %v3888_v51 = vpop.eup %3887 }
0x1278   :  { %v3482_v52 = vmul.f32 %v3886_v45, %v3481_v50  ;;  %v3488_v19 = vmul.f32 %v3888_v51, %v3476_v0  ;;  %vm3494_vm2 = vweird.f32 %v3888_v51 }
0x1279   :  { %vm3495_vm4 = vmor %vm3493_vm3, %vm3494_vm2 }
0x127a   :  { %v3486_v21 = vsel %vm3485_vm1, %v3886_v45, %v3482_v52  ;;  %v3489_v53 = vmul.f32 %v3888_v51, %v3488_v19 }
0x127b   :  { %v3497_v3 = vmul.f32 %v3486_v21, %v3463_v26 }
0x127c   :  { %v3490_v55 = vmul.f32 0.5, %v3489_v53 }
0x127d   :  { %v3500_v57 = vmul.f32 %v3499_v6, %v3497_v3 }
0x127e   :  { %v3491_v59 = vsub.f32 1.5, %v3490_v55 }
0x127f   :  { %v3503_v61 = vadd.f32 %v3502_v54, %v3500_v57 }
0x1280   :  { %v3492_v62 = vmul.f32 %v3888_v51, %v3491_v59 }
0x1281   :  { %3506 = vst.msk [vmem:[#allocation2 + $0x20] sm:$0xff] %vm1570_vm0, %v3503_v61 }
0x1282   :  { %v3496_v63 = vsel %vm3495_vm4, %v3888_v51, %v3492_v62 }
0x1283   :  { %v3498_v2 = vmul.f32 %v3496_v63, %v3464_v44 }
0x1285   :  { %v3501_v22 = vmul.f32 %v3499_v6, %v3498_v2 }
0x1287   :  { %v3504_v24 = vadd.f32 %v3502_v54, %v3501_v22 }
0x1289   :  { %3507 = vst.msk [vmem:[#allocation2 + $0x28] sm:$0xff] %vm1570_vm0, %v3504_v24 }
0x128a   :  { %3520 = dma.vmem_to_hbm [thread:$0]  %s3513_s10, 768, %s3515_s5, [#allocation3], %s3927_s16, %s3927_s16, %s3923_s0  }
0x128b   :  { %3913 = dma.done.wait [#allocation3], 768  }
0x128c   :  { %3914 = vsyncadd [#allocation3], 4294966528 }
0x128d   :  { %3525 = vsyncpa [#allocation3], 1 }

</bundles_post_ra>
